<compile_context>
chip_gen: v7x
topology: tpu7x:2x2x1
jax: 0.10.0
libtpu: 0.0.40
codegen_flags: <defaults>
</compile_context>

<pallas_src>
import functools

import jax
import jax.numpy as jnp
from jax.experimental import pallas as pl
from jax.experimental.pallas import tpu as pltpu


def _cdiv(a, b):
    return -(-a // b)


def _round_up(a, b):
    return _cdiv(a, b) * b


def _ce_kernel(logits_ref, labels_ref, part_sum_ref, acc_ref, *,
               n_valid, tile_b, tiles_per_part, need_mask):
    """One grid step: soft-target CE for a (tile_b, C) tile of rows.

    Per-row ce is accumulated into a VMEM vector accumulator; the reduction to
    a scalar and the SMEM store happen only on the last step of the serial
    reduction axis.
    """
    p = pl.program_id(0)   # part index (parallel axis; v7x dual-TC split)
    i = pl.program_id(1)   # tile index within the part (serial reduction axis)

    x = logits_ref[...].astype(jnp.float32)        # (tile_b, C)
    lbl = labels_ref[...]                          # (tile_b, 1) int32

    # ce = (m + logsumexp(x - m)) - x[label]  -- no log_p materialization.
    m = jnp.max(x, axis=-1, keepdims=True)                            # (TB, 1)
    lse = jnp.log(jnp.sum(jnp.exp(x - m), axis=-1, keepdims=True))    # (TB, 1)
    class_ids = jax.lax.broadcasted_iota(jnp.int32, x.shape, 1)
    picked = jnp.sum(jnp.where(class_ids == lbl, x, 0.0),
                     axis=-1, keepdims=True)                          # (TB, 1)
    ce = (m + lse) - picked                                           # (TB, 1)

    if need_mask:
        # Rows whose *nominal* global index >= n_valid are padding or clamped
        # re-reads of the last real block; zero their contribution.
        row = jax.lax.broadcasted_iota(jnp.int32, ce.shape, 0)
        global_row = (p * tiles_per_part + i) * tile_b + row
        ce = jnp.where(global_row < n_valid, ce, 0.0)

    @pl.when(i == 0)
    def _init():
        acc_ref[...] = jnp.zeros_like(acc_ref)

    acc_ref[...] += ce

    @pl.when(i == pl.num_programs(1) - 1)
    def _finalize():
        part_sum_ref[0, 0] = jnp.sum(acc_ref[...])


def _choose_tile_b(n_rows, num_classes, itemsize,
                   vmem_budget_bytes=12 * 1024 * 1024):
    """Largest row tile whose double-buffered VMEM footprint fits the budget.

    Budget is kept conservative (~12 MiB) so it is safe on v5e (16 MiB scoped
    default) and leaves ample headroom on v7x (64 MiB physical VMEM).
    """
    c_pad = max(_round_up(num_classes, 128), 128)      # lane padding in VMEM
    per_row = (2 * c_pad * itemsize        # logits block, double-buffered
               + 2 * 128 * 4               # labels block (lane-padded i32), x2
               + 128 * 4)                  # f32 accumulator scratch
    tile_b = vmem_budget_bytes // per_row
    tile_b = max(16, (int(tile_b) // 16) * 16)
    tile_b = min(tile_b, 4096)
    # Never (much) larger than the problem itself.
    tile_b = min(tile_b, max(16, _round_up(n_rows, 16)))
    return int(tile_b)


def class_loss(logits, labels, *, tile_b=None, num_parts=2,
               vmem_budget_bytes=12 * 1024 * 1024):
    """Equivalent of Loss(loss_type='cross_entropy', class_balanced=False)(logits, labels)."""
    # --- glue: flatten exactly like the PyTorch forward (NCHW -> (N, C)) ---
    if logits.ndim > 2:
        c = logits.shape[1]
        perm = (0,) + tuple(range(2, logits.ndim)) + (1,)
        logits = jnp.transpose(logits, perm).reshape(-1, c)
        labels = labels.reshape(-1)
    n, c = logits.shape
    labels = labels.astype(jnp.int32)

    itemsize = jnp.dtype(logits.dtype).itemsize
    if tile_b is None:
        tile_b = _choose_tile_b(n, c, itemsize, vmem_budget_bytes)
    tile_b = max(16, (int(tile_b) // 16) * 16)

    # Tiny pad (< 16 rows of copy work) only when the whole problem is smaller
    # than a single tile; large ragged N is handled by clamping + masking.
    n_rows = n
    if n_rows < tile_b:
        pad = tile_b - n_rows
        logits = jnp.pad(logits, ((0, pad), (0, 0)))
        labels = jnp.pad(labels, ((0, pad),))
        n_rows = tile_b
    labels2d = labels.reshape(n_rows, 1)

    total_tiles = _cdiv(n_rows, tile_b)                     # >= 1
    num_parts = max(1, min(int(num_parts), total_tiles))    # v7x: 2 TCs
    tiles_per_part = _cdiv(total_tiles, num_parts)
    last_block = total_tiles - 1
    need_mask = (num_parts * tiles_per_part * tile_b) != n

    def tile_map(p, i):
        # Clamp so no block ever starts fully out of bounds; clamped
        # duplicates are masked out in-kernel by their nominal row index.
        return (jnp.minimum(p * tiles_per_part + i, last_block), 0)

    kernel = functools.partial(
        _ce_kernel, n_valid=n, tile_b=tile_b,
        tiles_per_part=tiles_per_part, need_mask=need_mask)

    part_sums = pl.pallas_call(
        kernel,
        out_shape=jax.ShapeDtypeStruct((num_parts, 1), jnp.float32),
        grid_spec=pltpu.PrefetchScalarGridSpec(
            num_scalar_prefetch=0,
            grid=(num_parts, tiles_per_part),
            in_specs=[
                pl.BlockSpec((tile_b, c), tile_map),
                pl.BlockSpec((tile_b, 1), tile_map),
            ],
            out_specs=pl.BlockSpec(
                (1, 1), lambda p, i: (p, 0),
                memory_space=pltpu.MemorySpace.SMEM),
            scratch_shapes=[pltpu.VMEM((tile_b, 1), jnp.float32)],
        ),
        compiler_params=pltpu.CompilerParams(
            dimension_semantics=("parallel", "arbitrary"),
            vmem_limit_bytes=32 * 1024 * 1024),
    )(logits, labels2d)

    # 'mean' reduction of F.cross_entropy
    return jnp.sum(part_sums) / jnp.float32(n)


def _reference(logits, labels):
    """Pure-JAX reference matching torch.nn.functional.cross_entropy(one_hot target)."""
    if logits.ndim > 2:
        c = logits.shape[1]
        perm = (0,) + tuple(range(2, logits.ndim)) + (1,)
        logits = jnp.transpose(logits, perm).reshape(-1, c)
        labels = labels.reshape(-1)
    log_p = jax.nn.log_softmax(logits.astype(jnp.float32), axis=-1)
    picked = jnp.take_along_axis(log_p, labels[:, None].astype(jnp.int32), axis=-1)
    return jnp.mean(-picked)


if __name__ == "__main__":
    key = jax.random.PRNGKey(0)
    k1, k2, k3, k4, k5, k6 = jax.random.split(key, 6)

    # 1) NCHW segmentation-style head: (N=2, C=8, H=16, W=16) -> 512 rows.
    logits_a = jax.random.normal(k1, (2, 8, 16, 16), dtype=jnp.float32)
    labels_a = jax.random.randint(k2, (2, 16, 16), 0, 8, dtype=jnp.int32)
    out_a = jax.block_until_ready(jax.jit(class_loss)(logits_a, labels_a))
    ref_a = _reference(logits_a, labels_a)
    assert jnp.allclose(out_a, ref_a, rtol=1e-5, atol=1e-5), (out_a, ref_a)

    # 2) Ragged, non-aligned 2-D case (N=300, C=13): exercises tiny row-pad +
    #    in-kernel masking and a non-128 class width.
    logits_b = jax.random.normal(k3, (300, 13), dtype=jnp.float32)
    labels_b = jax.random.randint(k4, (300,), 0, 13, dtype=jnp.int32)
    out_b = jax.block_until_ready(jax.jit(class_loss)(logits_b, labels_b))
    ref_b = _reference(logits_b, labels_b)
    assert jnp.allclose(out_b, ref_b, rtol=1e-5, atol=1e-5), (out_b, ref_b)

    # 3) Multi-tile, 2-part parallel split with a ragged tail (N=1200, C=8,
    #    tile_b=256): exercises the clamped index_map + masked overhang.
    logits_c = jax.random.normal(k5, (1200, 8), dtype=jnp.float32)
    labels_c = jax.random.randint(k6, (1200,), 0, 8, dtype=jnp.int32)
    fn_c = jax.jit(functools.partial(class_loss, tile_b=256, num_parts=2))
    out_c = jax.block_until_ready(fn_c(logits_c, labels_c))
    ref_c = _reference(logits_c, labels_c)
    assert jnp.allclose(out_c, ref_c, rtol=1e-5, atol=1e-5), (out_c, ref_c)

    print("KERNEL_OK")
</pallas_src>

<mosaic_0001>
module attributes {stable_mosaic.version = 11 : i64} {
  func.func @_ce_kernel(%arg0: i32, %arg1: i32, %arg2: memref<512x8xf32, #tpu.memory_space<vmem>>, %arg3: memref<512x1xi32, #tpu.memory_space<vmem>>, %arg4: memref<1x1xf32, #tpu.memory_space<smem>>, %arg5: memref<512x1xf32, #tpu.memory_space<vmem>>) attributes {dimension_semantics = [#tpu.dimension_semantics<parallel>, #tpu.dimension_semantics<arbitrary>], iteration_bounds = array<i64: 1, 1>, scalar_prefetch = 0 : i64, scratch_operands = 1 : i64, tpu.core_type = #tpu.core_type<tc>, window_params = [{transform_indices = @transform_0, window_bounds = array<i64: 512, 8>}, {transform_indices = @transform_1, window_bounds = array<i64: 512, 1>}, {transform_indices = @transform_2, window_bounds = array<i64: 1, 1>}]} {
    %c0 = arith.constant 0 : index
    %c0_0 = arith.constant 0 : index
    %0 = vector.load %arg2[%c0, %c0_0] : memref<512x8xf32, #tpu.memory_space<vmem>>, vector<512x8xf32>
    %c0_1 = arith.constant 0 : index
    %c0_2 = arith.constant 0 : index
    %1 = vector.load %arg3[%c0_1, %c0_2] : memref<512x1xi32, #tpu.memory_space<vmem>>, vector<512x1xi32>
    %cst = arith.constant dense<0xFF800000> : vector<512xf32>
    %2 = vector.multi_reduction <maximumf>, %0, %cst [1] : vector<512x8xf32> to vector<512xf32>
    %3 = vector.shape_cast %2 : vector<512xf32> to vector<512x1xf32>
    %4 = vector.broadcast %3 : vector<512x1xf32> to vector<512x8xf32>
    %5 = arith.subf %0, %4 : vector<512x8xf32>
    %6 = math.exp %5 : vector<512x8xf32>
    %cst_3 = arith.constant dense<0.000000e+00> : vector<512xf32>
    %7 = vector.multi_reduction <add>, %6, %cst_3 [1] : vector<512x8xf32> to vector<512xf32>
    %8 = vector.shape_cast %7 : vector<512xf32> to vector<512x1xf32>
    %9 = math.log %8 : vector<512x1xf32>
    %10 = tpu.iota {dimensions = array<i32: 1>} : vector<512x8xi32>
    %11 = vector.broadcast %1 : vector<512x1xi32> to vector<512x8xi32>
    %12 = arith.cmpi eq, %10, %11 : vector<512x8xi32>
    %cst_4 = arith.constant 0.000000e+00 : f32
    %13 = vector.broadcast %cst_4 : f32 to vector<512x8xf32>
    %14 = arith.select %12, %0, %13 : vector<512x8xi1>, vector<512x8xf32>
    %cst_5 = arith.constant dense<0.000000e+00> : vector<512xf32>
    %15 = vector.multi_reduction <add>, %14, %cst_5 [1] : vector<512x8xf32> to vector<512xf32>
    %16 = vector.shape_cast %15 : vector<512xf32> to vector<512x1xf32>
    %17 = arith.addf %3, %9 : vector<512x1xf32>
    %18 = arith.subf %17, %16 : vector<512x1xf32>
    %c0_i32 = arith.constant 0 : i32
    %19 = arith.cmpi eq, %arg1, %c0_i32 : i32
    %20 = arith.extui %19 : i1 to i32
    %c0_i32_6 = arith.constant 0 : i32
    %21 = arith.cmpi ne, %20, %c0_i32_6 : i32
    scf.if %21 {
      %cst_13 = arith.constant 0.000000e+00 : f32
      %28 = vector.broadcast %cst_13 : f32 to vector<512x1xf32>
      %c0_14 = arith.constant 0 : index
      %c0_15 = arith.constant 0 : index
      %29 = vector.load %arg5[%c0_14, %c0_15] : memref<512x1xf32, #tpu.memory_space<vmem>>, vector<512x1xf32>
      tpu.vector_store %arg5[%c0_14, %c0_15], %28 {strides = array<i32>} : memref<512x1xf32, #tpu.memory_space<vmem>>, vector<512x1xf32>,
    } else {
    }
    %c0_7 = arith.constant 0 : index
    %c0_8 = arith.constant 0 : index
    %22 = vector.load %arg5[%c0_7, %c0_8] : memref<512x1xf32, #tpu.memory_space<vmem>>, vector<512x1xf32>
    %23 = arith.addf %22, %18 : vector<512x1xf32>
    %c0_9 = arith.constant 0 : index
    %c0_10 = arith.constant 0 : index
    %24 = vector.load %arg5[%c0_9, %c0_10] : memref<512x1xf32, #tpu.memory_space<vmem>>, vector<512x1xf32>
    tpu.vector_store %arg5[%c0_9, %c0_10], %23 {strides = array<i32>} : memref<512x1xf32, #tpu.memory_space<vmem>>, vector<512x1xf32>,
    %c0_i32_11 = arith.constant 0 : i32
    %25 = arith.cmpi eq, %arg1, %c0_i32_11 : i32
    %26 = arith.extui %25 : i1 to i32
    %c0_i32_12 = arith.constant 0 : i32
    %27 = arith.cmpi ne, %26, %c0_i32_12 : i32
    scf.if %27 {
      %c0_13 = arith.constant 0 : index
      %c0_14 = arith.constant 0 : index
      %28 = vector.load %arg5[%c0_13, %c0_14] : memref<512x1xf32, #tpu.memory_space<vmem>>, vector<512x1xf32>
      %29 = vector.shape_cast %28 : vector<512x1xf32> to vector<1x512x1xf32>
      %cst_15 = arith.constant dense<0.000000e+00> : vector<1xf32>
      %30 = vector.multi_reduction <add>, %29, %cst_15 [1, 2] : vector<1x512x1xf32> to vector<1xf32>
      %31 = vector.shape_cast %30 : vector<1xf32> to vector<1x1x1xf32>
      %32 = vector.extract %31[0, 0, 0] : f32 from vector<1x1x1xf32>
      %c0_16 = arith.constant 0 : index
      %c0_17 = arith.constant 0 : index
      %33 = memref.load %arg4[%c0_16, %c0_17] : memref<1x1xf32, #tpu.memory_space<smem>>
      memref.store %32, %arg4[%c0_16, %c0_17] : memref<1x1xf32, #tpu.memory_space<smem>>
    } else {
    }
    return
  }
  func.func @transform_0(%arg0: i32, %arg1: i32) -> (i32, i32) {
    %c1_i32 = arith.constant 1 : i32
    %0 = arith.muli %arg0, %c1_i32 : i32
    %1 = arith.addi %0, %arg1 : i32
    %c0_i32 = arith.constant 0 : i32
    %2 = arith.minsi %1, %c0_i32 : i32
    %c0_i32_0 = arith.constant 0 : i32
    %c0_i32_1 = arith.constant 0 : i32
    return %2, %c0_i32_0 : i32, i32
  }
  func.func @transform_1(%arg0: i32, %arg1: i32) -> (i32, i32) {
    %c1_i32 = arith.constant 1 : i32
    %0 = arith.muli %arg0, %c1_i32 : i32
    %1 = arith.addi %0, %arg1 : i32
    %c0_i32 = arith.constant 0 : i32
    %2 = arith.minsi %1, %c0_i32 : i32
    %c0_i32_0 = arith.constant 0 : i32
    %c0_i32_1 = arith.constant 0 : i32
    return %2, %c0_i32_0 : i32, i32
  }
  func.func @transform_2(%arg0: i32, %arg1: i32) -> (i32, i32) {
    %c0_i32 = arith.constant 0 : i32
    %c0_i32_0 = arith.constant 0 : i32
    return %arg0, %c0_i32 : i32, i32
  }
}

</mosaic_0001>

<bundles_post_ra>
// kernel: class_loss.1
= control target key start
LH: loop header
LB: loop body
LE: loop exit
PB: predicated region body
PF: predicated region fallthrough
CT: control target
= control target key end

     0   :  { %vm204_vm0 = vcmask 64512   ;;  %s4305_s0 = inlined_call_operand.vmem [shape: f32[512,8], index: 0, kind: input, shape index: {}]   ;;  %s4306_s1 = inlined_call_operand.vmem [shape: s32[512,1], index: 1, kind: input, shape index: {}]   ;;  %s4307_s2 = inlined_call_operand.hbm [shape: f32[1,1], index: 2, kind: output, shape index: {}]  }
   0x1   :  { %v2403_v0 = vld [vmem:[%s4305_s0] sm:$0xff]  ;;  %v2408_v1 = vld [vmem:[%s4305_s0 + $0x10] sm:$0xff]  ;;  %v2413_v2 = vld [vmem:[%s4305_s0 + $0x8] sm:$0xff] }
   0x2   :  { %v205_v3 = vsel %vm204_vm0, %v2403_v0, -inf  ;;  %v211_v4 = vsel %vm204_vm0, %v2408_v1, -inf  ;;  %v2422_v5 = vld [vmem:[%s4305_s0 + $0x18] sm:$0xff]  ;;  %v208_v6 = vsel %vm204_vm0, %v2413_v2, -inf  ;;  %v2431_v8 = vld [vmem:[%s4305_s0 + $0x20] sm:$0xff]  ;;  %v2436_v9 = vld [vmem:[%s4305_s0 + $0x28] sm:$0xff] }
   0x3   :  { %206 = vmax.xlane.f32.xlu0 %v205_v3  ;;  %212 = vmax.xlane.f32.xlu1 %v211_v4  ;;  %v214_v7 = vsel %vm204_vm0, %v2422_v5, -inf  ;;  %v217_v10 = vsel %vm204_vm0, %v2431_v8, -inf  ;;  %v220_v11 = vsel %vm204_vm0, %v2436_v9, -inf  ;;  %v2445_v12 = vld [vmem:[%s4305_s0 + $0x30] sm:$0xff]  ;;  %v2450_v13 = vld [vmem:[%s4305_s0 + $0x38] sm:$0xff]  ;;  %v2459_v16 = vld [vmem:[%s4305_s0 + $0x40] sm:$0xff] }
   0x4   :  { %v223_v14 = vsel %vm204_vm0, %v2445_v12, -inf  ;;  %v226_v15 = vsel %vm204_vm0, %v2450_v13, -inf  ;;  %v2464_v17 = vld [vmem:[%s4305_s0 + $0x48] sm:$0xff]  ;;  %v229_v18 = vsel %vm204_vm0, %v2459_v16, -inf  ;;  %v2473_v20 = vld [vmem:[%s4305_s0 + $0x50] sm:$0xff]  ;;  %v2478_v21 = vld [vmem:[%s4305_s0 + $0x58] sm:$0xff] }
   0x5   :  { %v232_v19 = vsel %vm204_vm0, %v2464_v17, -inf  ;;  %v235_v22 = vsel %vm204_vm0, %v2473_v20, -inf  ;;  %v238_v23 = vsel %vm204_vm0, %v2478_v21, -inf  ;;  %v2487_v24 = vld [vmem:[%s4305_s0 + $0x60] sm:$0xff]  ;;  %v2492_v25 = vld [vmem:[%s4305_s0 + $0x68] sm:$0xff] }
   0x7   :  { %209 = vmax.xlane.f32.xlu0 %v208_v6  ;;  %215 = vmax.xlane.f32.xlu1 %v214_v7 }
   0xb   :  { %218 = vmax.xlane.f32.xlu0 %v217_v10  ;;  %221 = vmax.xlane.f32.xlu1 %v220_v11 }
   0xf   :  { %224 = vmax.xlane.f32.xlu0 %v223_v14  ;;  %227 = vmax.xlane.f32.xlu1 %v226_v15 }
  0x13   :  { %230 = vmax.xlane.f32.xlu0 %v229_v18  ;;  %233 = vmax.xlane.f32.xlu1 %v232_v19 }
  0x14   :  { %7 = vsyncpa [#allocation4], 0  ;;  %v241_v26 = vsel %vm204_vm0, %v2487_v24, -inf  ;;  %v244_v27 = vsel %vm204_vm0, %v2492_v25, -inf  ;;  %v2501_v28 = vld [vmem:[%s4305_s0 + $0x70] sm:$0xff]  ;;  %v2506_v29 = vld [vmem:[%s4305_s0 + $0x78] sm:$0xff] }
  0x15   :  { %v247_v30 = vsel %vm204_vm0, %v2501_v28, -inf  ;;  %v250_v31 = vsel %vm204_vm0, %v2506_v29, -inf  ;;  %v2515_v32 = vld [vmem:[%s4305_s0 + $0x80] sm:$0xff]  ;;  %v2520_v33 = vld [vmem:[%s4305_s0 + $0x88] sm:$0xff]  ;;  %v2529_v36 = vld [vmem:[%s4305_s0 + $0x90] sm:$0xff]  ;;  %vm1555_vm1 = vcmask 7168  }
  0x16   :  { %v253_v34 = vsel %vm204_vm0, %v2515_v32, -inf  ;;  %v256_v35 = vsel %vm204_vm0, %v2520_v33, -inf  ;;  %v2534_v37 = vld [vmem:[%s4305_s0 + $0x98] sm:$0xff]  ;;  %v259_v38 = vsel %vm204_vm0, %v2529_v36, -inf  ;;  %v2543_v40 = vld [vmem:[%s4305_s0 + $0xa0] sm:$0xff]  ;;  %v2548_v41 = vld [vmem:[%s4305_s0 + $0xa8] sm:$0xff] }
  0x17   :  { %236 = vmax.xlane.f32.xlu0 %v235_v22  ;;  %239 = vmax.xlane.f32.xlu1 %v238_v23  ;;  %v262_v39 = vsel %vm204_vm0, %v2534_v37, -inf  ;;  %v265_v42 = vsel %vm204_vm0, %v2543_v40, -inf  ;;  %v268_v43 = vsel %vm204_vm0, %v2548_v41, -inf  ;;  %v2557_v44 = vld [vmem:[%s4305_s0 + $0xb0] sm:$0xff]  ;;  %v2562_v45 = vld [vmem:[%s4305_s0 + $0xb8] sm:$0xff]  ;;  %v2571_v48 = vld [vmem:[%s4305_s0 + $0xc0] sm:$0xff] }
  0x18   :  { %v271_v46 = vsel %vm204_vm0, %v2557_v44, -inf  ;;  %v274_v47 = vsel %vm204_vm0, %v2562_v45, -inf  ;;  %v2576_v49 = vld [vmem:[%s4305_s0 + $0xc8] sm:$0xff]  ;;  %v277_v50 = vsel %vm204_vm0, %v2571_v48, -inf  ;;  %v2585_v52 = vld [vmem:[%s4305_s0 + $0xd0] sm:$0xff]  ;;  %v2590_v53 = vld [vmem:[%s4305_s0 + $0xd8] sm:$0xff] }
  0x19   :  { %v280_v51 = vsel %vm204_vm0, %v2576_v49, -inf  ;;  %v283_v54 = vsel %vm204_vm0, %v2585_v52, -inf  ;;  %v286_v55 = vsel %vm204_vm0, %v2590_v53, -inf  ;;  %v2599_v56 = vld [vmem:[%s4305_s0 + $0xe0] sm:$0xff]  ;;  %v2604_v57 = vld [vmem:[%s4305_s0 + $0xe8] sm:$0xff]  ;;  %v2613_v60 = vld [vmem:[%s4305_s0 + $0xf0] sm:$0xff] }
  0x1a   :  { %v289_v58 = vsel %vm204_vm0, %v2599_v56, -inf  ;;  %v292_v59 = vsel %vm204_vm0, %v2604_v57, -inf  ;;  %v2618_v61 = vld [vmem:[%s4305_s0 + $0xf8] sm:$0xff]  ;;  %v295_v62 = vsel %vm204_vm0, %v2613_v60, -inf  ;;  %v2627_v3 = vld [vmem:[%s4305_s0 + $0x100] sm:$0xff]  ;;  %v2632_v4 = vld [vmem:[%s4305_s0 + $0x108] sm:$0xff] }
  0x1b   :  { %242 = vmax.xlane.f32.xlu0 %v241_v26  ;;  %245 = vmax.xlane.f32.xlu1 %v244_v27  ;;  %v298_v63 = vsel %vm204_vm0, %v2618_v61, -inf  ;;  %v301_v6 = vsel %vm204_vm0, %v2627_v3, -inf  ;;  %v304_v7 = vsel %vm204_vm0, %v2632_v4, -inf  ;;  %v2641_v10 = vld [vmem:[%s4305_s0 + $0x110] sm:$0xff]  ;;  %v2646_v11 = vld [vmem:[%s4305_s0 + $0x118] sm:$0xff]  ;;  %v2655_v18 = vld [vmem:[%s4305_s0 + $0x120] sm:$0xff] }
  0x1c   :  { %v307_v14 = vsel %vm204_vm0, %v2641_v10, -inf  ;;  %v310_v15 = vsel %vm204_vm0, %v2646_v11, -inf  ;;  %v2660_v19 = vld [vmem:[%s4305_s0 + $0x128] sm:$0xff]  ;;  %v313_v22 = vsel %vm204_vm0, %v2655_v18, -inf  ;;  %v2669_v26 = vld [vmem:[%s4305_s0 + $0x130] sm:$0xff]  ;;  %v2674_v27 = vld [vmem:[%s4305_s0 + $0x138] sm:$0xff] }
  0x1d   :  { %v316_v23 = vsel %vm204_vm0, %v2660_v19, -inf  ;;  %s2370_s27 = scalar_lea.hbm %s4307_s2, 16 }
  0x1e   :  { %p2371_p0 = scmp.ne.s32.totalorder %s4307_s2, %s2370_s27  ;;  %p2374_p1 = scmp.lt.u32.totalorder %s2370_s27, %s4307_s2 }
  0x1f   :  { %248 = vmax.xlane.f32.xlu0 %v247_v30  ;;  %251 = vmax.xlane.f32.xlu1 %v250_v31  ;;  %v319_v30 = vsel %vm204_vm0, %v2669_v26, -inf  ;;  %v322_v31 = vsel %vm204_vm0, %v2674_v27, -inf }
  0x20   :  { %p2376_p2 = pnand %p2374_p1, %p2371_p0 }
  0x23   :  { %254 = vmax.xlane.f32.xlu0 %v253_v34  ;;  %257 = vmax.xlane.f32.xlu1 %v256_v35  ;;  %v2683_v34 = vld [vmem:[%s4305_s0 + $0x140] sm:$0xff]  ;;  %v2688_v35 = vld [vmem:[%s4305_s0 + $0x148] sm:$0xff] }
  0x27   :  { %260 = vmax.xlane.f32.xlu0 %v259_v38  ;;  %263 = vmax.xlane.f32.xlu1 %v262_v39  ;;  %v325_v38 = vsel %vm204_vm0, %v2683_v34, -inf  ;;  %v328_v39 = vsel %vm204_vm0, %v2688_v35, -inf }
  0x2b   :  { %266 = vmax.xlane.f32.xlu0 %v265_v42  ;;  %269 = vmax.xlane.f32.xlu1 %v268_v43  ;;  %v2697_v42 = vld [vmem:[%s4305_s0 + $0x150] sm:$0xff]  ;;  %v2702_v43 = vld [vmem:[%s4305_s0 + $0x158] sm:$0xff] }
  0x2f   :  { %272 = vmax.xlane.f32.xlu0 %v271_v46  ;;  %275 = vmax.xlane.f32.xlu1 %v274_v47  ;;  %v331_v46 = vsel %vm204_vm0, %v2697_v42, -inf  ;;  %v334_v47 = vsel %vm204_vm0, %v2702_v43, -inf }
  0x33   :  { %278 = vmax.xlane.f32.xlu0 %v277_v50  ;;  %281 = vmax.xlane.f32.xlu1 %v280_v51  ;;  %v2711_v50 = vld [vmem:[%s4305_s0 + $0x160] sm:$0xff]  ;;  %v2716_v51 = vld [vmem:[%s4305_s0 + $0x168] sm:$0xff] }
  0x37   :  { %284 = vmax.xlane.f32.xlu0 %v283_v54  ;;  %287 = vmax.xlane.f32.xlu1 %v286_v55  ;;  %v337_v54 = vsel %vm204_vm0, %v2711_v50, -inf  ;;  %v340_v55 = vsel %vm204_vm0, %v2716_v51, -inf }
  0x3b   :  { %290 = vmax.xlane.f32.xlu0 %v289_v58  ;;  %293 = vmax.xlane.f32.xlu1 %v292_v59  ;;  %v2725_v58 = vld [vmem:[%s4305_s0 + $0x170] sm:$0xff]  ;;  %v2730_v59 = vld [vmem:[%s4305_s0 + $0x178] sm:$0xff] }
  0x3f   :  { %296 = vmax.xlane.f32.xlu0 %v295_v62  ;;  %299 = vmax.xlane.f32.xlu1 %v298_v63  ;;  %v343_v62 = vsel %vm204_vm0, %v2725_v58, -inf  ;;  %v346_v63 = vsel %vm204_vm0, %v2730_v59, -inf }
  0x43   :  { %302 = vmax.xlane.f32.xlu0 %v301_v6  ;;  %305 = vmax.xlane.f32.xlu1 %v304_v7  ;;  %v2739_v6 = vld [vmem:[%s4305_s0 + $0x180] sm:$0xff]  ;;  %v2744_v7 = vld [vmem:[%s4305_s0 + $0x188] sm:$0xff] }
  0x47   :  { %308 = vmax.xlane.f32.xlu0 %v307_v14  ;;  %311 = vmax.xlane.f32.xlu1 %v310_v15  ;;  %v349_v14 = vsel %vm204_vm0, %v2739_v6, -inf  ;;  %v352_v15 = vsel %vm204_vm0, %v2744_v7, -inf }
  0x4b   :  { %314 = vmax.xlane.f32.xlu0 %v313_v22  ;;  %317 = vmax.xlane.f32.xlu1 %v316_v23  ;;  %v2753_v22 = vld [vmem:[%s4305_s0 + $0x190] sm:$0xff]  ;;  %v2758_v23 = vld [vmem:[%s4305_s0 + $0x198] sm:$0xff] }
  0x4f   :  { %320 = vmax.xlane.f32.xlu0 %v319_v30  ;;  %323 = vmax.xlane.f32.xlu1 %v322_v31  ;;  %v355_v30 = vsel %vm204_vm0, %v2753_v22, -inf  ;;  %v358_v31 = vsel %vm204_vm0, %v2758_v23, -inf }
  0x53   :  { %326 = vmax.xlane.f32.xlu0 %v325_v38  ;;  %329 = vmax.xlane.f32.xlu1 %v328_v39  ;;  %v2767_v38 = vld [vmem:[%s4305_s0 + $0x1a0] sm:$0xff]  ;;  %v2772_v39 = vld [vmem:[%s4305_s0 + $0x1a8] sm:$0xff] }
  0x54   :  { %4368 = vst [vmem:[#allocation6_spill] sm:$0xff] %v2767_v38  ;;  %4369 = vst [vmem:[#allocation7_spill] sm:$0xff] %v2772_v39 }
  0x57   :  { %332 = vmax.xlane.f32.xlu0 %v331_v46  ;;  %335 = vmax.xlane.f32.xlu1 %v334_v47  ;;  %v361_v46 = vsel %vm204_vm0, %v2767_v38, -inf  ;;  %v364_v47 = vsel %vm204_vm0, %v2772_v39, -inf }
  0x5b   :  { %338 = vmax.xlane.f32.xlu0 %v337_v54  ;;  %341 = vmax.xlane.f32.xlu1 %v340_v55  ;;  %v2781_v54 = vld [vmem:[%s4305_s0 + $0x1b0] sm:$0xff]  ;;  %v2786_v55 = vld [vmem:[%s4305_s0 + $0x1b8] sm:$0xff] }
  0x5c   :  { %4370 = vst [vmem:[#allocation8_spill] sm:$0xff] %v2781_v54  ;;  %4371 = vst [vmem:[#allocation9_spill] sm:$0xff] %v2786_v55 }
  0x5f   :  { %344 = vmax.xlane.f32.xlu0 %v343_v62  ;;  %347 = vmax.xlane.f32.xlu1 %v346_v63  ;;  %v367_v62 = vsel %vm204_vm0, %v2781_v54, -inf  ;;  %v370_v63 = vsel %vm204_vm0, %v2786_v55, -inf }
  0x63   :  { %350 = vmax.xlane.f32.xlu0 %v349_v14  ;;  %353 = vmax.xlane.f32.xlu1 %v352_v15  ;;  %v2795_v14 = vld [vmem:[%s4305_s0 + $0x1c0] sm:$0xff]  ;;  %v2800_v15 = vld [vmem:[%s4305_s0 + $0x1c8] sm:$0xff] }
  0x64   :  { %4372 = vst [vmem:[#allocation10_spill] sm:$0xff] %v2795_v14  ;;  %4373 = vst [vmem:[#allocation11_spill] sm:$0xff] %v2800_v15 }
  0x67   :  { %356 = vmax.xlane.f32.xlu0 %v355_v30  ;;  %359 = vmax.xlane.f32.xlu1 %v358_v31  ;;  %v373_v30 = vsel %vm204_vm0, %v2795_v14, -inf  ;;  %v376_v31 = vsel %vm204_vm0, %v2800_v15, -inf  ;;  %v2823_v15 = vld [vmem:[%s4305_s0 + $0x1e0] sm:$0xff]  ;;  %v2828_v14 = vld [vmem:[%s4305_s0 + $0x1e8] sm:$0xff] }
  0x68   :  { %4376 = vst [vmem:[#allocation14_spill] sm:$0xff] %v2823_v15  ;;  %4377 = vst [vmem:[#allocation15_spill] sm:$0xff] %v2828_v14 }
  0x6b   :  { %362 = vmax.xlane.f32.xlu0 %v361_v46  ;;  %365 = vmax.xlane.f32.xlu1 %v364_v47  ;;  %v2809_v46 = vld [vmem:[%s4305_s0 + $0x1d0] sm:$0xff]  ;;  %v2814_v47 = vld [vmem:[%s4305_s0 + $0x1d8] sm:$0xff] }
  0x6c   :  { %4374 = vst [vmem:[#allocation12_spill] sm:$0xff] %v2809_v46  ;;  %4375 = vst [vmem:[#allocation13_spill] sm:$0xff] %v2814_v47 }
  0x6f   :  { %368 = vmax.xlane.f32.xlu0 %v367_v62  ;;  %371 = vmax.xlane.f32.xlu1 %v370_v63  ;;  %v379_v62 = vsel %vm204_vm0, %v2809_v46, -inf  ;;  %v382_v63 = vsel %vm204_vm0, %v2814_v47, -inf  ;;  %v2837_v47 = vld [vmem:[%s4305_s0 + $0x1f0] sm:$0xff]  ;;  %v2842_v46 = vld [vmem:[%s4305_s0 + $0x1f8] sm:$0xff] }
  0x70   :  { %4378 = vst [vmem:[#allocation16_spill] sm:$0xff] %v2837_v47  ;;  %4379 = vst [vmem:[#allocation17_spill] sm:$0xff] %v2842_v46 }
  0x73   :  { %374 = vmax.xlane.f32.xlu0 %v373_v30  ;;  %377 = vmax.xlane.f32.xlu1 %v376_v31  ;;  %v385_v30 = vsel %vm204_vm0, %v2823_v15, -inf  ;;  %v388_v31 = vsel %vm204_vm0, %v2828_v14, -inf }
  0x77   :  { %380 = vmax.xlane.f32.xlu0 %v379_v62  ;;  %383 = vmax.xlane.f32.xlu1 %v382_v63  ;;  %v391_v62 = vsel %vm204_vm0, %v2837_v47, -inf  ;;  %v394_v63 = vsel %vm204_vm0, %v2842_v46, -inf }
  0x7b   :  { %386 = vmax.xlane.f32.xlu0 %v385_v30  ;;  %389 = vmax.xlane.f32.xlu1 %v388_v31 }
  0x7f   :  { %392 = vmax.xlane.f32.xlu0 %v391_v62  ;;  %395 = vmax.xlane.f32.xlu1 %v394_v63 }
  0x90   :  { %v2848_v14 = vpop.xlane.xlu0 %206  ;;  %v2850_v15 = vpop.xlane.xlu1 %212 }
  0x91   :  { %4380 = vst [vmem:[#allocation18_spill] sm:$0xff] %v2848_v14  ;;  %v397_v55 = vsub.f32 %v2403_v0, %v2848_v14  ;;  %v399_v54 = vsub.f32 %v2408_v1, %v2850_v15 }
  0x93   :  { %v461_v30 = vmul.f32 1.442695, %v397_v55  ;;  %v465_v31 = vmul.f32 1.442695, %v399_v54 }
  0x94   :  { %v2856_v39 = vpop.xlane.xlu0 %209  ;;  %v2858_v47 = vpop.xlane.xlu1 %215 }
  0x95   :  { %2050 = vpow2.f32 %v461_v30  ;;  %v398_v62 = vsub.f32 %v2413_v2, %v2856_v39  ;;  %v400_v63 = vsub.f32 %v2422_v5, %v2858_v47 }
  0x96   :  { %2052 = vpow2.f32 %v465_v31 }
  0x97   :  { %v463_v46 = vmul.f32 1.442695, %v398_v62  ;;  %v467_v38 = vmul.f32 1.442695, %v400_v63 }
  0x98   :  { %v2864_v0 = vpop.xlane.xlu0 %218  ;;  %v2866_v14 = vpop.xlane.xlu1 %221 }
  0x99   :  { %4381 = vst [vmem:[#allocation19_spill] sm:$0xff] %v2864_v0  ;;  %2054 = vpow2.f32 %v463_v46  ;;  %v401_v1 = vsub.f32 %v2431_v8, %v2864_v0  ;;  %v402_v54 = vsub.f32 %v2436_v9, %v2866_v14 }
  0x9a   :  { %2056 = vpow2.f32 %v467_v38 }
  0x9b   :  { %v469_v55 = vmul.f32 1.442695, %v401_v1  ;;  %v471_v2 = vmul.f32 1.442695, %v402_v54 }
  0x9c   :  { %v2872_v30 = vpop.xlane.xlu0 %224  ;;  %v2874_v5 = vpop.xlane.xlu1 %227 }
  0x9d   :  { %4382 = vst [vmem:[#allocation20_spill] sm:$0xff] %v2872_v30  ;;  %4383 = vst [vmem:[#allocation21_spill] sm:$0xff] %v2874_v5  ;;  %2058 = vpow2.f32 %v469_v55  ;;  %v403_v31 = vsub.f32 %v2445_v12, %v2872_v30  ;;  %v404_v46 = vsub.f32 %v2450_v13, %v2874_v5 }
  0x9e   :  { %2060 = vpow2.f32 %v471_v2 }
  0x9f   :  { %v2051_v62 = vpop.eup %2050  ;;  %v473_v8 = vmul.f32 1.442695, %v403_v31  ;;  %v475_v63 = vmul.f32 1.442695, %v404_v46 }
  0xa0   :  { %v2053_v0 = vpop.eup %2052  ;;  %v2880_v9 = vpop.xlane.xlu0 %230  ;;  %v589_v38 = vsel %vm204_vm0, %v2051_v62, 0.0 }
  0xa1   :  { %v2883_v1 = vpop.xlane.xlu1 %233  ;;  %2062 = vpow2.f32 %v473_v8  ;;  %v405_v54 = vsub.f32 %v2459_v16, %v2880_v9  ;;  %590 = vadd.xlane.f32.xlu0 %v589_v38  ;;  %v595_v13 = vsel %vm204_vm0, %v2053_v0, 0.0 }
  0xa2   :  { %v406_v12 = vsub.f32 %v2464_v17, %v2883_v1  ;;  %2064 = vpow2.f32 %v475_v63 }
  0xa3   :  { %v2055_v55 = vpop.eup %2054  ;;  %v477_v2 = vmul.f32 1.442695, %v405_v54 }
  0xa4   :  { %v479_v31 = vmul.f32 1.442695, %v406_v12  ;;  %v2057_v46 = vpop.eup %2056  ;;  %v2890_v5 = vpop.xlane.xlu0 %236  ;;  %v592_v62 = vsel %vm204_vm0, %v2055_v55, 0.0 }
  0xa5   :  { %v2893_v30 = vpop.xlane.xlu1 %239  ;;  %2066 = vpow2.f32 %v477_v2  ;;  %v407_v16 = vsub.f32 %v2473_v20, %v2890_v5  ;;  %596 = vadd.xlane.f32.xlu0 %v595_v13  ;;  %593 = vadd.xlane.f32.xlu1 %v592_v62  ;;  %v598_v0 = vsel %vm204_vm0, %v2057_v46, 0.0 }
  0xa6   :  { %v408_v17 = vsub.f32 %v2478_v21, %v2893_v30  ;;  %2068 = vpow2.f32 %v479_v31 }
  0xa7   :  { %v2059_v8 = vpop.eup %2058  ;;  %v481_v63 = vmul.f32 1.442695, %v407_v16 }
  0xa8   :  { %v483_v38 = vmul.f32 1.442695, %v408_v17  ;;  %v2061_v54 = vpop.eup %2060  ;;  %v2900_v12 = vpop.xlane.xlu0 %242  ;;  %v601_v55 = vsel %vm204_vm0, %v2059_v8, 0.0 }
  0xa9   :  { %v2903_v2 = vpop.xlane.xlu1 %245  ;;  %2070 = vpow2.f32 %v481_v63  ;;  %v409_v20 = vsub.f32 %v2487_v24, %v2900_v12  ;;  %599 = vadd.xlane.f32.xlu1 %v598_v0  ;;  %602 = vadd.xlane.f32.xlu0 %v601_v55  ;;  %v604_v13 = vsel %vm204_vm0, %v2061_v54, 0.0 }
  0xaa   :  { %v410_v21 = vsub.f32 %v2492_v25, %v2903_v2  ;;  %2072 = vpow2.f32 %v483_v38 }
  0xab   :  { %v2063_v31 = vpop.eup %2062  ;;  %v485_v46 = vmul.f32 1.442695, %v409_v20 }
  0xac   :  { %v487_v62 = vmul.f32 1.442695, %v410_v21  ;;  %v2065_v16 = vpop.eup %2064  ;;  %v2910_v17 = vpop.xlane.xlu0 %248  ;;  %v607_v8 = vsel %vm204_vm0, %v2063_v31, 0.0 }
  0xad   :  { %v2913_v63 = vpop.xlane.xlu1 %251  ;;  %2074 = vpow2.f32 %v485_v46  ;;  %v411_v24 = vsub.f32 %v2501_v28, %v2910_v17  ;;  %605 = vadd.xlane.f32.xlu1 %v604_v13  ;;  %608 = vadd.xlane.f32.xlu0 %v607_v8  ;;  %v610_v0 = vsel %vm204_vm0, %v2065_v16, 0.0 }
  0xae   :  { %v412_v25 = vsub.f32 %v2506_v29, %v2913_v63  ;;  %2076 = vpow2.f32 %v487_v62  ;;  %v2382_v62 = vmov 0  }
  0xaf   :  { %v2067_v38 = vpop.eup %2066  ;;  %v489_v54 = vmul.f32 1.442695, %v411_v24  ;;  %2049 = vset.pattern.permute.xlu1 %v2382_v62  ;;  %2048 = vset.pattern.permute.xlu0 %v2382_v62 }
  0xb0   :  { %v491_v55 = vmul.f32 1.442695, %v412_v25  ;;  %v2069_v20 = vpop.eup %2068  ;;  %v2920_v21 = vpop.xlane.xlu0 %254  ;;  %v613_v31 = vsel %vm204_vm0, %v2067_v38, 0.0 }
  0xb1   :  { %v2923_v46 = vpop.xlane.xlu1 %257  ;;  %2078 = vpow2.f32 %v489_v54  ;;  %v413_v28 = vsub.f32 %v2515_v32, %v2920_v21  ;;  %611 = vadd.xlane.f32.xlu1 %v610_v0  ;;  %614 = vadd.xlane.f32.xlu0 %v613_v31  ;;  %v616_v13 = vsel %vm204_vm0, %v2069_v20, 0.0 }
  0xb2   :  { %v414_v29 = vsub.f32 %v2520_v33, %v2923_v46  ;;  %2080 = vpow2.f32 %v491_v55 }
  0xb3   :  { %v2071_v16 = vpop.eup %2070  ;;  %v493_v8 = vmul.f32 1.442695, %v413_v28 }
  0xb4   :  { %v495_v24 = vmul.f32 1.442695, %v414_v29  ;;  %v2073_v25 = vpop.eup %2072  ;;  %v2930_v38 = vpop.xlane.xlu0 %260  ;;  %v619_v54 = vsel %vm204_vm0, %v2071_v16, 0.0 }
  0xb5   :  { %v2933_v32 = vpop.xlane.xlu1 %263  ;;  %2082 = vpow2.f32 %v493_v8  ;;  %v415_v33 = vsub.f32 %v2529_v36, %v2930_v38  ;;  %617 = vadd.xlane.f32.xlu1 %v616_v13  ;;  %620 = vadd.xlane.f32.xlu0 %v619_v54  ;;  %v622_v55 = vsel %vm204_vm0, %v2073_v25, 0.0 }
  0xb6   :  { %v416_v0 = vsub.f32 %v2534_v37, %v2933_v32  ;;  %2084 = vpow2.f32 %v495_v24 }
  0xb7   :  { %v2075_v20 = vpop.eup %2074  ;;  %v497_v31 = vmul.f32 1.442695, %v415_v33 }
  0xb8   :  { %v499_v28 = vmul.f32 1.442695, %v416_v0  ;;  %v2077_v29 = vpop.eup %2076  ;;  %v2940_v62 = vpop.xlane.xlu0 %266  ;;  %v625_v16 = vsel %vm204_vm0, %v2075_v20, 0.0 }
  0xb9   :  { %4384 = vst [vmem:[#allocation22_spill] sm:$0xff] %v2940_v62  ;;  %v2943_v8 = vpop.xlane.xlu1 %269  ;;  %2086 = vpow2.f32 %v497_v31  ;;  %v417_v36 = vsub.f32 %v2543_v40, %v2940_v62  ;;  %623 = vadd.xlane.f32.xlu1 %v622_v55  ;;  %626 = vadd.xlane.f32.xlu0 %v625_v16  ;;  %v628_v13 = vsel %vm204_vm0, %v2077_v29, 0.0 }
  0xba   :  { %4385 = vst [vmem:[#allocation23_spill] sm:$0xff] %v2943_v8  ;;  %v418_v37 = vsub.f32 %v2548_v41, %v2943_v8  ;;  %2088 = vpow2.f32 %v499_v28 }
  0xbb   :  { %v2079_v24 = vpop.eup %2078  ;;  %v501_v25 = vmul.f32 1.442695, %v417_v36 }
  0xbc   :  { %v503_v54 = vmul.f32 1.442695, %v418_v37  ;;  %v2081_v33 = vpop.eup %2080  ;;  %v2950_v0 = vpop.xlane.xlu0 %272  ;;  %v631_v20 = vsel %vm204_vm0, %v2079_v24, 0.0 }
  0xbd   :  { %4386 = vst [vmem:[#allocation24_spill] sm:$0xff] %v2950_v0  ;;  %v2953_v31 = vpop.xlane.xlu1 %275  ;;  %2090 = vpow2.f32 %v501_v25  ;;  %v419_v40 = vsub.f32 %v2557_v44, %v2950_v0  ;;  %629 = vadd.xlane.f32.xlu1 %v628_v13  ;;  %632 = vadd.xlane.f32.xlu0 %v631_v20  ;;  %v634_v55 = vsel %vm204_vm0, %v2081_v33, 0.0 }
  0xbe   :  { %4387 = vst [vmem:[#allocation25_spill] sm:$0xff] %v2953_v31  ;;  %v420_v41 = vsub.f32 %v2562_v45, %v2953_v31  ;;  %2092 = vpow2.f32 %v503_v54 }
  0xbf   :  { %v2083_v28 = vpop.eup %2082  ;;  %v505_v29 = vmul.f32 1.442695, %v419_v40 }
  0xc0   :  { %v507_v16 = vmul.f32 1.442695, %v420_v41  ;;  %v2085_v36 = vpop.eup %2084  ;;  %v2960_v37 = vpop.xlane.xlu0 %278  ;;  %v637_v24 = vsel %vm204_vm0, %v2083_v28, 0.0 }
  0xc1   :  { %4388 = vst [vmem:[#allocation26_spill] sm:$0xff] %v2960_v37  ;;  %v2963_v25 = vpop.xlane.xlu1 %281  ;;  %2094 = vpow2.f32 %v505_v29  ;;  %v421_v44 = vsub.f32 %v2571_v48, %v2960_v37  ;;  %635 = vadd.xlane.f32.xlu1 %v634_v55  ;;  %638 = vadd.xlane.f32.xlu0 %v637_v24  ;;  %v640_v13 = vsel %vm204_vm0, %v2085_v36, 0.0 }
  0xc2   :  { %4389 = vst [vmem:[#allocation27_spill] sm:$0xff] %v2963_v25  ;;  %v422_v45 = vsub.f32 %v2576_v49, %v2963_v25  ;;  %2096 = vpow2.f32 %v507_v16 }
  0xc3   :  { %v2087_v54 = vpop.eup %2086  ;;  %v509_v33 = vmul.f32 1.442695, %v421_v44 }
  0xc4   :  { %v511_v20 = vmul.f32 1.442695, %v422_v45  ;;  %v2089_v40 = vpop.eup %2088  ;;  %v2970_v41 = vpop.xlane.xlu0 %284  ;;  %v643_v28 = vsel %vm204_vm0, %v2087_v54, 0.0 }
  0xc5   :  { %4390 = vst [vmem:[#allocation28_spill] sm:$0xff] %v2970_v41  ;;  %v2973_v29 = vpop.xlane.xlu1 %287  ;;  %2098 = vpow2.f32 %v509_v33  ;;  %v423_v48 = vsub.f32 %v2585_v52, %v2970_v41  ;;  %641 = vadd.xlane.f32.xlu1 %v640_v13  ;;  %644 = vadd.xlane.f32.xlu0 %v643_v28  ;;  %v646_v55 = vsel %vm204_vm0, %v2089_v40, 0.0 }
  0xc6   :  { %4391 = vst [vmem:[#allocation29_spill] sm:$0xff] %v2973_v29  ;;  %v424_v49 = vsub.f32 %v2590_v53, %v2973_v29  ;;  %2100 = vpow2.f32 %v511_v20 }
  0xc7   :  { %v2091_v16 = vpop.eup %2090  ;;  %v513_v36 = vmul.f32 1.442695, %v423_v48 }
  0xc8   :  { %v515_v24 = vmul.f32 1.442695, %v424_v49  ;;  %v2093_v44 = vpop.eup %2092  ;;  %v2980_v45 = vpop.xlane.xlu0 %290  ;;  %v649_v54 = vsel %vm204_vm0, %v2091_v16, 0.0 }
  0xc9   :  { %4392 = vst [vmem:[#allocation30_spill] sm:$0xff] %v2980_v45  ;;  %v2983_v33 = vpop.xlane.xlu1 %293  ;;  %2102 = vpow2.f32 %v513_v36  ;;  %v425_v52 = vsub.f32 %v2599_v56, %v2980_v45  ;;  %647 = vadd.xlane.f32.xlu1 %v646_v55  ;;  %650 = vadd.xlane.f32.xlu0 %v649_v54  ;;  %v652_v13 = vsel %vm204_vm0, %v2093_v44, 0.0 }
  0xca   :  { %4393 = vst [vmem:[#allocation31_spill] sm:$0xff] %v2983_v33  ;;  %v426_v53 = vsub.f32 %v2604_v57, %v2983_v33  ;;  %2104 = vpow2.f32 %v515_v24 }
  0xcb   :  { %v2095_v20 = vpop.eup %2094  ;;  %v517_v40 = vmul.f32 1.442695, %v425_v52 }
  0xcc   :  { %v519_v28 = vmul.f32 1.442695, %v426_v53  ;;  %v2097_v48 = vpop.eup %2096  ;;  %v2990_v49 = vpop.xlane.xlu0 %296  ;;  %v655_v16 = vsel %vm204_vm0, %v2095_v20, 0.0 }
  0xcd   :  { %4394 = vst [vmem:[#allocation32_spill] sm:$0xff] %v2990_v49  ;;  %v2993_v36 = vpop.xlane.xlu1 %299  ;;  %2106 = vpow2.f32 %v517_v40  ;;  %v427_v56 = vsub.f32 %v2613_v60, %v2990_v49  ;;  %653 = vadd.xlane.f32.xlu1 %v652_v13  ;;  %656 = vadd.xlane.f32.xlu0 %v655_v16  ;;  %v658_v55 = vsel %vm204_vm0, %v2097_v48, 0.0 }
  0xce   :  { %4395 = vst [vmem:[#allocation33_spill] sm:$0xff] %v2993_v36  ;;  %v428_v57 = vsub.f32 %v2618_v61, %v2993_v36  ;;  %2108 = vpow2.f32 %v519_v28 }
  0xcf   :  { %v2099_v24 = vpop.eup %2098  ;;  %v521_v44 = vmul.f32 1.442695, %v427_v56 }
  0xd0   :  { %v523_v54 = vmul.f32 1.442695, %v428_v57  ;;  %v2101_v52 = vpop.eup %2100  ;;  %v3000_v53 = vpop.xlane.xlu0 %302  ;;  %v661_v20 = vsel %vm204_vm0, %v2099_v24, 0.0 }
  0xd1   :  { %4396 = vst [vmem:[#allocation34_spill] sm:$0xff] %v3000_v53  ;;  %v3003_v40 = vpop.xlane.xlu1 %305  ;;  %2110 = vpow2.f32 %v521_v44  ;;  %v429_v60 = vsub.f32 %v2627_v3, %v3000_v53  ;;  %659 = vadd.xlane.f32.xlu1 %v658_v55  ;;  %662 = vadd.xlane.f32.xlu0 %v661_v20  ;;  %v664_v13 = vsel %vm204_vm0, %v2101_v52, 0.0 }
  0xd2   :  { %4397 = vst [vmem:[#allocation35_spill] sm:$0xff] %v3003_v40  ;;  %v430_v61 = vsub.f32 %v2632_v4, %v3003_v40  ;;  %2112 = vpow2.f32 %v523_v54 }
  0xd3   :  { %v2103_v28 = vpop.eup %2102  ;;  %v525_v48 = vmul.f32 1.442695, %v429_v60 }
  0xd4   :  { %v527_v16 = vmul.f32 1.442695, %v430_v61  ;;  %v2105_v56 = vpop.eup %2104  ;;  %v3010_v57 = vpop.xlane.xlu0 %308  ;;  %v667_v24 = vsel %vm204_vm0, %v2103_v28, 0.0 }
  0xd5   :  { %4398 = vst [vmem:[#allocation36_spill] sm:$0xff] %v3010_v57  ;;  %v3013_v44 = vpop.xlane.xlu1 %311  ;;  %2114 = vpow2.f32 %v525_v48  ;;  %v431_v3 = vsub.f32 %v2641_v10, %v3010_v57  ;;  %665 = vadd.xlane.f32.xlu1 %v664_v13  ;;  %668 = vadd.xlane.f32.xlu0 %v667_v24  ;;  %v670_v55 = vsel %vm204_vm0, %v2105_v56, 0.0 }
  0xd6   :  { %4399 = vst [vmem:[#allocation37_spill] sm:$0xff] %v3013_v44  ;;  %v432_v4 = vsub.f32 %v2646_v11, %v3013_v44  ;;  %2116 = vpow2.f32 %v527_v16 }
  0xd7   :  { %v2107_v54 = vpop.eup %2106  ;;  %v529_v52 = vmul.f32 1.442695, %v431_v3 }
  0xd8   :  { %v531_v20 = vmul.f32 1.442695, %v432_v4  ;;  %v2109_v60 = vpop.eup %2108  ;;  %v3020_v61 = vpop.xlane.xlu0 %314  ;;  %v673_v28 = vsel %vm204_vm0, %v2107_v54, 0.0 }
  0xd9   :  { %4400 = vst [vmem:[#allocation38_spill] sm:$0xff] %v3020_v61  ;;  %v3023_v48 = vpop.xlane.xlu1 %317  ;;  %2118 = vpow2.f32 %v529_v52  ;;  %v433_v10 = vsub.f32 %v2655_v18, %v3020_v61  ;;  %671 = vadd.xlane.f32.xlu1 %v670_v55  ;;  %674 = vadd.xlane.f32.xlu0 %v673_v28  ;;  %v676_v13 = vsel %vm204_vm0, %v2109_v60, 0.0 }
  0xda   :  { %4401 = vst [vmem:[#allocation39_spill] sm:$0xff] %v3023_v48  ;;  %v434_v11 = vsub.f32 %v2660_v19, %v3023_v48  ;;  %2120 = vpow2.f32 %v531_v20 }
  0xdb   :  { %v2111_v16 = vpop.eup %2110  ;;  %v533_v56 = vmul.f32 1.442695, %v433_v10 }
  0xdc   :  { %v535_v24 = vmul.f32 1.442695, %v434_v11  ;;  %v2113_v3 = vpop.eup %2112  ;;  %v3030_v4 = vpop.xlane.xlu0 %320  ;;  %v679_v54 = vsel %vm204_vm0, %v2111_v16, 0.0 }
  0xdd   :  { %4402 = vst [vmem:[#allocation40_spill] sm:$0xff] %v3030_v4  ;;  %v3033_v52 = vpop.xlane.xlu1 %323  ;;  %2122 = vpow2.f32 %v533_v56  ;;  %v435_v18 = vsub.f32 %v2669_v26, %v3030_v4  ;;  %677 = vadd.xlane.f32.xlu1 %v676_v13  ;;  %680 = vadd.xlane.f32.xlu0 %v679_v54  ;;  %v682_v55 = vsel %vm204_vm0, %v2113_v3, 0.0 }
  0xde   :  { %4403 = vst [vmem:[#allocation41_spill] sm:$0xff] %v3033_v52  ;;  %v436_v19 = vsub.f32 %v2674_v27, %v3033_v52  ;;  %2124 = vpow2.f32 %v535_v24 }
  0xdf   :  { %v2115_v20 = vpop.eup %2114  ;;  %v537_v60 = vmul.f32 1.442695, %v435_v18 }
  0xe0   :  { %v539_v28 = vmul.f32 1.442695, %v436_v19  ;;  %v2117_v10 = vpop.eup %2116  ;;  %v3040_v11 = vpop.xlane.xlu0 %326  ;;  %v685_v16 = vsel %vm204_vm0, %v2115_v20, 0.0 }
  0xe1   :  { %4404 = vst [vmem:[#allocation42_spill] sm:$0xff] %v3040_v11  ;;  %v3043_v56 = vpop.xlane.xlu1 %329  ;;  %2126 = vpow2.f32 %v537_v60  ;;  %v437_v26 = vsub.f32 %v2683_v34, %v3040_v11  ;;  %683 = vadd.xlane.f32.xlu1 %v682_v55  ;;  %686 = vadd.xlane.f32.xlu0 %v685_v16  ;;  %v688_v13 = vsel %vm204_vm0, %v2117_v10, 0.0 }
  0xe2   :  { %4405 = vst [vmem:[#allocation43_spill] sm:$0xff] %v3043_v56  ;;  %v438_v27 = vsub.f32 %v2688_v35, %v3043_v56  ;;  %2128 = vpow2.f32 %v539_v28 }
  0xe3   :  { %v2119_v24 = vpop.eup %2118  ;;  %v541_v3 = vmul.f32 1.442695, %v437_v26 }
  0xe4   :  { %v543_v54 = vmul.f32 1.442695, %v438_v27  ;;  %v2121_v18 = vpop.eup %2120  ;;  %v3050_v19 = vpop.xlane.xlu0 %332  ;;  %v691_v20 = vsel %vm204_vm0, %v2119_v24, 0.0 }
  0xe5   :  { %4406 = vst [vmem:[#allocation44_spill] sm:$0xff] %v3050_v19  ;;  %v3053_v60 = vpop.xlane.xlu1 %335  ;;  %2130 = vpow2.f32 %v541_v3  ;;  %v439_v34 = vsub.f32 %v2697_v42, %v3050_v19  ;;  %689 = vadd.xlane.f32.xlu1 %v688_v13  ;;  %692 = vadd.xlane.f32.xlu0 %v691_v20  ;;  %v694_v55 = vsel %vm204_vm0, %v2121_v18, 0.0 }
  0xe6   :  { %4407 = vst [vmem:[#allocation45_spill] sm:$0xff] %v3053_v60  ;;  %v440_v35 = vsub.f32 %v2702_v43, %v3053_v60  ;;  %2132 = vpow2.f32 %v543_v54 }
  0xe7   :  { %v2123_v28 = vpop.eup %2122  ;;  %v545_v10 = vmul.f32 1.442695, %v439_v34 }
  0xe8   :  { %v547_v16 = vmul.f32 1.442695, %v440_v35  ;;  %v2125_v26 = vpop.eup %2124  ;;  %v3060_v27 = vpop.xlane.xlu0 %338  ;;  %v697_v24 = vsel %vm204_vm0, %v2123_v28, 0.0 }
  0xe9   :  { %4408 = vst [vmem:[#allocation46_spill] sm:$0xff] %v3060_v27  ;;  %v3063_v3 = vpop.xlane.xlu1 %341  ;;  %2134 = vpow2.f32 %v545_v10  ;;  %v441_v42 = vsub.f32 %v2711_v50, %v3060_v27  ;;  %695 = vadd.xlane.f32.xlu1 %v694_v55  ;;  %698 = vadd.xlane.f32.xlu0 %v697_v24  ;;  %v700_v13 = vsel %vm204_vm0, %v2125_v26, 0.0 }
  0xea   :  { %4409 = vst [vmem:[#allocation47_spill] sm:$0xff] %v3063_v3  ;;  %v442_v43 = vsub.f32 %v2716_v51, %v3063_v3  ;;  %2136 = vpow2.f32 %v547_v16 }
  0xeb   :  { %v2127_v54 = vpop.eup %2126  ;;  %v549_v18 = vmul.f32 1.442695, %v441_v42 }
  0xec   :  { %v551_v20 = vmul.f32 1.442695, %v442_v43  ;;  %v2129_v34 = vpop.eup %2128  ;;  %v3070_v35 = vpop.xlane.xlu0 %344  ;;  %v703_v28 = vsel %vm204_vm0, %v2127_v54, 0.0 }
  0xed   :  { %4410 = vst [vmem:[#allocation48_spill] sm:$0xff] %v3070_v35  ;;  %v3073_v10 = vpop.xlane.xlu1 %347  ;;  %2138 = vpow2.f32 %v549_v18  ;;  %v443_v50 = vsub.f32 %v2725_v58, %v3070_v35  ;;  %701 = vadd.xlane.f32.xlu1 %v700_v13  ;;  %704 = vadd.xlane.f32.xlu0 %v703_v28  ;;  %v706_v55 = vsel %vm204_vm0, %v2129_v34, 0.0 }
  0xee   :  { %4411 = vst [vmem:[#allocation49_spill] sm:$0xff] %v3073_v10  ;;  %v444_v51 = vsub.f32 %v2730_v59, %v3073_v10  ;;  %2140 = vpow2.f32 %v551_v20 }
  0xef   :  { %v2131_v16 = vpop.eup %2130  ;;  %v553_v26 = vmul.f32 1.442695, %v443_v50 }
  0xf0   :  { %v555_v24 = vmul.f32 1.442695, %v444_v51  ;;  %v2133_v42 = vpop.eup %2132  ;;  %v3080_v43 = vpop.xlane.xlu0 %350  ;;  %v709_v54 = vsel %vm204_vm0, %v2131_v16, 0.0 }
  0xf1   :  { %4412 = vst [vmem:[#allocation50_spill] sm:$0xff] %v3080_v43  ;;  %v3083_v18 = vpop.xlane.xlu1 %353  ;;  %2142 = vpow2.f32 %v553_v26  ;;  %v445_v58 = vsub.f32 %v2739_v6, %v3080_v43  ;;  %707 = vadd.xlane.f32.xlu1 %v706_v55  ;;  %710 = vadd.xlane.f32.xlu0 %v709_v54  ;;  %v712_v13 = vsel %vm204_vm0, %v2133_v42, 0.0 }
  0xf2   :  { %4413 = vst [vmem:[#allocation51_spill] sm:$0xff] %v3083_v18  ;;  %v446_v59 = vsub.f32 %v2744_v7, %v3083_v18  ;;  %2144 = vpow2.f32 %v555_v24 }
  0xf3   :  { %v2135_v20 = vpop.eup %2134  ;;  %v557_v34 = vmul.f32 1.442695, %v445_v58 }
  0xf4   :  { %v559_v28 = vmul.f32 1.442695, %v446_v59  ;;  %v2137_v50 = vpop.eup %2136  ;;  %v3090_v51 = vpop.xlane.xlu0 %356  ;;  %v715_v16 = vsel %vm204_vm0, %v2135_v20, 0.0 }
  0xf5   :  { %4414 = vst [vmem:[#allocation52_spill] sm:$0xff] %v3090_v51  ;;  %v3093_v26 = vpop.xlane.xlu1 %359  ;;  %2146 = vpow2.f32 %v557_v34  ;;  %v447_v6 = vsub.f32 %v2753_v22, %v3090_v51  ;;  %713 = vadd.xlane.f32.xlu1 %v712_v13  ;;  %716 = vadd.xlane.f32.xlu0 %v715_v16  ;;  %v718_v55 = vsel %vm204_vm0, %v2137_v50, 0.0  ;;  %v4418_v22 = vld [vmem:[#allocation6_spill] sm:$0xff] }
  0xf6   :  { %4415 = vst [vmem:[#allocation53_spill] sm:$0xff] %v3093_v26  ;;  %v448_v7 = vsub.f32 %v2758_v23, %v3093_v26  ;;  %2148 = vpow2.f32 %v559_v28  ;;  %v4419_v23 = vld [vmem:[#allocation7_spill] sm:$0xff] }
  0xf7   :  { %v2139_v24 = vpop.eup %2138  ;;  %v561_v42 = vmul.f32 1.442695, %v447_v6 }
  0xf8   :  { %v563_v54 = vmul.f32 1.442695, %v448_v7  ;;  %v2141_v58 = vpop.eup %2140  ;;  %v3100_v59 = vpop.xlane.xlu0 %362  ;;  %v721_v20 = vsel %vm204_vm0, %v2139_v24, 0.0 }
  0xf9   :  { %4416 = vst [vmem:[#allocation54_spill] sm:$0xff] %v3100_v59  ;;  %v3103_v34 = vpop.xlane.xlu1 %365  ;;  %2150 = vpow2.f32 %v561_v42  ;;  %v449_v13 = vsub.f32 %v4418_v22, %v3100_v59  ;;  %719 = vadd.xlane.f32.xlu1 %v718_v55  ;;  %722 = vadd.xlane.f32.xlu0 %v721_v20  ;;  %v724_v50 = vsel %vm204_vm0, %v2141_v58, 0.0  ;;  %v4422_v55 = vld [vmem:[#allocation8_spill] sm:$0xff] }
  0xfa   :  { %4417 = vst [vmem:[#allocation55_spill] sm:$0xff] %v3103_v34  ;;  %v450_v28 = vsub.f32 %v4419_v23, %v3103_v34  ;;  %2152 = vpow2.f32 %v563_v54  ;;  %v4423_v54 = vld [vmem:[#allocation9_spill] sm:$0xff] }
  0xfb   :  { %v2143_v16 = vpop.eup %2142  ;;  %v565_v6 = vmul.f32 1.442695, %v449_v13 }
  0xfc   :  { %v567_v7 = vmul.f32 1.442695, %v450_v28  ;;  %v2145_v51 = vpop.eup %2144  ;;  %v3110_v43 = vpop.xlane.xlu0 %368  ;;  %v727_v24 = vsel %vm204_vm0, %v2143_v16, 0.0 }
  0xfd   :  { %4420 = vst [vmem:[#allocation6_spill] sm:$0xff] %v3110_v43  ;;  %v3113_v42 = vpop.xlane.xlu1 %371  ;;  %2154 = vpow2.f32 %v565_v6  ;;  %v451_v20 = vsub.f32 %v4422_v55, %v3110_v43  ;;  %725 = vadd.xlane.f32.xlu1 %v724_v50  ;;  %728 = vadd.xlane.f32.xlu0 %v727_v24  ;;  %v730_v58 = vsel %vm204_vm0, %v2145_v51, 0.0  ;;  %v4426_v50 = vld [vmem:[#allocation10_spill] sm:$0xff] }
  0xfe   :  { %4421 = vst [vmem:[#allocation7_spill] sm:$0xff] %v3113_v42  ;;  %v452_v22 = vsub.f32 %v4423_v54, %v3113_v42  ;;  %2156 = vpow2.f32 %v567_v7  ;;  %v4427_v7 = vld [vmem:[#allocation11_spill] sm:$0xff] }
  0xff   :  { %v2147_v13 = vpop.eup %2146  ;;  %v569_v23 = vmul.f32 1.442695, %v451_v20 }
 0x100   :  { %v571_v28 = vmul.f32 1.442695, %v452_v22  ;;  %v2149_v59 = vpop.eup %2148  ;;  %v3120_v35 = vpop.xlane.xlu0 %374  ;;  %v733_v16 = vsel %vm204_vm0, %v2147_v13, 0.0 }
 0x101   :  { %4424 = vst [vmem:[#allocation8_spill] sm:$0xff] %v3120_v35  ;;  %v3123_v6 = vpop.xlane.xlu1 %377  ;;  %2158 = vpow2.f32 %v569_v23  ;;  %v453_v24 = vsub.f32 %v4426_v50, %v3120_v35  ;;  %731 = vadd.xlane.f32.xlu1 %v730_v58  ;;  %734 = vadd.xlane.f32.xlu0 %v733_v16  ;;  %v736_v51 = vsel %vm204_vm0, %v2149_v59, 0.0  ;;  %v4430_v58 = vld [vmem:[#allocation12_spill] sm:$0xff] }
 0x102   :  { %4425 = vst [vmem:[#allocation9_spill] sm:$0xff] %v3123_v6  ;;  %v454_v55 = vsub.f32 %v4427_v7, %v3123_v6  ;;  %2160 = vpow2.f32 %v571_v28  ;;  %v4431_v28 = vld [vmem:[#allocation13_spill] sm:$0xff] }
 0x103   :  { %v2151_v20 = vpop.eup %2150  ;;  %v573_v54 = vmul.f32 1.442695, %v453_v24 }
 0x104   :  { %v575_v22 = vmul.f32 1.442695, %v454_v55  ;;  %v2153_v43 = vpop.eup %2152  ;;  %v3130_v27 = vpop.xlane.xlu0 %380  ;;  %v739_v13 = vsel %vm204_vm0, %v2151_v20, 0.0 }
 0x105   :  { %4428 = vst [vmem:[#allocation10_spill] sm:$0xff] %v3130_v27  ;;  %v3133_v23 = vpop.xlane.xlu1 %383  ;;  %2162 = vpow2.f32 %v573_v54  ;;  %v455_v16 = vsub.f32 %v4430_v58, %v3130_v27  ;;  %737 = vadd.xlane.f32.xlu1 %v736_v51  ;;  %740 = vadd.xlane.f32.xlu0 %v739_v13  ;;  %v742_v59 = vsel %vm204_vm0, %v2153_v43, 0.0  ;;  %v4434_v51 = vld [vmem:[#allocation14_spill] sm:$0xff] }
 0x106   :  { %4429 = vst [vmem:[#allocation11_spill] sm:$0xff] %v3133_v23  ;;  %v456_v50 = vsub.f32 %v4431_v28, %v3133_v23  ;;  %2164 = vpow2.f32 %v575_v22  ;;  %v4435_v22 = vld [vmem:[#allocation15_spill] sm:$0xff] }
 0x107   :  { %v2155_v24 = vpop.eup %2154  ;;  %v577_v7 = vmul.f32 1.442695, %v455_v16 }
 0x108   :  { %v579_v55 = vmul.f32 1.442695, %v456_v50  ;;  %v2157_v35 = vpop.eup %2156  ;;  %v3140_v6 = vpop.xlane.xlu0 %386  ;;  %v745_v20 = vsel %vm204_vm0, %v2155_v24, 0.0 }
 0x109   :  { %4432 = vst [vmem:[#allocation12_spill] sm:$0xff] %v3140_v6  ;;  %v3143_v54 = vpop.xlane.xlu1 %389  ;;  %2166 = vpow2.f32 %v577_v7  ;;  %v457_v13 = vsub.f32 %v4434_v51, %v3140_v6  ;;  %743 = vadd.xlane.f32.xlu1 %v742_v59  ;;  %746 = vadd.xlane.f32.xlu0 %v745_v20  ;;  %v748_v43 = vsel %vm204_vm0, %v2157_v35, 0.0  ;;  %v4438_v59 = vld [vmem:[#allocation16_spill] sm:$0xff] }
 0x10a   :  { %4433 = vst [vmem:[#allocation13_spill] sm:$0xff] %v3143_v54  ;;  %v458_v58 = vsub.f32 %v4435_v22, %v3143_v54  ;;  %2168 = vpow2.f32 %v579_v55  ;;  %v4439_v55 = vld [vmem:[#allocation17_spill] sm:$0xff] }
 0x10b   :  { %v2159_v16 = vpop.eup %2158  ;;  %v581_v28 = vmul.f32 1.442695, %v457_v13 }
 0x10c   :  { %v583_v50 = vmul.f32 1.442695, %v458_v58  ;;  %v2161_v27 = vpop.eup %2160  ;;  %v3150_v23 = vpop.xlane.xlu0 %392  ;;  %v751_v24 = vsel %vm204_vm0, %v2159_v16, 0.0 }
 0x10d   :  { %4436 = vst [vmem:[#allocation14_spill] sm:$0xff] %v3150_v23  ;;  %v3153_v7 = vpop.xlane.xlu1 %395  ;;  %2170 = vpow2.f32 %v581_v28  ;;  %v459_v20 = vsub.f32 %v4438_v59, %v3150_v23  ;;  %749 = vadd.xlane.f32.xlu1 %v748_v43  ;;  %752 = vadd.xlane.f32.xlu0 %v751_v24  ;;  %v754_v35 = vsel %vm204_vm0, %v2161_v27, 0.0 }
 0x10e   :  { %4437 = vst [vmem:[#allocation15_spill] sm:$0xff] %v3153_v7  ;;  %v460_v51 = vsub.f32 %v4439_v55, %v3153_v7  ;;  %2172 = vpow2.f32 %v583_v50 }
 0x10f   :  { %v2163_v13 = vpop.eup %2162  ;;  %v585_v22 = vmul.f32 1.442695, %v459_v20 }
 0x110   :  { %v587_v58 = vmul.f32 1.442695, %v460_v51  ;;  %v2165_v6 = vpop.eup %2164  ;;  %v757_v16 = vsel %vm204_vm0, %v2163_v13, 0.0 }
 0x111   :  { %2174 = vpow2.f32 %v585_v22  ;;  %755 = vadd.xlane.f32.xlu1 %v754_v35  ;;  %758 = vadd.xlane.f32.xlu0 %v757_v16  ;;  %v760_v28 = vsel %vm204_vm0, %v2165_v6, 0.0  ;;  %v141_v16 = vld [vmem:[%s4306_s1 + $0x8] sm:$0xff] }
 0x112   :  { %2176 = vpow2.f32 %v587_v58 }
 0x113   :  { %v2167_v43 = vpop.eup %2166 }
 0x114   :  { %v2169_v24 = vpop.eup %2168  ;;  %v763_v59 = vsel %vm204_vm0, %v2167_v43, 0.0 }
 0x115   :  { %761 = vadd.xlane.f32.xlu1 %v760_v28  ;;  %764 = vadd.xlane.f32.xlu0 %v763_v59  ;;  %v766_v27 = vsel %vm204_vm0, %v2169_v24, 0.0  ;;  %v140_v28 = vld [vmem:[%s4306_s1] sm:$0xff]  ;;  %v142_v59 = vld [vmem:[%s4306_s1 + $0x10] sm:$0xff] }
 0x117   :  { %v2171_v50 = vpop.eup %2170 }
 0x118   :  { %v2173_v20 = vpop.eup %2172  ;;  %v769_v55 = vsel %vm204_vm0, %v2171_v50, 0.0 }
 0x119   :  { %767 = vadd.xlane.f32.xlu1 %v766_v27  ;;  %770 = vadd.xlane.f32.xlu0 %v769_v55  ;;  %v772_v51 = vsel %vm204_vm0, %v2173_v20, 0.0  ;;  %v143_v20 = vld [vmem:[%s4306_s1 + $0x18] sm:$0xff] }
 0x11b   :  { %v2175_v35 = vpop.eup %2174 }
 0x11c   :  { %v2177_v13 = vpop.eup %2176  ;;  %v775_v6 = vsel %vm204_vm0, %v2175_v35, 0.0  ;;  %v144_v35 = vld [vmem:[%s4306_s1 + $0x20] sm:$0xff] }
 0x11d   :  { %773 = vadd.xlane.f32.xlu1 %v772_v51  ;;  %776 = vadd.xlane.f32.xlu0 %v775_v6  ;;  %v778_v22 = vsel %vm204_vm0, %v2177_v13, 0.0 }
 0x121   :  { %779 = vadd.xlane.f32.xlu1 %v778_v22  ;;  %v145_v22 = vld [vmem:[%s4306_s1 + $0x28] sm:$0xff] }
 0x12e   :  { %v3168_v58 = vpop.xlane.xlu0 %590 }
 0x12f   :  { %2178 = vlog2.f32 %v3168_v58 }
 0x132   :  { %915 = vperm.xlu1 %2049, %v141_v16   ;;  %v3176_v43 = vpop.xlane.xlu1 %593  ;;  %v3178_v24 = vpop.xlane.xlu0 %596 }
 0x133   :  { %912 = vperm.xlu0 %2048, %v140_v28   ;;  %2180 = vlog2.f32 %v3176_v43 }
 0x134   :  { %2182 = vlog2.f32 %v3178_v24 }
 0x136   :  { %918 = vperm.xlu1 %2049, %v142_v59   ;;  %v3183_v27 = vpop.xlane.xlu1 %599  ;;  %v3185_v50 = vpop.xlane.xlu0 %602 }
 0x137   :  { %2184 = vlog2.f32 %v3183_v27 }
 0x138   :  { %2186 = vlog2.f32 %v3185_v50 }
 0x13a   :  { %921 = vperm.xlu1 %2049, %v143_v20   ;;  %v3190_v55 = vpop.xlane.xlu1 %605  ;;  %v3192_v51 = vpop.xlane.xlu0 %608 }
 0x13b   :  { %2188 = vlog2.f32 %v3190_v55 }
 0x13c   :  { %2190 = vlog2.f32 %v3192_v51  ;;  %v194_v51 = vld [vmem:[%s4306_s1 + $0x1b0] sm:$0xff] }
 0x13e   :  { %924 = vperm.xlu1 %2049, %v144_v35   ;;  %v3197_v13 = vpop.xlane.xlu1 %611  ;;  %v3199_v6 = vpop.xlane.xlu0 %614 }
 0x13f   :  { %2192 = vlog2.f32 %v3197_v13  ;;  %v195_v13 = vld [vmem:[%s4306_s1 + $0x1b8] sm:$0xff] }
 0x140   :  { %2194 = vlog2.f32 %v3199_v6  ;;  %v4481_v6 = vld [vmem:[#allocation20_spill] sm:$0xff] }
 0x142   :  { %927 = vperm.xlu1 %2049, %v145_v22   ;;  %v3204_v16 = vpop.xlane.xlu1 %617  ;;  %v3206_v28 = vpop.xlane.xlu0 %620 }
 0x143   :  { %2196 = vlog2.f32 %v3204_v16 }
 0x144   :  { %2198 = vlog2.f32 %v3206_v28 }
 0x146   :  { %v3208_v59 = vpop.xlane.xlu1 %623  ;;  %v3210_v20 = vpop.xlane.xlu0 %626 }
 0x147   :  { %2200 = vlog2.f32 %v3208_v59 }
 0x148   :  { %2202 = vlog2.f32 %v3210_v20  ;;  %v2363_v20 = vld [vmem:[%s4305_s0 + $0x1e8] sm:$0xff] }
 0x14a   :  { %v3212_v23 = vpop.xlane.xlu1 %629  ;;  %v3214_v35 = vpop.xlane.xlu0 %632 }
 0x14b   :  { %2204 = vlog2.f32 %v3212_v23 }
 0x14c   :  { %2206 = vlog2.f32 %v3214_v35 }
 0x14e   :  { %v3216_v7 = vpop.xlane.xlu1 %635  ;;  %v3218_v54 = vpop.xlane.xlu0 %638 }
 0x14f   :  { %2208 = vlog2.f32 %v3216_v7 }
 0x152   :  { %v3220_v19 = vpop.xlane.xlu1 %641  ;;  %v3222_v42 = vpop.xlane.xlu0 %644 }
 0x156   :  { %v3224_v22 = vpop.xlane.xlu1 %647  ;;  %v3226_v11 = vpop.xlane.xlu0 %650 }
 0x15a   :  { %v3228_v4 = vpop.xlane.xlu1 %653  ;;  %v3230_v34 = vpop.xlane.xlu0 %656 }
 0x15e   :  { %v3232_v48 = vpop.xlane.xlu1 %659  ;;  %v3234_v61 = vpop.xlane.xlu0 %662 }
 0x15f   :  { %4440 = vst [vmem:[#allocation16_spill] sm:$0xff] %v3234_v61 }
 0x162   :  { %v3236_v26 = vpop.xlane.xlu1 %665  ;;  %v3238_v44 = vpop.xlane.xlu0 %668 }
 0x163   :  { %4441 = vst [vmem:[#allocation17_spill] sm:$0xff] %v3236_v26  ;;  %4442 = vst [vmem:[#allocation56_spill] sm:$0xff] %v3238_v44 }
 0x166   :  { %v3240_v57 = vpop.xlane.xlu1 %671  ;;  %v3242_v18 = vpop.xlane.xlu0 %674 }
 0x167   :  { %4443 = vst [vmem:[#allocation57_spill] sm:$0xff] %v3240_v57  ;;  %4444 = vst [vmem:[#allocation58_spill] sm:$0xff] %v3242_v18 }
 0x16a   :  { %v3244_v40 = vpop.xlane.xlu1 %677  ;;  %v3246_v53 = vpop.xlane.xlu0 %680 }
 0x16b   :  { %4445 = vst [vmem:[#allocation59_spill] sm:$0xff] %v3244_v40 }
 0x16e   :  { %v3248_v10 = vpop.xlane.xlu1 %683  ;;  %v3250_v36 = vpop.xlane.xlu0 %686 }
 0x16f   :  { %4446 = vst [vmem:[#allocation60_spill] sm:$0xff] %v3248_v10  ;;  %4447 = vst [vmem:[#allocation61_spill] sm:$0xff] %v3250_v36 }
 0x172   :  { %v3252_v33 = vpop.xlane.xlu1 %689  ;;  %v3254_v3 = vpop.xlane.xlu0 %692 }
 0x173   :  { %4448 = vst [vmem:[#allocation62_spill] sm:$0xff] %v3252_v33  ;;  %4449 = vst [vmem:[#allocation63_spill] sm:$0xff] %v3254_v3 }
 0x176   :  { %v3256_v45 = vpop.xlane.xlu1 %695  ;;  %v3258_v29 = vpop.xlane.xlu0 %698 }
 0x177   :  { %4450 = vst [vmem:[#allocation64_spill] sm:$0xff] %v3256_v45  ;;  %4451 = vst [vmem:[#allocation65_spill] sm:$0xff] %v3258_v29 }
 0x17a   :  { %v3260_v60 = vpop.xlane.xlu1 %701  ;;  %v3262_v41 = vpop.xlane.xlu0 %704 }
 0x17b   :  { %4452 = vst [vmem:[#allocation66_spill] sm:$0xff] %v3260_v60  ;;  %4453 = vst [vmem:[#allocation67_spill] sm:$0xff] %v3262_v41 }
 0x17e   :  { %v3264_v56 = vpop.xlane.xlu1 %707  ;;  %v3266_v25 = vpop.xlane.xlu0 %710 }
 0x17f   :  { %4454 = vst [vmem:[#allocation68_spill] sm:$0xff] %v3264_v56  ;;  %4455 = vst [vmem:[#allocation69_spill] sm:$0xff] %v3266_v25 }
 0x182   :  { %v3268_v40 = vpop.xlane.xlu1 %713  ;;  %v3270_v10 = vpop.xlane.xlu0 %716 }
 0x183   :  { %4456 = vst [vmem:[#allocation70_spill] sm:$0xff] %v3268_v40  ;;  %4457 = vst [vmem:[#allocation71_spill] sm:$0xff] %v3270_v10 }
 0x186   :  { %v3272_v36 = vpop.xlane.xlu1 %719  ;;  %v3274_v33 = vpop.xlane.xlu0 %722 }
 0x187   :  { %4458 = vst [vmem:[#allocation72_spill] sm:$0xff] %v3272_v36  ;;  %4459 = vst [vmem:[#allocation73_spill] sm:$0xff] %v3274_v33 }
 0x18a   :  { %v3276_v3 = vpop.xlane.xlu1 %725  ;;  %v3278_v45 = vpop.xlane.xlu0 %728 }
 0x18b   :  { %4460 = vst [vmem:[#allocation74_spill] sm:$0xff] %v3276_v3  ;;  %4461 = vst [vmem:[#allocation75_spill] sm:$0xff] %v3278_v45 }
 0x18e   :  { %v3280_v29 = vpop.xlane.xlu1 %731  ;;  %v3282_v60 = vpop.xlane.xlu0 %734 }
 0x18f   :  { %4462 = vst [vmem:[#allocation76_spill] sm:$0xff] %v3280_v29  ;;  %4463 = vst [vmem:[#allocation77_spill] sm:$0xff] %v3282_v60  ;;  %v2383_v60 = vmov 0.0  }
 0x190   :  { %1556 = vst.msk [vmem:[#allocation2] sm:$0xff] %vm1555_vm1, %v2383_v60  ;;  %1557 = vst.msk [vmem:[#allocation2 + $0x8] sm:$0xff] %vm1555_vm1, %v2383_v60 }
 0x191   :  { %1558 = vst.msk [vmem:[#allocation2 + $0x10] sm:$0xff] %vm1555_vm1, %v2383_v60  ;;  %1559 = vst.msk [vmem:[#allocation2 + $0x18] sm:$0xff] %vm1555_vm1, %v2383_v60 }
 0x192   :  { %v3284_v41 = vpop.xlane.xlu1 %737  ;;  %v3286_v52 = vpop.xlane.xlu0 %740  ;;  %1560 = vst.msk [vmem:[#allocation2 + $0x20] sm:$0xff] %vm1555_vm1, %v2383_v60  ;;  %1561 = vst.msk [vmem:[#allocation2 + $0x28] sm:$0xff] %vm1555_vm1, %v2383_v60 }
 0x193   :  { %4464 = vst [vmem:[#allocation78_spill] sm:$0xff] %v3284_v41  ;;  %4465 = vst [vmem:[#allocation79_spill] sm:$0xff] %v3286_v52 }
 0x194   :  { %1562 = vst.msk [vmem:[#allocation2 + $0x30] sm:$0xff] %vm1555_vm1, %v2383_v60  ;;  %1563 = vst.msk [vmem:[#allocation2 + $0x38] sm:$0xff] %vm1555_vm1, %v2383_v60 }
 0x195   :  { %1564 = vst.msk [vmem:[#allocation2 + $0x40] sm:$0xff] %vm1555_vm1, %v2383_v60  ;;  %1565 = vst.msk [vmem:[#allocation2 + $0x48] sm:$0xff] %vm1555_vm1, %v2383_v60 }
 0x196   :  { %v3288_v25 = vpop.xlane.xlu1 %743  ;;  %v3290_v37 = vpop.xlane.xlu0 %746  ;;  %1566 = vst.msk [vmem:[#allocation2 + $0x50] sm:$0xff] %vm1555_vm1, %v2383_v60  ;;  %1567 = vst.msk [vmem:[#allocation2 + $0x58] sm:$0xff] %vm1555_vm1, %v2383_v60 }
 0x197   :  { %4466 = vst [vmem:[#allocation80_spill] sm:$0xff] %v3288_v25  ;;  %4467 = vst [vmem:[#allocation81_spill] sm:$0xff] %v3290_v37  ;;  %v909_v37 = vlaneseq  ;;  %v1620_v43 = vld [vmem:[#allocation2] sm:$0xff]  ;;  %v1621_v24 = vld [vmem:[#allocation2 + $0x8] sm:$0xff] }
 0x198   :  { %1568 = vst.msk [vmem:[#allocation2 + $0x60] sm:$0xff] %vm1555_vm1, %v2383_v60  ;;  %1569 = vst.msk [vmem:[#allocation2 + $0x68] sm:$0xff] %vm1555_vm1, %v2383_v60  ;;  %v1622_v44 = vld [vmem:[#allocation2 + $0x10] sm:$0xff] }
 0x199   :  { %1570 = vst.msk [vmem:[#allocation2 + $0x70] sm:$0xff] %vm1555_vm1, %v2383_v60  ;;  %1571 = vst.msk [vmem:[#allocation2 + $0x78] sm:$0xff] %vm1555_vm1, %v2383_v60 }
 0x19a   :  { %v3292_v10 = vpop.xlane.xlu1 %749  ;;  %v3294_v18 = vpop.xlane.xlu0 %752  ;;  %1572 = vst.msk [vmem:[#allocation2 + $0x80] sm:$0xff] %vm1555_vm1, %v2383_v60  ;;  %1573 = vst.msk [vmem:[#allocation2 + $0x88] sm:$0xff] %vm1555_vm1, %v2383_v60 }
 0x19b   :  { %4468 = vst [vmem:[#allocation82_spill] sm:$0xff] %v3292_v10  ;;  %4469 = vst [vmem:[#allocation83_spill] sm:$0xff] %v3294_v18  ;;  %v1627_v62 = vld [vmem:[#allocation2 + $0x38] sm:$0xff] }
 0x19c   :  { %1574 = vst.msk [vmem:[#allocation2 + $0x90] sm:$0xff] %vm1555_vm1, %v2383_v60  ;;  %1575 = vst.msk [vmem:[#allocation2 + $0x98] sm:$0xff] %vm1555_vm1, %v2383_v60  ;;  %v1629_v23 = vld [vmem:[#allocation2 + $0x48] sm:$0xff] }
 0x19d   :  { %1576 = vst.msk [vmem:[#allocation2 + $0xa0] sm:$0xff] %vm1555_vm1, %v2383_v60  ;;  %1577 = vst.msk [vmem:[#allocation2 + $0xa8] sm:$0xff] %vm1555_vm1, %v2383_v60  ;;  %v1630_v35 = vld [vmem:[#allocation2 + $0x50] sm:$0xff]  ;;  %v1631_v7 = vld [vmem:[#allocation2 + $0x58] sm:$0xff] }
 0x19e   :  { %v3296_v33 = vpop.xlane.xlu1 %755  ;;  %v3298_v3 = vpop.xlane.xlu0 %758  ;;  %1578 = vst.msk [vmem:[#allocation2 + $0xb0] sm:$0xff] %vm1555_vm1, %v2383_v60  ;;  %1579 = vst.msk [vmem:[#allocation2 + $0xb8] sm:$0xff] %vm1555_vm1, %v2383_v60 }
 0x19f   :  { %4470 = vst [vmem:[#allocation84_spill] sm:$0xff] %v3296_v33  ;;  %4471 = vst [vmem:[#allocation85_spill] sm:$0xff] %v3298_v3  ;;  %v3442_v33 = vand.u32 127, %v909_v37 }
 0x1a0   :  { %1580 = vst.msk [vmem:[#allocation2 + $0xc0] sm:$0xff] %vm1555_vm1, %v2383_v60  ;;  %1581 = vst.msk [vmem:[#allocation2 + $0xc8] sm:$0xff] %vm1555_vm1, %v2383_v60 }
 0x1a1   :  { %1582 = vst.msk [vmem:[#allocation2 + $0xd0] sm:$0xff] %vm1555_vm1, %v2383_v60  ;;  %1583 = vst.msk [vmem:[#allocation2 + $0xd8] sm:$0xff] %vm1555_vm1, %v2383_v60 }
 0x1a2   :  { %v3300_v45 = vpop.xlane.xlu1 %761  ;;  %v3302_v29 = vpop.xlane.xlu0 %764  ;;  %1584 = vst.msk [vmem:[#allocation2 + $0xe0] sm:$0xff] %vm1555_vm1, %v2383_v60  ;;  %1585 = vst.msk [vmem:[#allocation2 + $0xe8] sm:$0xff] %vm1555_vm1, %v2383_v60 }
 0x1a3   :  { %4472 = vst [vmem:[#allocation86_spill] sm:$0xff] %v3300_v45  ;;  %4473 = vst [vmem:[#allocation87_spill] sm:$0xff] %v3302_v29 }
 0x1a4   :  { %1586 = vst.msk [vmem:[#allocation2 + $0xf0] sm:$0xff] %vm1555_vm1, %v2383_v60  ;;  %1587 = vst.msk [vmem:[#allocation2 + $0xf8] sm:$0xff] %vm1555_vm1, %v2383_v60 }
 0x1a5   :  { %1588 = vst.msk [vmem:[#allocation2 + $0x100] sm:$0xff] %vm1555_vm1, %v2383_v60  ;;  %1589 = vst.msk [vmem:[#allocation2 + $0x108] sm:$0xff] %vm1555_vm1, %v2383_v60 }
 0x1a6   :  { %1590 = vst.msk [vmem:[#allocation2 + $0x110] sm:$0xff] %vm1555_vm1, %v2383_v60  ;;  %1591 = vst.msk [vmem:[#allocation2 + $0x118] sm:$0xff] %vm1555_vm1, %v2383_v60  ;;  %v3432_v29 = vpop.xlane.xlu1 %767  ;;  %v3434_v3 = vpop.xlane.xlu0 %770 }
 0x1a7   :  { %1592 = vst.msk [vmem:[#allocation2 + $0x120] sm:$0xff] %vm1555_vm1, %v2383_v60  ;;  %1593 = vst.msk [vmem:[#allocation2 + $0x128] sm:$0xff] %vm1555_vm1, %v2383_v60 }
 0x1a8   :  { %1594 = vst.msk [vmem:[#allocation2 + $0x130] sm:$0xff] %vm1555_vm1, %v2383_v60  ;;  %1595 = vst.msk [vmem:[#allocation2 + $0x138] sm:$0xff] %vm1555_vm1, %v2383_v60 }
 0x1a9   :  { %1596 = vst.msk [vmem:[#allocation2 + $0x140] sm:$0xff] %vm1555_vm1, %v2383_v60  ;;  %1597 = vst.msk [vmem:[#allocation2 + $0x148] sm:$0xff] %vm1555_vm1, %v2383_v60 }
 0x1aa   :  { %1598 = vst.msk [vmem:[#allocation2 + $0x150] sm:$0xff] %vm1555_vm1, %v2383_v60  ;;  %1599 = vst.msk [vmem:[#allocation2 + $0x158] sm:$0xff] %vm1555_vm1, %v2383_v60  ;;  %v3436_v18 = vpop.xlane.xlu1 %773  ;;  %v3438_v52 = vpop.xlane.xlu0 %776 }
 0x1ab   :  { %1600 = vst.msk [vmem:[#allocation2 + $0x160] sm:$0xff] %vm1555_vm1, %v2383_v60  ;;  %1601 = vst.msk [vmem:[#allocation2 + $0x168] sm:$0xff] %vm1555_vm1, %v2383_v60 }
 0x1ac   :  { %1602 = vst.msk [vmem:[#allocation2 + $0x170] sm:$0xff] %vm1555_vm1, %v2383_v60  ;;  %1603 = vst.msk [vmem:[#allocation2 + $0x178] sm:$0xff] %vm1555_vm1, %v2383_v60 }
 0x1ad   :  { %1604 = vst.msk [vmem:[#allocation2 + $0x180] sm:$0xff] %vm1555_vm1, %v2383_v60  ;;  %1605 = vst.msk [vmem:[#allocation2 + $0x188] sm:$0xff] %vm1555_vm1, %v2383_v60 }
 0x1ae   :  { %1606 = vst.msk [vmem:[#allocation2 + $0x190] sm:$0xff] %vm1555_vm1, %v2383_v60  ;;  %1607 = vst.msk [vmem:[#allocation2 + $0x198] sm:$0xff] %vm1555_vm1, %v2383_v60  ;;  %v3440_v45 = vpop.xlane.xlu1 %779 }
 0x1af   :  { %1608 = vst.msk [vmem:[#allocation2 + $0x1a0] sm:$0xff] %vm1555_vm1, %v2383_v60  ;;  %1609 = vst.msk [vmem:[#allocation2 + $0x1a8] sm:$0xff] %vm1555_vm1, %v2383_v60 }
 0x1b0   :  { %1610 = vst.msk [vmem:[#allocation2 + $0x1b0] sm:$0xff] %vm1555_vm1, %v2383_v60  ;;  %1611 = vst.msk [vmem:[#allocation2 + $0x1b8] sm:$0xff] %vm1555_vm1, %v2383_v60 }
 0x1b1   :  { %1612 = vst.msk [vmem:[#allocation2 + $0x1c0] sm:$0xff] %vm1555_vm1, %v2383_v60  ;;  %1613 = vst.msk [vmem:[#allocation2 + $0x1c8] sm:$0xff] %vm1555_vm1, %v2383_v60 }
 0x1b2   :  { %1614 = vst.msk [vmem:[#allocation2 + $0x1d0] sm:$0xff] %vm1555_vm1, %v2383_v60  ;;  %1615 = vst.msk [vmem:[#allocation2 + $0x1d8] sm:$0xff] %vm1555_vm1, %v2383_v60  ;;  %v916_v10 = vpop.permute.xlu1 %915  ;;  %v913_v25 = vpop.permute.xlu0 %912 }
 0x1b3   :  { %1616 = vst.msk [vmem:[#allocation2 + $0x1e0] sm:$0xff] %vm1555_vm1, %v2383_v60  ;;  %1617 = vst.msk [vmem:[#allocation2 + $0x1e8] sm:$0xff] %vm1555_vm1, %v2383_v60  ;;  %vm1104_vm2 = vcmp.eq.s32.totalorder %v3442_v33, %v916_v10  ;;  %vm1103_vm3 = vcmp.eq.s32.totalorder %v3442_v33, %v913_v25  ;;  %v2308_v25 = vld [vmem:[%s4305_s0 + $0x10] sm:$0xff] }
 0x1b4   :  { %1618 = vst.msk [vmem:[#allocation2 + $0x1f0] sm:$0xff] %vm1555_vm1, %v2383_v60  ;;  %1619 = vst.msk [vmem:[#allocation2 + $0x1f8] sm:$0xff] %vm1555_vm1, %v2383_v60  ;;  %v2306_v60 = vld [vmem:[%s4305_s0 + $0x8] sm:$0xff] }
 0x1b5   :  { %4474 = vst [vmem:[#allocation88_spill] sm:$0xff] %v3432_v29  ;;  %4475 = vst [vmem:[#allocation89_spill] sm:$0xff] %v3434_v3  ;;  %v1168_v3 = vsel %vm1104_vm2, %v2306_v60, 0.0 }
 0x1b6   :  { %4476 = vst [vmem:[#allocation90_spill] sm:$0xff] %v3436_v18  ;;  %4477 = vst [vmem:[#allocation91_spill] sm:$0xff] %v3438_v52  ;;  %v2307_v18 = vld [vmem:[%s4305_s0] sm:$0xff]  ;;  %v919_v29 = vpop.permute.xlu1 %918 }
 0x1b7   :  { %4478 = vst [vmem:[#allocation92_spill] sm:$0xff] %v3440_v45  ;;  %v1167_v52 = vsel %vm1103_vm3, %v2307_v18, 0.0  ;;  %v1234_v45 = vsel %vm204_vm0, %v1168_v3, 0.0  ;;  %vm1105_vm4 = vcmp.eq.s32.totalorder %v3442_v33, %v919_v29  ;;  %v2310_v29 = vld [vmem:[%s4305_s0 + $0x20] sm:$0xff] }
 0x1b8   :  { %v1231_v37 = vsel %vm204_vm0, %v1167_v52, 0.0  ;;  %1235 = vadd.xlane.f32.xlu0 %v1234_v45  ;;  %v1169_v10 = vsel %vm1105_vm4, %v2308_v25, 0.0  ;;  %v2309_v52 = vld [vmem:[%s4305_s0 + $0x18] sm:$0xff] }
 0x1b9   :  { %1232 = vadd.xlane.f32.xlu1 %v1231_v37  ;;  %v1237_v60 = vsel %vm204_vm0, %v1169_v10, 0.0 }
 0x1ba   :  { %v922_v41 = vpop.permute.xlu1 %921 }
 0x1bb   :  { %vm1106_vm5 = vcmp.eq.s32.totalorder %v3442_v33, %v922_v41  ;;  %v2311_v41 = vld [vmem:[%s4305_s0 + $0x28] sm:$0xff] }
 0x1bc   :  { %v1170_v3 = vsel %vm1106_vm5, %v2309_v52, 0.0 }
 0x1bd   :  { %1238 = vadd.xlane.f32.xlu1 %v1237_v60  ;;  %v1240_v45 = vsel %vm204_vm0, %v1170_v3, 0.0  ;;  %v146_v3 = vld [vmem:[%s4306_s1 + $0x30] sm:$0xff] }
 0x1be   :  { %v925_v18 = vpop.permute.xlu1 %924  ;;  %1241 = vadd.xlane.f32.xlu0 %v1240_v45  ;;  %v147_v45 = vld [vmem:[%s4306_s1 + $0x38] sm:$0xff] }
 0x1bf   :  { %vm1107_vm6 = vcmp.eq.s32.totalorder %v3442_v33, %v925_v18  ;;  %v148_v18 = vld [vmem:[%s4306_s1 + $0x40] sm:$0xff] }
 0x1c0   :  { %v1171_v37 = vsel %vm1107_vm6, %v2310_v29, 0.0  ;;  %v150_v29 = vld [vmem:[%s4306_s1 + $0x50] sm:$0xff] }
 0x1c1   :  { %v1243_v25 = vsel %vm204_vm0, %v1171_v37, 0.0  ;;  %v152_v37 = vld [vmem:[%s4306_s1 + $0x60] sm:$0xff] }
 0x1c2   :  { %v928_v10 = vpop.permute.xlu1 %927  ;;  %1244 = vadd.xlane.f32.xlu1 %v1243_v25  ;;  %v154_v25 = vld [vmem:[%s4306_s1 + $0x70] sm:$0xff] }
 0x1c3   :  { %vm1108_vm7 = vcmp.eq.s32.totalorder %v3442_v33, %v928_v10  ;;  %v156_v10 = vld [vmem:[%s4306_s1 + $0x80] sm:$0xff] }
 0x1c4   :  { %v1172_v60 = vsel %vm1108_vm7, %v2311_v41, 0.0  ;;  %v158_v41 = vld [vmem:[%s4306_s1 + $0x90] sm:$0xff] }
 0x1c5   :  { %v1246_v52 = vsel %vm204_vm0, %v1172_v60, 0.0  ;;  %v160_v60 = vld [vmem:[%s4306_s1 + $0xa0] sm:$0xff] }
 0x1c6   :  { %1247 = vadd.xlane.f32.xlu1 %v1246_v52  ;;  %v162_v52 = vld [vmem:[%s4306_s1 + $0xb0] sm:$0xff] }
 0x1d7   :  { %930 = vperm.xlu1 %2049, %v146_v3   ;;  %v164_v3 = vld [vmem:[%s4306_s1 + $0xc0] sm:$0xff] }
 0x1db   :  { %933 = vperm.xlu1 %2049, %v147_v45   ;;  %v166_v45 = vld [vmem:[%s4306_s1 + $0xd0] sm:$0xff] }
 0x1df   :  { %936 = vperm.xlu1 %2049, %v148_v18   ;;  %v168_v18 = vld [vmem:[%s4306_s1 + $0xe0] sm:$0xff] }
 0x1e3   :  { %942 = vperm.xlu1 %2049, %v150_v29   ;;  %v170_v29 = vld [vmem:[%s4306_s1 + $0xf0] sm:$0xff] }
 0x1e7   :  { %948 = vperm.xlu1 %2049, %v152_v37   ;;  %v172_v37 = vld [vmem:[%s4306_s1 + $0x100] sm:$0xff] }
 0x1eb   :  { %954 = vperm.xlu1 %2049, %v154_v25   ;;  %v174_v25 = vld [vmem:[%s4306_s1 + $0x110] sm:$0xff] }
 0x1ef   :  { %960 = vperm.xlu1 %2049, %v156_v10   ;;  %v177_v10 = vld [vmem:[%s4306_s1 + $0x128] sm:$0xff] }
 0x1f3   :  { %966 = vperm.xlu1 %2049, %v158_v41   ;;  %v178_v41 = vld [vmem:[%s4306_s1 + $0x130] sm:$0xff] }
 0x1f7   :  { %972 = vperm.xlu1 %2049, %v160_v60   ;;  %v180_v60 = vld [vmem:[%s4306_s1 + $0x140] sm:$0xff] }
 0x1fb   :  { %978 = vperm.xlu1 %2049, %v162_v52   ;;  %v181_v52 = vld [vmem:[%s4306_s1 + $0x148] sm:$0xff] }
 0x1ff   :  { %984 = vperm.xlu1 %2049, %v164_v3   ;;  %v2179_v3 = vpop.eup %2178  ;;  %2210 = vlog2.f32 %v3218_v54 }
 0x203   :  { %990 = vperm.xlu1 %2049, %v166_v45   ;;  %v2181_v45 = vpop.eup %2180  ;;  %2212 = vlog2.f32 %v3220_v19 }
 0x207   :  { %996 = vperm.xlu1 %2049, %v168_v18   ;;  %v782_v18 = vmul.f32 0.6931472, %v2179_v3 }
 0x20b   :  { %1002 = vperm.xlu1 %2049, %v170_v29   ;;  %v784_v29 = vmul.f32 0.6931472, %v2181_v45 }
 0x20d   :  { %v1424_v58 = vadd.f32 %v784_v29, %v2856_v39 }
 0x20f   :  { %1008 = vperm.xlu1 %2049, %v172_v37   ;;  %v2183_v37 = vpop.eup %2182  ;;  %2214 = vlog2.f32 %v3222_v42 }
 0x213   :  { %1014 = vperm.xlu1 %2049, %v174_v25   ;;  %v786_v25 = vmul.f32 0.6931472, %v2183_v37 }
 0x215   :  { %v1425_v3 = vadd.f32 %v786_v25, %v2850_v15  ;;  %v4480_v25 = vld [vmem:[#allocation19_spill] sm:$0xff] }
 0x217   :  { %1023 = vperm.xlu1 %2049, %v177_v10   ;;  %v4479_v10 = vld [vmem:[#allocation18_spill] sm:$0xff] }
 0x21b   :  { %1026 = vperm.xlu1 %2049, %v178_v41   ;;  %v1423_v41 = vadd.f32 %v782_v18, %v4479_v10 }
 0x21f   :  { %1032 = vperm.xlu1 %2049, %v180_v60   ;;  %v2185_v60 = vpop.eup %2184  ;;  %2216 = vlog2.f32 %v3224_v22 }
 0x220   :  { %v788_v0 = vmul.f32 0.6931472, %v2185_v60  ;;  %v2187_v45 = vpop.eup %2186  ;;  %2218 = vlog2.f32 %v3226_v11  ;;  %v1637_v11 = vld [vmem:[#allocation2 + $0x88] sm:$0xff] }
 0x221   :  { %v790_v18 = vmul.f32 0.6931472, %v2187_v45  ;;  %v2189_v10 = vpop.eup %2188  ;;  %v2312_v45 = vld [vmem:[%s4305_s0 + $0x30] sm:$0xff]  ;;  %2220 = vlog2.f32 %v3228_v4 }
 0x222   :  { %v1426_v37 = vadd.f32 %v788_v0, %v2858_v47 }
 0x223   :  { %1035 = vperm.xlu1 %2049, %v181_v52   ;;  %v1427_v60 = vadd.f32 %v790_v18, %v4480_v25  ;;  %v2313_v18 = vld [vmem:[%s4305_s0 + $0x38] sm:$0xff]  ;;  %v153_v25 = vld [vmem:[%s4306_s1 + $0x68] sm:$0xff] }
 0x245   :  { %v1236_v31 = vpop.xlane.xlu0 %1235 }
 0x246   :  { %v1233_v52 = vpop.xlane.xlu1 %1232  ;;  %v1488_v57 = vsub.f32 %v1424_v58, %v1236_v31  ;;  %v792_v58 = vmul.f32 0.6931472, %v2189_v10 }
 0x247   :  { %v1487_v27 = vsub.f32 %v1423_v41, %v1233_v52  ;;  %v1623_v41 = vld [vmem:[#allocation2 + $0x18] sm:$0xff] }
 0x248   :  { %v1685_v50 = vadd.f32 %v1621_v24, %v1488_v57 }
 0x249   :  { %v1684_v36 = vadd.f32 %v1620_v43, %v1487_v27  ;;  %v1624_v43 = vld [vmem:[#allocation2 + $0x20] sm:$0xff]  ;;  %v1625_v27 = vld [vmem:[#allocation2 + $0x28] sm:$0xff] }
 0x24a   :  { %v1239_v55 = vpop.xlane.xlu1 %1238  ;;  %1750 = vst.msk [vmem:[#allocation2 + $0x8] sm:$0xff] %vm1555_vm1, %v1685_v50 }
 0x24b   :  { %1749 = vst.msk [vmem:[#allocation2] sm:$0xff] %vm1555_vm1, %v1684_v36  ;;  %v1489_v39 = vsub.f32 %v1425_v3, %v1239_v55  ;;  %v1242_v31 = vpop.xlane.xlu0 %1241 }
 0x24c   :  { %v1490_v57 = vsub.f32 %v1426_v37, %v1242_v31 }
 0x24d   :  { %v1686_v29 = vadd.f32 %v1622_v44, %v1489_v39  ;;  %v1428_v44 = vadd.f32 %v792_v58, %v2866_v14  ;;  %v149_v58 = vld [vmem:[%s4306_s1 + $0x48] sm:$0xff] }
 0x24e   :  { %v1687_v15 = vadd.f32 %v1623_v41, %v1490_v57  ;;  %v2314_v41 = vld [vmem:[%s4305_s0 + $0x40] sm:$0xff] }
 0x24f   :  { %1751 = vst.msk [vmem:[#allocation2 + $0x10] sm:$0xff] %vm1555_vm1, %v1686_v29  ;;  %v1245_v52 = vpop.xlane.xlu1 %1244 }
 0x250   :  { %1752 = vst.msk [vmem:[#allocation2 + $0x18] sm:$0xff] %vm1555_vm1, %v1687_v15  ;;  %v1491_v36 = vsub.f32 %v1427_v60, %v1245_v52  ;;  %v151_v15 = vld [vmem:[%s4306_s1 + $0x58] sm:$0xff] }
 0x251   :  { %v155_v60 = vld [vmem:[%s4306_s1 + $0x78] sm:$0xff] }
 0x252   :  { %v1688_v24 = vadd.f32 %v1624_v43, %v1491_v36  ;;  %v157_v43 = vld [vmem:[%s4306_s1 + $0x88] sm:$0xff]  ;;  %v159_v52 = vld [vmem:[%s4306_s1 + $0x98] sm:$0xff] }
 0x253   :  { %v1248_v47 = vpop.xlane.xlu1 %1247  ;;  %v161_v36 = vld [vmem:[%s4306_s1 + $0xa8] sm:$0xff] }
 0x254   :  { %1753 = vst.msk [vmem:[#allocation2 + $0x20] sm:$0xff] %vm1555_vm1, %v1688_v24  ;;  %v1492_v0 = vsub.f32 %v1428_v44, %v1248_v47  ;;  %v163_v44 = vld [vmem:[%s4306_s1 + $0xb8] sm:$0xff]  ;;  %v165_v47 = vld [vmem:[%s4306_s1 + $0xc8] sm:$0xff] }
 0x256   :  { %v1689_v50 = vadd.f32 %v1625_v27, %v1492_v0  ;;  %v167_v0 = vld [vmem:[%s4306_s1 + $0xd8] sm:$0xff] }
 0x257   :  { %v931_v3 = vpop.permute.xlu1 %930 }
 0x258   :  { %1754 = vst.msk [vmem:[#allocation2 + $0x28] sm:$0xff] %vm1555_vm1, %v1689_v50  ;;  %vm1109_vm8 = vcmp.eq.s32.totalorder %v3442_v33, %v931_v3  ;;  %v169_v3 = vld [vmem:[%s4306_s1 + $0xe8] sm:$0xff] }
 0x259   :  { %v1173_v55 = vsel %vm1109_vm8, %v2312_v45, 0.0 }
 0x25a   :  { %v1249_v39 = vsel %vm204_vm0, %v1173_v55, 0.0  ;;  %v171_v55 = vld [vmem:[%s4306_s1 + $0xf8] sm:$0xff] }
 0x25b   :  { %1250 = vadd.xlane.f32.xlu0 %v1249_v39  ;;  %v934_v14 = vpop.permute.xlu1 %933  ;;  %v173_v39 = vld [vmem:[%s4306_s1 + $0x108] sm:$0xff] }
 0x25c   :  { %vm1110_vm9 = vcmp.eq.s32.totalorder %v3442_v33, %v934_v14 }
 0x25d   :  { %v1174_v29 = vsel %vm1110_vm9, %v2313_v18, 0.0  ;;  %v175_v18 = vld [vmem:[%s4306_s1 + $0x118] sm:$0xff] }
 0x25e   :  { %v1252_v37 = vsel %vm204_vm0, %v1174_v29, 0.0 }
 0x25f   :  { %1253 = vadd.xlane.f32.xlu1 %v1252_v37  ;;  %v937_v10 = vpop.permute.xlu1 %936  ;;  %v176_v37 = vld [vmem:[%s4306_s1 + $0x120] sm:$0xff] }
 0x260   :  { %vm1111_vm10 = vcmp.eq.s32.totalorder %v3442_v33, %v937_v10  ;;  %v179_v10 = vld [vmem:[%s4306_s1 + $0x138] sm:$0xff] }
 0x261   :  { %v1175_v31 = vsel %vm1111_vm10, %v2314_v41, 0.0 }
 0x262   :  { %v1255_v57 = vsel %vm204_vm0, %v1175_v31, 0.0  ;;  %v182_v31 = vld [vmem:[%s4306_s1 + $0x150] sm:$0xff] }
 0x263   :  { %1256 = vadd.xlane.f32.xlu1 %v1255_v57  ;;  %v3588_v24 = vpop.permute.xlu1 %942 }
 0x264   :  { %vm1113_vm11 = vcmp.eq.s32.totalorder %v3442_v33, %v3588_v24  ;;  %v2316_v24 = vld [vmem:[%s4305_s0 + $0x50] sm:$0xff] }
 0x267   :  { %v3593_v27 = vpop.permute.xlu1 %948 }
 0x268   :  { %vm1115_vm14 = vcmp.eq.s32.totalorder %v3442_v33, %v3593_v27  ;;  %v202_v27 = vld [vmem:[%s4306_s1 + $0x1f0] sm:$0xff] }
 0x26b   :  { %v3601_v50 = vpop.permute.xlu1 %954 }
 0x26c   :  { %vm1117_vm2 = vcmp.eq.s32.totalorder %v3442_v33, %v3601_v50  ;;  %v2321_v50 = vld [vmem:[%s4305_s0 + $0x78] sm:$0xff] }
 0x26f   :  { %v3606_v45 = vpop.permute.xlu1 %960 }
 0x270   :  { %vm1119_vm4 = vcmp.eq.s32.totalorder %v3442_v33, %v3606_v45 }
 0x271   :  { %939 = vperm.xlu0 %2048, %v149_v58   ;;  %v183_v58 = vld [vmem:[%s4306_s1 + $0x158] sm:$0xff] }
 0x273   :  { %v3614_v14 = vpop.permute.xlu1 %966 }
 0x274   :  { %vm1121_vm6 = vcmp.eq.s32.totalorder %v3442_v33, %v3614_v14 }
 0x275   :  { %945 = vperm.xlu0 %2048, %v151_v15   ;;  %v184_v15 = vld [vmem:[%s4306_s1 + $0x160] sm:$0xff] }
 0x277   :  { %v3619_v29 = vpop.permute.xlu1 %972 }
 0x278   :  { %vm1123_vm8 = vcmp.eq.s32.totalorder %v3442_v33, %v3619_v29  ;;  %v2327_v29 = vld [vmem:[%s4305_s0 + $0xa8] sm:$0xff] }
 0x279   :  { %951 = vperm.xlu0 %2048, %v153_v25  }
 0x27b   :  { %v3627_v41 = vpop.permute.xlu1 %978 }
 0x27d   :  { %957 = vperm.xlu0 %2048, %v155_v60   ;;  %v185_v60 = vld [vmem:[%s4306_s1 + $0x168] sm:$0xff] }
 0x27f   :  { %v3632_v57 = vpop.permute.xlu1 %984 }
 0x281   :  { %963 = vperm.xlu0 %2048, %v157_v43  }
 0x283   :  { %v3640_v25 = vpop.permute.xlu1 %990 }
 0x285   :  { %969 = vperm.xlu0 %2048, %v159_v52   ;;  %v186_v52 = vld [vmem:[%s4306_s1 + $0x170] sm:$0xff] }
 0x287   :  { %v3645_v43 = vpop.permute.xlu1 %996 }
 0x289   :  { %975 = vperm.xlu0 %2048, %v161_v36   ;;  %v187_v36 = vld [vmem:[%s4306_s1 + $0x178] sm:$0xff] }
 0x28d   :  { %981 = vperm.xlu0 %2048, %v163_v44   ;;  %v3653_v44 = vpop.permute.xlu1 %1002 }
 0x28e   :  { %vm1133_vm9 = vcmp.eq.s32.totalorder %v3442_v33, %v3653_v44 }
 0x291   :  { %987 = vperm.xlu0 %2048, %v165_v47   ;;  %v188_v47 = vld [vmem:[%s4306_s1 + $0x180] sm:$0xff] }
 0x295   :  { %993 = vperm.xlu0 %2048, %v167_v0   ;;  %v3658_v0 = vpop.permute.xlu1 %1008 }
 0x299   :  { %999 = vperm.xlu0 %2048, %v169_v3   ;;  %v189_v3 = vld [vmem:[%s4306_s1 + $0x188] sm:$0xff] }
 0x29d   :  { %1005 = vperm.xlu0 %2048, %v171_v55   ;;  %v190_v55 = vld [vmem:[%s4306_s1 + $0x190] sm:$0xff] }
 0x2a1   :  { %1011 = vperm.xlu0 %2048, %v173_v39   ;;  %v3666_v39 = vpop.permute.xlu1 %1014 }
 0x2a5   :  { %1017 = vperm.xlu0 %2048, %v175_v18   ;;  %v191_v18 = vld [vmem:[%s4306_s1 + $0x198] sm:$0xff] }
 0x2a9   :  { %1020 = vperm.xlu0 %2048, %v176_v37   ;;  %v3672_v37 = vpop.permute.xlu1 %1023 }
 0x2ad   :  { %1029 = vperm.xlu0 %2048, %v179_v10   ;;  %v192_v10 = vld [vmem:[%s4306_s1 + $0x1a0] sm:$0xff] }
 0x2b1   :  { %1038 = vperm.xlu0 %2048, %v182_v31   ;;  %v193_v31 = vld [vmem:[%s4306_s1 + $0x1a8] sm:$0xff] }
 0x2b5   :  { %1041 = vperm.xlu0 %2048, %v183_v58   ;;  %v3681_v58 = vpop.permute.xlu1 %1026 }
 0x2b9   :  { %1044 = vperm.xlu0 %2048, %v184_v15   ;;  %v2191_v15 = vpop.eup %2190  ;;  %2222 = vlog2.f32 %v3246_v53 }
 0x2bd   :  { %1047 = vperm.xlu0 %2048, %v185_v60   ;;  %v3687_v60 = vpop.permute.xlu1 %1032 }
 0x2c1   :  { %1050 = vperm.xlu0 %2048, %v186_v52   ;;  %v794_v52 = vmul.f32 0.6931472, %v2191_v15  ;;  %v197_v15 = vld [vmem:[%s4306_s1 + $0x1c8] sm:$0xff] }
 0x2c5   :  { %1053 = vperm.xlu0 %2048, %v187_v36   ;;  %v2193_v36 = vpop.eup %2192  ;;  %2224 = vlog2.f32 %v3230_v34 }
 0x2c9   :  { %1056 = vperm.xlu0 %2048, %v188_v47   ;;  %v196_v47 = vld [vmem:[%s4306_s1 + $0x1c0] sm:$0xff] }
 0x2cd   :  { %1059 = vperm.xlu0 %2048, %v189_v3   ;;  %v1429_v3 = vadd.f32 %v794_v52, %v4481_v6 }
 0x2d1   :  { %1062 = vperm.xlu0 %2048, %v190_v55   ;;  %v796_v55 = vmul.f32 0.6931472, %v2193_v36  ;;  %v198_v36 = vld [vmem:[%s4306_s1 + $0x1d0] sm:$0xff] }
 0x2d5   :  { %1065 = vperm.xlu0 %2048, %v191_v18   ;;  %v2195_v18 = vpop.eup %2194  ;;  %2226 = vlog2.f32 %v3232_v48  ;;  %v4485_v48 = vld [vmem:[#allocation22_spill] sm:$0xff] }
 0x2d6   :  { %v798_v26 = vmul.f32 0.6931472, %v2195_v18 }
 0x2d9   :  { %1068 = vperm.xlu0 %2048, %v192_v10   ;;  %v3696_v10 = vpop.permute.xlu1 %1035 }
 0x2dd   :  { %1071 = vperm.xlu0 %2048, %v193_v31   ;;  %v1626_v31 = vld [vmem:[#allocation2 + $0x30] sm:$0xff] }
 0x2e1   :  { %1074 = vperm.xlu0 %2048, %v194_v51  }
 0x2e5   :  { %1077 = vperm.xlu0 %2048, %v195_v13   ;;  %v4482_v13 = vld [vmem:[#allocation21_spill] sm:$0xff] }
 0x2e6   :  { %v1430_v40 = vadd.f32 %v796_v55, %v4482_v13  ;;  %v200_v55 = vld [vmem:[%s4306_s1 + $0x1e0] sm:$0xff] }
 0x2e8   :  { %v1251_v51 = vpop.xlane.xlu0 %1250 }
 0x2e9   :  { %v1493_v49 = vsub.f32 %v1429_v3, %v1251_v51  ;;  %1080 = vperm.xlu0 %2048, %v196_v47   ;;  %v1431_v47 = vadd.f32 %v798_v26, %v2880_v9  ;;  %v1628_v3 = vld [vmem:[#allocation2 + $0x40] sm:$0xff]  ;;  %v199_v9 = vld [vmem:[%s4306_s1 + $0x1d8] sm:$0xff] }
 0x2eb   :  { %v1690_v8 = vadd.f32 %v1626_v31, %v1493_v49 }
 0x2ec   :  { %v1254_v56 = vpop.xlane.xlu1 %1253 }
 0x2ed   :  { %1755 = vst.msk [vmem:[#allocation2 + $0x30] sm:$0xff] %vm1555_vm1, %v1690_v8  ;;  %v1494_v52 = vsub.f32 %v1430_v40, %v1254_v56  ;;  %1083 = vperm.xlu0 %2048, %v197_v15   ;;  %v2315_v8 = vld [vmem:[%s4305_s0 + $0x48] sm:$0xff]  ;;  %v2317_v15 = vld [vmem:[%s4305_s0 + $0x58] sm:$0xff] }
 0x2ef   :  { %v1691_v6 = vadd.f32 %v1627_v62, %v1494_v52  ;;  %v201_v52 = vld [vmem:[%s4306_s1 + $0x1e8] sm:$0xff] }
 0x2f0   :  { %v1257_v51 = vpop.xlane.xlu1 %1256  ;;  %v940_v61 = vpop.permute.xlu0 %939 }
 0x2f1   :  { %1756 = vst.msk [vmem:[#allocation2 + $0x38] sm:$0xff] %vm1555_vm1, %v1691_v6  ;;  %v1495_v49 = vsub.f32 %v1431_v47, %v1257_v51  ;;  %vm1112_vm12 = vcmp.eq.s32.totalorder %v3442_v33, %v940_v61  ;;  %1086 = vperm.xlu0 %2048, %v198_v36   ;;  %v1177_v61 = vsel %vm1113_vm11, %v2316_v24, 0.0  ;;  %v2318_v47 = vld [vmem:[%s4305_s0 + $0x60] sm:$0xff]  ;;  %vm1125_vm11 = vcmp.eq.s32.totalorder %v3442_v33, %v3627_v41  ;;  %v2330_v41 = vld [vmem:[%s4305_s0 + $0xb8] sm:$0xff] }
 0x2f2   :  { %v1176_v40 = vsel %vm1112_vm12, %v2315_v8, 0.0  ;;  %v1261_v18 = vsel %vm204_vm0, %v1177_v61, 0.0  ;;  %v2319_v8 = vld [vmem:[%s4305_s0 + $0x68] sm:$0xff] }
 0x2f3   :  { %v1692_v62 = vadd.f32 %v1628_v3, %v1495_v49  ;;  %v1258_v56 = vsel %vm204_vm0, %v1176_v40, 0.0  ;;  %v1179_v3 = vsel %vm1115_vm14, %v2318_v47, 0.0  ;;  %vm1144_vm14 = vcmp.eq.s32.totalorder %v3442_v33, %v3696_v10  ;;  %v2334_v10 = vld [vmem:[%s4305_s0 + $0xc8] sm:$0xff] }
 0x2f4   :  { %1259 = vadd.xlane.f32.xlu1 %v1258_v56  ;;  %v946_v26 = vpop.permute.xlu0 %945  ;;  %v1267_v51 = vsel %vm204_vm0, %v1179_v3, 0.0 }
 0x2f5   :  { %1757 = vst.msk [vmem:[#allocation2 + $0x40] sm:$0xff] %vm1555_vm1, %v1692_v62  ;;  %vm1114_vm13 = vcmp.eq.s32.totalorder %v3442_v33, %v946_v26  ;;  %1089 = vperm.xlu0 %2048, %v199_v9   ;;  %v203_v9 = vld [vmem:[%s4306_s1 + $0x1f8] sm:$0xff]  ;;  %v2320_v26 = vld [vmem:[%s4305_s0 + $0x70] sm:$0xff] }
 0x2f6   :  { %v1178_v13 = vsel %vm1114_vm13, %v2317_v15, 0.0  ;;  %v1181_v24 = vsel %vm1117_vm2, %v2320_v26, 0.0  ;;  %vm1127_vm13 = vcmp.eq.s32.totalorder %v3442_v33, %v3632_v57  ;;  %v2332_v57 = vld [vmem:[%s4305_s0 + $0x138] sm:$0xff] }
 0x2f7   :  { %v1264_v36 = vsel %vm204_vm0, %v1178_v13, 0.0  ;;  %v1273_v61 = vsel %vm204_vm0, %v1181_v24, 0.0  ;;  %v2322_v13 = vld [vmem:[%s4305_s0 + $0x80] sm:$0xff] }
 0x2f8   :  { %1262 = vadd.xlane.f32.xlu1 %v1261_v18  ;;  %v952_v31 = vpop.permute.xlu0 %951 }
 0x2f9   :  { %1092 = vperm.xlu0 %2048, %v200_v55   ;;  %vm1116_vm15 = vcmp.eq.s32.totalorder %v3442_v33, %v952_v31 }
 0x2fa   :  { %v1180_v40 = vsel %vm1116_vm15, %v2319_v8, 0.0 }
 0x2fb   :  { %v1270_v62 = vsel %vm204_vm0, %v1180_v40, 0.0  ;;  %v2325_v40 = vld [vmem:[%s4305_s0 + $0x98] sm:$0xff] }
 0x2fc   :  { %1265 = vadd.xlane.f32.xlu1 %v1264_v36  ;;  %v958_v6 = vpop.permute.xlu0 %957 }
 0x2fd   :  { %1095 = vperm.xlu0 %2048, %v201_v52   ;;  %vm1118_vm3 = vcmp.eq.s32.totalorder %v3442_v33, %v958_v6  ;;  %v1183_v52 = vsel %vm1119_vm4, %v2322_v13, 0.0  ;;  %v2323_v6 = vld [vmem:[%s4305_s0 + $0x88] sm:$0xff] }
 0x2fe   :  { %v1182_v55 = vsel %vm1118_vm3, %v2321_v50, 0.0  ;;  %v1279_v36 = vsel %vm204_vm0, %v1183_v52, 0.0  ;;  %vm1129_vm3 = vcmp.eq.s32.totalorder %v3442_v33, %v3640_v25  ;;  %v2336_v25 = vld [vmem:[%s4305_s0 + $0x158] sm:$0xff] }
 0x2ff   :  { %v1276_v31 = vsel %vm204_vm0, %v1182_v55, 0.0 }
 0x300   :  { %1268 = vadd.xlane.f32.xlu1 %v1267_v51  ;;  %v964_v49 = vpop.permute.xlu0 %963  ;;  %v2324_v51 = vld [vmem:[%s4305_s0 + $0x90] sm:$0xff] }
 0x301   :  { %1098 = vperm.xlu0 %2048, %v202_v27   ;;  %vm1120_vm5 = vcmp.eq.s32.totalorder %v3442_v33, %v964_v49  ;;  %v1185_v49 = vsel %vm1121_vm6, %v2324_v51, 0.0  ;;  %vm1131_vm6 = vcmp.eq.s32.totalorder %v3442_v33, %v3645_v43 }
 0x302   :  { %v1184_v47 = vsel %vm1120_vm5, %v2323_v6, 0.0  ;;  %v1285_v8 = vsel %vm204_vm0, %v1185_v49, 0.0 }
 0x303   :  { %v1282_v3 = vsel %vm204_vm0, %v1184_v47, 0.0 }
 0x304   :  { %1271 = vadd.xlane.f32.xlu1 %v1270_v62  ;;  %v970_v56 = vpop.permute.xlu0 %969 }
 0x305   :  { %1101 = vperm.xlu0 %2048, %v203_v9   ;;  %vm1122_vm7 = vcmp.eq.s32.totalorder %v3442_v33, %v970_v56  ;;  %v2326_v56 = vld [vmem:[%s4305_s0 + $0xa0] sm:$0xff] }
 0x306   :  { %v1186_v9 = vsel %vm1122_vm7, %v2325_v40, 0.0  ;;  %v1187_v24 = vsel %vm1123_vm8, %v2326_v56, 0.0 }
 0x307   :  { %v1288_v62 = vsel %vm204_vm0, %v1186_v9, 0.0 }
 0x308   :  { %1274 = vadd.xlane.f32.xlu1 %v1273_v61  ;;  %v976_v18 = vpop.permute.xlu0 %975  ;;  %v1291_v61 = vsel %vm204_vm0, %v1187_v24, 0.0  ;;  %v2333_v24 = vld [vmem:[%s4305_s0 + $0x148] sm:$0xff] }
 0x309   :  { %vm1124_vm10 = vcmp.eq.s32.totalorder %v3442_v33, %v976_v18 }
 0x30a   :  { %v1188_v50 = vsel %vm1124_vm10, %v2327_v29, 0.0  ;;  %vm1135_vm10 = vcmp.eq.s32.totalorder %v3442_v33, %v3658_v0 }
 0x30b   :  { %v1294_v18 = vsel %vm204_vm0, %v1188_v50, 0.0 }
 0x30c   :  { %1277 = vadd.xlane.f32.xlu1 %v1276_v31  ;;  %v982_v15 = vpop.permute.xlu0 %981  ;;  %v2328_v31 = vld [vmem:[%s4305_s0 + $0xf0] sm:$0xff] }
 0x30d   :  { %v1197_v13 = vsel %vm1133_vm9, %v2328_v31, 0.0  ;;  %vm1126_vm12 = vcmp.eq.s32.totalorder %v3442_v33, %v982_v15  ;;  %v2331_v15 = vld [vmem:[%s4305_s0 + $0xc0] sm:$0xff] }
 0x30e   :  { %v1321_v44 = vsel %vm204_vm0, %v1197_v13, 0.0  ;;  %v1191_v40 = vsel %vm1127_vm13, %v2331_v15, 0.0  ;;  %v2338_v15 = vld [vmem:[%s4305_s0 + $0xe0] sm:$0xff]  ;;  %vm1137_vm13 = vcmp.eq.s32.totalorder %v3442_v33, %v3666_v39 }
 0x310   :  { %1280 = vadd.xlane.f32.xlu1 %v1279_v36  ;;  %v988_v45 = vpop.permute.xlu0 %987  ;;  %v2329_v36 = vld [vmem:[%s4305_s0 + $0xb0] sm:$0xff] }
 0x311   :  { %v1189_v6 = vsel %vm1125_vm11, %v2329_v36, 0.0  ;;  %vm1128_vm15 = vcmp.eq.s32.totalorder %v3442_v33, %v988_v45 }
 0x312   :  { %v1297_v47 = vsel %vm204_vm0, %v1189_v6, 0.0  ;;  %v1192_v45 = vsel %vm1128_vm15, %v2334_v10, 0.0  ;;  %v2341_v10 = vld [vmem:[%s4305_s0 + $0xf8] sm:$0xff] }
 0x313   :  { %v1306_v50 = vsel %vm204_vm0, %v1192_v45, 0.0 }
 0x314   :  { %1283 = vadd.xlane.f32.xlu1 %v1282_v3  ;;  %v3775_v27 = vpop.permute.xlu0 %993  ;;  %v1190_v3 = vsel %vm1126_vm12, %v2330_v41, 0.0  ;;  %v2337_v41 = vld [vmem:[%s4305_s0 + $0xd8] sm:$0xff] }
 0x315   :  { %v1300_v49 = vsel %vm204_vm0, %v1190_v3, 0.0  ;;  %vm1130_vm4 = vcmp.eq.s32.totalorder %v3442_v33, %v3775_v27 }
 0x316   :  { %v1194_v3 = vsel %vm1130_vm4, %v2337_v41, 0.0  ;;  %vm1140_vm4 = vcmp.eq.s32.totalorder %v3442_v33, %v3672_v37 }
 0x317   :  { %v1312_v27 = vsel %vm204_vm0, %v1194_v3, 0.0  ;;  %v2345_v3 = vld [vmem:[%s4305_s0 + $0x188] sm:$0xff] }
 0x318   :  { %1286 = vadd.xlane.f32.xlu1 %v1285_v8  ;;  %v3785_v14 = vpop.permute.xlu0 %999 }
 0x319   :  { %vm1132_vm7 = vcmp.eq.s32.totalorder %v3442_v33, %v3785_v14 }
 0x31c   :  { %1289 = vadd.xlane.f32.xlu1 %v1288_v62  ;;  %v3790_v26 = vpop.permute.xlu0 %1005  ;;  %v1303_v62 = vsel %vm204_vm0, %v1191_v40, 0.0  ;;  %v1195_v40 = vsel %vm1131_vm6, %v2338_v15, 0.0  ;;  %v2346_v15 = vld [vmem:[%s4305_s0 + $0x110] sm:$0xff] }
 0x31d   :  { %v1315_v43 = vsel %vm204_vm0, %v1195_v40, 0.0  ;;  %vm1134_vm9 = vcmp.eq.s32.totalorder %v3442_v33, %v3790_v26  ;;  %v1201_v40 = vsel %vm1137_vm13, %v2346_v15, 0.0 }
 0x31e   :  { %v1198_v45 = vsel %vm1134_vm9, %v2341_v10, 0.0  ;;  %v1333_v39 = vsel %vm204_vm0, %v1201_v40, 0.0  ;;  %v2349_v10 = vld [vmem:[%s4305_s0 + $0x120] sm:$0xff]  ;;  %v2355_v40 = vld [vmem:[%s4305_s0 + $0x150] sm:$0xff] }
 0x31f   :  { %v1324_v26 = vsel %vm204_vm0, %v1198_v45, 0.0 }
 0x320   :  { %1292 = vadd.xlane.f32.xlu1 %v1291_v61  ;;  %v3802_v55 = vpop.permute.xlu0 %1011  ;;  %v1208_v61 = vsel %vm1144_vm14, %v2333_v24, 0.0 }
 0x321   :  { %v1354_v31 = vsel %vm204_vm0, %v1208_v61, 0.0  ;;  %vm1136_vm12 = vcmp.eq.s32.totalorder %v3442_v33, %v3802_v55 }
 0x324   :  { %1322 = vadd.xlane.f32.xlu0 %v1321_v44  ;;  %1295 = vadd.xlane.f32.xlu1 %v1294_v18  ;;  %v3811_v52 = vpop.permute.xlu0 %1017  ;;  %v2335_v44 = vld [vmem:[%s4305_s0 + $0xd0] sm:$0xff] }
 0x325   :  { %v1193_v18 = vsel %vm1129_vm3, %v2335_v44, 0.0  ;;  %vm1138_vm15 = vcmp.eq.s32.totalorder %v3442_v33, %v3811_v52 }
 0x326   :  { %v1309_v6 = vsel %vm204_vm0, %v1193_v18, 0.0 }
 0x328   :  { %1298 = vadd.xlane.f32.xlu1 %v1297_v47  ;;  %v3821_v51 = vpop.permute.xlu0 %1020 }
 0x32c   :  { %1301 = vadd.xlane.f32.xlu1 %v1300_v49  ;;  %v1030_v8 = vpop.permute.xlu0 %1029 }
 0x32d   :  { %vm1142_vm2 = vcmp.eq.s32.totalorder %v3442_v33, %v1030_v8 }
 0x32e   :  { %v1206_v9 = vsel %vm1142_vm2, %v2332_v57, 0.0  ;;  %v2339_v57 = vld [vmem:[%s4305_s0 + $0x168] sm:$0xff]  ;;  %vm1139_vm2 = vcmp.eq.s32.totalorder %v3442_v33, %v3821_v51 }
 0x32f   :  { %v1348_v56 = vsel %vm204_vm0, %v1206_v9, 0.0  ;;  %v1203_v45 = vsel %vm1139_vm2, %v2349_v10, 0.0  ;;  %v2358_v10 = vld [vmem:[%s4305_s0 + $0x170] sm:$0xff] }
 0x330   :  { %1304 = vadd.xlane.f32.xlu1 %v1303_v62  ;;  %1349 = vadd.xlane.f32.xlu0 %v1348_v56  ;;  %v3844_v29 = vpop.permute.xlu0 %1038  ;;  %v2340_v56 = vld [vmem:[%s4305_s0 + $0xe8] sm:$0xff]  ;;  %v1339_v51 = vsel %vm204_vm0, %v1203_v45, 0.0 }
 0x331   :  { %v1196_v24 = vsel %vm1132_vm7, %v2340_v56, 0.0  ;;  %v2348_v56 = vld [vmem:[%s4305_s0 + $0x198] sm:$0xff]  ;;  %vm1143_vm7 = vcmp.eq.s32.totalorder %v3442_v33, %v3687_v60 }
 0x332   :  { %v1318_v14 = vsel %vm204_vm0, %v1196_v24, 0.0 }
 0x334   :  { %1307 = vadd.xlane.f32.xlu1 %v1306_v50  ;;  %1355 = vadd.xlane.f32.xlu0 %v1354_v31  ;;  %v1042_v13 = vpop.permute.xlu0 %1041  ;;  %v2342_v31 = vld [vmem:[%s4305_s0 + $0x178] sm:$0xff] }
 0x335   :  { %vm1146_vm5 = vcmp.eq.s32.totalorder %v3442_v33, %v1042_v13 }
 0x336   :  { %v1210_v36 = vsel %vm1146_vm5, %v2336_v25, 0.0  ;;  %v2343_v25 = vld [vmem:[%s4305_s0 + $0x100] sm:$0xff]  ;;  %vm1141_vm5 = vcmp.eq.s32.totalorder %v3442_v33, %v3681_v58 }
 0x337   :  { %v1360_v47 = vsel %vm204_vm0, %v1210_v36, 0.0  ;;  %v1199_v0 = vsel %vm1135_vm10, %v2343_v25, 0.0 }
 0x338   :  { %1310 = vadd.xlane.f32.xlu1 %v1309_v6  ;;  %1361 = vadd.xlane.f32.xlu0 %v1360_v47  ;;  %v3864_v49 = vpop.permute.xlu0 %1044  ;;  %v1327_v36 = vsel %vm204_vm0, %v1199_v0, 0.0  ;;  %v2344_v6 = vld [vmem:[%s4305_s0 + $0x108] sm:$0xff] }
 0x339   :  { %v1200_v47 = vsel %vm1136_vm12, %v2344_v6, 0.0  ;;  %vm1147_vm10 = vcmp.eq.s32.totalorder %v3442_v33, %v3864_v49 }
 0x33a   :  { %v1330_v55 = vsel %vm204_vm0, %v1200_v47, 0.0 }
 0x33c   :  { %1313 = vadd.xlane.f32.xlu1 %v1312_v27  ;;  %v1048_v8 = vpop.permute.xlu0 %1047 }
 0x33d   :  { %vm1148_vm8 = vcmp.eq.s32.totalorder %v3442_v33, %v1048_v8 }
 0x33e   :  { %v1212_v9 = vsel %vm1148_vm8, %v2339_v57, 0.0  ;;  %vm1145_vm8 = vcmp.eq.s32.totalorder %v3442_v33, %v3844_v29 }
 0x33f   :  { %v1366_v62 = vsel %vm204_vm0, %v1212_v9, 0.0  ;;  %v2347_v9 = vld [vmem:[%s4305_s0 + $0x118] sm:$0xff] }
 0x340   :  { %1316 = vadd.xlane.f32.xlu1 %v1315_v43  ;;  %1367 = vadd.xlane.f32.xlu0 %v1366_v62  ;;  %v3883_v61 = vpop.permute.xlu0 %1050  ;;  %v1202_v43 = vsel %vm1138_vm15, %v2347_v9, 0.0 }
 0x341   :  { %v1336_v52 = vsel %vm204_vm0, %v1202_v43, 0.0  ;;  %v2356_v43 = vld [vmem:[%s4305_s0 + $0x160] sm:$0xff] }
 0x344   :  { %1319 = vadd.xlane.f32.xlu1 %v1318_v14  ;;  %v1054_v50 = vpop.permute.xlu0 %1053 }
 0x345   :  { %vm1150_vm11 = vcmp.eq.s32.totalorder %v3442_v33, %v1054_v50 }
 0x346   :  { %v1214_v13 = vsel %vm1150_vm11, %v2342_v31, 0.0  ;;  %v2350_v31 = vld [vmem:[%s4305_s0 + $0x128] sm:$0xff]  ;;  %vm1149_vm11 = vcmp.eq.s32.totalorder %v3442_v33, %v3883_v61 }
 0x347   :  { %v1372_v44 = vsel %vm204_vm0, %v1214_v13, 0.0  ;;  %v1204_v13 = vsel %vm1140_vm4, %v2350_v31, 0.0  ;;  %v1213_v45 = vsel %vm1149_vm11, %v2358_v10, 0.0 }
 0x348   :  { %1325 = vadd.xlane.f32.xlu1 %v1324_v26  ;;  %1373 = vadd.xlane.f32.xlu0 %v1372_v44  ;;  %v3899_v18 = vpop.permute.xlu0 %1056  ;;  %v2351_v44 = vld [vmem:[%s4305_s0 + $0x1a8] sm:$0xff]  ;;  %v1342_v37 = vsel %vm204_vm0, %v1204_v13, 0.0  ;;  %v1369_v16 = vsel %vm204_vm0, %v1213_v45, 0.0  ;;  %v2366_v45 = vld [vmem:[%s4305_s0 + $0x1f8] sm:$0xff] }
 0x349   :  { %vm1151_vm13 = vcmp.eq.s32.totalorder %v3442_v33, %v3899_v18  ;;  %v2360_v18 = vld [vmem:[%s4305_s0 + $0x1d8] sm:$0xff] }
 0x34c   :  { %1328 = vadd.xlane.f32.xlu1 %v1327_v36  ;;  %v1060_v41 = vpop.permute.xlu0 %1059  ;;  %v2352_v36 = vld [vmem:[%s4305_s0 + $0x130] sm:$0xff] }
 0x34d   :  { %vm1152_vm14 = vcmp.eq.s32.totalorder %v3442_v33, %v1060_v41  ;;  %v1205_v6 = vsel %vm1141_vm5, %v2352_v36, 0.0  ;;  %v2353_v41 = vld [vmem:[%s4305_s0 + $0x140] sm:$0xff] }
 0x34e   :  { %v1216_v27 = vsel %vm1152_vm14, %v2345_v3, 0.0  ;;  %v1345_v58 = vsel %vm204_vm0, %v1205_v6, 0.0  ;;  %v1207_v3 = vsel %vm1143_vm7, %v2353_v41, 0.0  ;;  %v2362_v36 = vld [vmem:[%s4305_s0 + $0x1a0] sm:$0xff] }
 0x34f   :  { %v1378_v8 = vsel %vm204_vm0, %v1216_v27, 0.0  ;;  %v1351_v60 = vsel %vm204_vm0, %v1207_v3, 0.0 }
 0x350   :  { %1331 = vadd.xlane.f32.xlu1 %v1330_v55  ;;  %1379 = vadd.xlane.f32.xlu0 %v1378_v8  ;;  %v3921_v57 = vpop.permute.xlu0 %1062  ;;  %v2354_v55 = vld [vmem:[%s4305_s0 + $0x1b8] sm:$0xff] }
 0x351   :  { %vm1153_vm14 = vcmp.eq.s32.totalorder %v3442_v33, %v3921_v57 }
 0x354   :  { %1334 = vadd.xlane.f32.xlu1 %v1333_v39  ;;  %v1066_v62 = vpop.permute.xlu0 %1065  ;;  %v1209_v39 = vsel %vm1145_vm8, %v2355_v40, 0.0 }
 0x355   :  { %vm1154_vm3 = vcmp.eq.s32.totalorder %v3442_v33, %v1066_v62  ;;  %v1357_v29 = vsel %vm204_vm0, %v1209_v39, 0.0  ;;  %v1211_v62 = vsel %vm1147_vm10, %v2356_v43, 0.0 }
 0x356   :  { %v1218_v24 = vsel %vm1154_vm3, %v2348_v56, 0.0  ;;  %v1363_v49 = vsel %vm204_vm0, %v1211_v62, 0.0 }
 0x357   :  { %v1384_v14 = vsel %vm204_vm0, %v1218_v24, 0.0  ;;  %v2357_v24 = vld [vmem:[%s4305_s0 + $0x1c8] sm:$0xff] }
 0x358   :  { %1337 = vadd.xlane.f32.xlu1 %v1336_v52  ;;  %1385 = vadd.xlane.f32.xlu0 %v1384_v14  ;;  %v3940_v50 = vpop.permute.xlu0 %1068 }
 0x359   :  { %vm1155_vm2 = vcmp.eq.s32.totalorder %v3442_v33, %v3940_v50 }
 0x35a   :  { %v1219_v6 = vsel %vm1155_vm2, %v2362_v36, 0.0 }
 0x35c   :  { %1340 = vadd.xlane.f32.xlu1 %v1339_v51  ;;  %v1072_v26 = vpop.permute.xlu0 %1071  ;;  %v2359_v51 = vld [vmem:[%s4305_s0 + $0x180] sm:$0xff] }
 0x35d   :  { %vm1156_vm6 = vcmp.eq.s32.totalorder %v3442_v33, %v1072_v26  ;;  %v1215_v31 = vsel %vm1151_vm13, %v2359_v51, 0.0 }
 0x35e   :  { %v1220_v25 = vsel %vm1156_vm6, %v2351_v44, 0.0  ;;  %v1375_v28 = vsel %vm204_vm0, %v1215_v31, 0.0 }
 0x35f   :  { %v1390_v0 = vsel %vm204_vm0, %v1220_v25, 0.0  ;;  %v2361_v25 = vld [vmem:[%s4305_s0 + $0x190] sm:$0xff] }
 0x360   :  { %1343 = vadd.xlane.f32.xlu1 %v1342_v37  ;;  %1391 = vadd.xlane.f32.xlu0 %v1390_v0  ;;  %v3959_v47 = vpop.permute.xlu0 %1074  ;;  %v1217_v37 = vsel %vm1153_vm14, %v2361_v25, 0.0  ;;  %v2197_v0 = vpop.eup %2196 }
 0x361   :  { %v1381_v59 = vsel %vm204_vm0, %v1217_v37, 0.0  ;;  %v800_v41 = vmul.f32 0.6931472, %v2197_v0  ;;  %v2199_v3 = vpop.eup %2198  ;;  %vm1157_vm3 = vcmp.eq.s32.totalorder %v3442_v33, %v3959_v47 }
 0x362   :  { %v802_v40 = vmul.f32 0.6931472, %v2199_v3  ;;  %v2201_v39 = vpop.eup %2200 }
 0x363   :  { %v2203_v10 = vpop.eup %2202 }
 0x364   :  { %1346 = vadd.xlane.f32.xlu1 %v1345_v58  ;;  %v1078_v27 = vpop.permute.xlu0 %1077 }
 0x365   :  { %vm1158_vm9 = vcmp.eq.s32.totalorder %v3442_v33, %v1078_v27  ;;  %v1387_v27 = vsel %vm204_vm0, %v1219_v6, 0.0 }
 0x366   :  { %v1222_v8 = vsel %vm1158_vm9, %v2354_v55, 0.0 }
 0x367   :  { %v1396_v15 = vsel %vm204_vm0, %v1222_v8, 0.0  ;;  %v2364_v8 = vld [vmem:[%s4305_s0 + $0x1b0] sm:$0xff] }
 0x368   :  { %1352 = vadd.xlane.f32.xlu1 %v1351_v60  ;;  %1397 = vadd.xlane.f32.xlu0 %v1396_v15  ;;  %v3978_v9 = vpop.permute.xlu0 %1080  ;;  %v1221_v60 = vsel %vm1157_vm3, %v2364_v8, 0.0  ;;  %v1432_v15 = vadd.f32 %v800_v41, %v2883_v1  ;;  %v1632_v41 = vld [vmem:[#allocation2 + $0x60] sm:$0xff] }
 0x369   :  { %vm1159_vm5 = vcmp.eq.s32.totalorder %v3442_v33, %v3978_v9  ;;  %v1393_v62 = vsel %vm204_vm0, %v1221_v60, 0.0  ;;  %v1633_v60 = vld [vmem:[#allocation2 + $0x68] sm:$0xff] }
 0x36c   :  { %1358 = vadd.xlane.f32.xlu1 %v1357_v29  ;;  %v1084_v56 = vpop.permute.xlu0 %1083 }
 0x36d   :  { %vm1160_vm12 = vcmp.eq.s32.totalorder %v3442_v33, %v1084_v56  ;;  %v2365_v56 = vld [vmem:[%s4305_s0 + $0x1c0] sm:$0xff] }
 0x36e   :  { %v1224_v52 = vsel %vm1160_vm12, %v2357_v24, 0.0  ;;  %v1223_v24 = vsel %vm1159_vm5, %v2365_v56, 0.0 }
 0x36f   :  { %v1402_v14 = vsel %vm204_vm0, %v1224_v52, 0.0 }
 0x370   :  { %1364 = vadd.xlane.f32.xlu1 %v1363_v49  ;;  %1403 = vadd.xlane.f32.xlu0 %v1402_v14  ;;  %v3998_v61 = vpop.permute.xlu0 %1086  ;;  %v1433_v49 = vadd.f32 %v802_v40, %v2890_v5  ;;  %v804_v14 = vmul.f32 0.6931472, %v2201_v39  ;;  %v1399_v5 = vsel %vm204_vm0, %v1223_v24, 0.0 }
 0x371   :  { %vm1161_vm6 = vcmp.eq.s32.totalorder %v3442_v33, %v3998_v61  ;;  %v2367_v61 = vld [vmem:[%s4305_s0 + $0x1d0] sm:$0xff] }
 0x374   :  { %1370 = vadd.xlane.f32.xlu1 %v1369_v16  ;;  %v1090_v13 = vpop.permute.xlu0 %1089 }
 0x375   :  { %vm1162_vm15 = vcmp.eq.s32.totalorder %v3442_v33, %v1090_v13  ;;  %v1225_v13 = vsel %vm1161_vm6, %v2367_v61, 0.0 }
 0x376   :  { %v1226_v26 = vsel %vm1162_vm15, %v2360_v18, 0.0  ;;  %v1405_v0 = vsel %vm204_vm0, %v1225_v13, 0.0 }
 0x377   :  { %v1408_v44 = vsel %vm204_vm0, %v1226_v26, 0.0  ;;  %v1434_v26 = vadd.f32 %v804_v14, %v2893_v30 }
 0x378   :  { %1376 = vadd.xlane.f32.xlu1 %v1375_v28  ;;  %1409 = vadd.xlane.f32.xlu0 %v1408_v44  ;;  %v4019_v57 = vpop.permute.xlu0 %1092  ;;  %v806_v28 = vmul.f32 0.6931472, %v2203_v10  ;;  %v2205_v44 = vpop.eup %2204 }
 0x379   :  { %vm1163_vm8 = vcmp.eq.s32.totalorder %v3442_v33, %v4019_v57  ;;  %v2207_v57 = vpop.eup %2206 }
 0x37a   :  { %v1435_v6 = vadd.f32 %v806_v28, %v2900_v12  ;;  %v810_v8 = vmul.f32 0.6931472, %v2207_v57  ;;  %v1638_v28 = vld [vmem:[#allocation2 + $0x90] sm:$0xff] }
 0x37c   :  { %1382 = vadd.xlane.f32.xlu1 %v1381_v59  ;;  %v1096_v58 = vpop.permute.xlu0 %1095  ;;  %v2368_v59 = vld [vmem:[%s4305_s0 + $0x1e0] sm:$0xff]  ;;  %v1437_v39 = vadd.f32 %v810_v8, %v2910_v17 }
 0x37d   :  { %vm1164_vm4 = vcmp.eq.s32.totalorder %v3442_v33, %v1096_v58  ;;  %v1227_v36 = vsel %vm1163_vm8, %v2368_v59, 0.0  ;;  %v808_v58 = vmul.f32 0.6931472, %v2205_v44 }
 0x37e   :  { %v1228_v50 = vsel %vm1164_vm4, %v2363_v20, 0.0  ;;  %v1411_v20 = vsel %vm204_vm0, %v1227_v36, 0.0  ;;  %v4483_v36 = vld [vmem:[#allocation16_spill] sm:$0xff] }
 0x37f   :  { %v1414_v55 = vsel %vm204_vm0, %v1228_v50, 0.0  ;;  %v2369_v50 = vld [vmem:[%s4305_s0 + $0x1f0] sm:$0xff]  ;;  %v1436_v12 = vadd.f32 %v808_v58, %v2903_v2  ;;  %2228 = vlog2.f32 %v4483_v36  ;;  %v1817_v58 = vld [vmem:[#allocation2 + $0x8] sm:$0xff] }
 0x380   :  { %1388 = vadd.xlane.f32.xlu1 %v1387_v27  ;;  %1415 = vadd.xlane.f32.xlu0 %v1414_v55  ;;  %v1099_v47 = vpop.permute.xlu0 %1098 }
 0x381   :  { %v1260_v29 = vpop.xlane.xlu1 %1259  ;;  %vm1165_vm9 = vcmp.eq.s32.totalorder %v3442_v33, %v1099_v47 }
 0x382   :  { %v1496_v43 = vsub.f32 %v1432_v15, %v1260_v29  ;;  %v1229_v27 = vsel %vm1165_vm9, %v2369_v50, 0.0  ;;  %v1818_v50 = vld [vmem:[#allocation2 + $0x10] sm:$0xff] }
 0x383   :  { %v1417_v19 = vsel %vm204_vm0, %v1229_v27, 0.0  ;;  %v1640_v27 = vld [vmem:[#allocation2 + $0xa0] sm:$0xff] }
 0x384   :  { %v1693_v52 = vadd.f32 %v1629_v23, %v1496_v43  ;;  %1394 = vadd.xlane.f32.xlu1 %v1393_v62  ;;  %v1102_v1 = vpop.permute.xlu0 %1101  ;;  %v1634_v43 = vld [vmem:[#allocation2 + $0x70] sm:$0xff] }
 0x385   :  { %vm1166_vm7 = vcmp.eq.s32.totalorder %v3442_v33, %v1102_v1  ;;  %v1263_v9 = vpop.xlane.xlu1 %1262  ;;  %v2209_v33 = vpop.eup %2208  ;;  %v1635_v1 = vld [vmem:[#allocation2 + $0x78] sm:$0xff] }
 0x386   :  { %1758 = vst.msk [vmem:[#allocation2 + $0x48] sm:$0xff] %vm1555_vm1, %v1693_v52  ;;  %v1230_v16 = vsel %vm1166_vm7, %v2366_v45, 0.0  ;;  %v1497_v51 = vsub.f32 %v1433_v49, %v1263_v9  ;;  %v812_v23 = vmul.f32 0.6931472, %v2209_v33  ;;  %v2211_v29 = vpop.eup %2210  ;;  %v1636_v45 = vld [vmem:[#allocation2 + $0x80] sm:$0xff]  ;;  %v1881_v33 = vsel %vm1555_vm1, %v1817_v58, 0.0 }
 0x387   :  { %v1420_v31 = vsel %vm204_vm0, %v1230_v16, 0.0  ;;  %v814_v52 = vmul.f32 0.6931472, %v2211_v29  ;;  %v2213_v42 = vpop.eup %2212  ;;  %v4489_v29 = vld [vmem:[#allocation32_spill] sm:$0xff]  ;;  %v1643_v58 = vld [vmem:[#allocation2 + $0xb8] sm:$0xff] }
 0x388   :  { %v1694_v18 = vadd.f32 %v1630_v35, %v1497_v51  ;;  %1400 = vadd.xlane.f32.xlu1 %v1399_v5  ;;  %1421 = vadd.xlane.f32.xlu0 %v1420_v31  ;;  %v1438_v24 = vadd.f32 %v812_v23, %v2913_v63  ;;  %v816_v35 = vmul.f32 0.6931472, %v2213_v42  ;;  %v2215_v9 = vpop.eup %2214  ;;  %v1650_v42 = vld [vmem:[#allocation2 + $0xf0] sm:$0xff] }
 0x389   :  { %v1266_v25 = vpop.xlane.xlu1 %1265  ;;  %v1439_v10 = vadd.f32 %v814_v52, %v2920_v21  ;;  %v818_v5 = vmul.f32 0.6931472, %v2215_v9  ;;  %v2217_v31 = vpop.eup %2216 }
 0x38a   :  { %1759 = vst.msk [vmem:[#allocation2 + $0x50] sm:$0xff] %vm1555_vm1, %v1694_v18  ;;  %v1498_v37 = vsub.f32 %v1434_v26, %v1266_v25  ;;  %v1440_v51 = vadd.f32 %v816_v35, %v2923_v46  ;;  %v820_v18 = vmul.f32 0.6931472, %v2217_v31  ;;  %v2219_v26 = vpop.eup %2218  ;;  %v4491_v35 = vld [vmem:[#allocation72_spill] sm:$0xff] }
 0x38b   :  { %v1441_v4 = vadd.f32 %v818_v5, %v2930_v38  ;;  %v2221_v46 = vpop.eup %2220  ;;  %v822_v34 = vmul.f32 0.6931472, %v2219_v26  ;;  %v4493_v26 = vld [vmem:[#allocation57_spill] sm:$0xff] }
 0x38c   :  { %v1695_v30 = vadd.f32 %v1631_v7, %v1498_v37  ;;  %1406 = vadd.xlane.f32.xlu1 %v1405_v0  ;;  %v1442_v25 = vadd.f32 %v820_v18, %v2933_v32  ;;  %v2223_v37 = vpop.eup %2222  ;;  %v1639_v0 = vld [vmem:[#allocation2 + $0x98] sm:$0xff] }
 0x38d   :  { %v1269_v3 = vpop.xlane.xlu1 %1268  ;;  %v2225_v57 = vpop.eup %2224  ;;  %v4486_v32 = vld [vmem:[#allocation17_spill] sm:$0xff] }
 0x38e   :  { %1760 = vst.msk [vmem:[#allocation2 + $0x58] sm:$0xff] %vm1555_vm1, %v1695_v30  ;;  %v1499_v54 = vsub.f32 %v1435_v6, %v1269_v3  ;;  %v4484_v30 = vld [vmem:[#allocation68_spill] sm:$0xff]  ;;  %v1816_v6 = vld [vmem:[#allocation2] sm:$0xff]  ;;  %v1443_v3 = vadd.f32 %v822_v34, %v4485_v48 }
 0x38f   :  { %2230 = vlog2.f32 %v4484_v30  ;;  %v1880_v8 = vsel %vm1555_vm1, %v1816_v6, 0.0  ;;  %v1824_v6 = vld [vmem:[#allocation2 + $0x40] sm:$0xff] }
 0x390   :  { %v1696_v55 = vadd.f32 %v1632_v41, %v1499_v54  ;;  %1412 = vadd.xlane.f32.xlu1 %v1411_v20  ;;  %v824_v54 = vmul.f32 0.6931472, %v2221_v46  ;;  %v842_v20 = vmul.f32 0.6931472, %v2223_v37  ;;  %2232 = vlog2.f32 %v4486_v32  ;;  %v1825_v32 = vld [vmem:[#allocation2 + $0x48] sm:$0xff] }
 0x391   :  { %v1272_v47 = vpop.xlane.xlu1 %1271 }
 0x392   :  { %1761 = vst.msk [vmem:[#allocation2 + $0x60] sm:$0xff] %vm1555_vm1, %v1696_v55  ;;  %v1500_v15 = vsub.f32 %v1436_v12, %v1272_v47  ;;  %v4487_v12 = vld [vmem:[#allocation70_spill] sm:$0xff]  ;;  %v1819_v47 = vld [vmem:[#allocation2 + $0x18] sm:$0xff] }
 0x393   :  { %2234 = vlog2.f32 %v4487_v12  ;;  %v1895_v12 = vsel %vm1555_vm1, %v1824_v6, 0.0 }
 0x394   :  { %v1697_v40 = vadd.f32 %v1633_v60, %v1500_v15  ;;  %1418 = vadd.xlane.f32.xlu1 %v1417_v19  ;;  %v826_v15 = vmul.f32 0.6931472, %v2225_v57  ;;  %v1883_v19 = vsel %vm1555_vm1, %v1818_v50, 0.0 }
 0x395   :  { %v1275_v62 = vpop.xlane.xlu1 %1274 }
 0x396   :  { %1762 = vst.msk [vmem:[#allocation2 + $0x68] sm:$0xff] %vm1555_vm1, %v1697_v40  ;;  %v1501_v2 = vsub.f32 %v1437_v39, %v1275_v62  ;;  %v4488_v39 = vld [vmem:[#allocation23_spill] sm:$0xff]  ;;  %v2227_v62 = vpop.eup %2226 }
 0x397   :  { %v1444_v23 = vadd.f32 %v824_v54, %v4488_v39  ;;  %v4496_v54 = vld [vmem:[#allocation74_spill] sm:$0xff]  ;;  %v1826_v39 = vld [vmem:[#allocation2 + $0x50] sm:$0xff] }
 0x398   :  { %v1698_v56 = vadd.f32 %v1634_v43, %v1501_v2  ;;  %v1453_v43 = vadd.f32 %v842_v20, %v4489_v29  ;;  %v1882_v2 = vadd.f32 %v1881_v33, %v1880_v8  ;;  %v4497_v33 = vld [vmem:[#allocation26_spill] sm:$0xff] }
 0x399   :  { %v1278_v49 = vpop.xlane.xlu1 %1277 }
 0x39a   :  { %1763 = vst.msk [vmem:[#allocation2 + $0x70] sm:$0xff] %vm1555_vm1, %v1698_v56  ;;  %v1502_v14 = vsub.f32 %v1438_v24, %v1278_v49  ;;  %v1820_v56 = vld [vmem:[#allocation2 + $0x20] sm:$0xff]  ;;  %v1641_v24 = vld [vmem:[#allocation2 + $0xa8] sm:$0xff]  ;;  %v4490_v49 = vld [vmem:[#allocation56_spill] sm:$0xff]  ;;  %v1884_v9 = vadd.f32 %v1883_v19, %v1882_v2 }
 0x39b   :  { %2236 = vlog2.f32 %v4490_v49  ;;  %v4499_v2 = vld [vmem:[#allocation59_spill] sm:$0xff] }
 0x39c   :  { %v1699_v17 = vadd.f32 %v1635_v1, %v1502_v14  ;;  %v1885_v14 = vsel %vm1555_vm1, %v1819_v47, 0.0  ;;  %2238 = vlog2.f32 %v4491_v35  ;;  %v4498_v47 = vld [vmem:[#allocation41_spill] sm:$0xff]  ;;  %v4500_v49 = vld [vmem:[#allocation27_spill] sm:$0xff] }
 0x39d   :  { %v1281_v16 = vpop.xlane.xlu1 %1280  ;;  %2240 = vlog2.f32 %v4493_v26 }
 0x39e   :  { %1764 = vst.msk [vmem:[#allocation2 + $0x78] sm:$0xff] %vm1555_vm1, %v1699_v17  ;;  %v1503_v63 = vsub.f32 %v1439_v10, %v1281_v16  ;;  %v4492_v16 = vld [vmem:[#allocation24_spill] sm:$0xff] }
 0x3a0   :  { %v1700_v22 = vadd.f32 %v1636_v45, %v1503_v63  ;;  %v1821_v45 = vld [vmem:[#allocation2 + $0x28] sm:$0xff]  ;;  %v1445_v63 = vadd.f32 %v826_v15, %v4492_v16 }
 0x3a1   :  { %v1284_v61 = vpop.xlane.xlu1 %1283 }
 0x3a2   :  { %1765 = vst.msk [vmem:[#allocation2 + $0x80] sm:$0xff] %vm1555_vm1, %v1700_v22  ;;  %v1504_v21 = vsub.f32 %v1440_v51, %v1284_v61  ;;  %v2229_v22 = vpop.eup %2228  ;;  %v1887_v51 = vsel %vm1555_vm1, %v1820_v56, 0.0  ;;  %v1897_v56 = vsel %vm1555_vm1, %v1825_v32, 0.0 }
 0x3a3   :  { %v2231_v61 = vpop.eup %2230 }
 0x3a4   :  { %v1701_v13 = vadd.f32 %v1637_v11, %v1504_v21  ;;  %v828_v11 = vmul.f32 0.6931472, %v2227_v62  ;;  %v1886_v21 = vadd.f32 %v1885_v14, %v1884_v9 }
 0x3a5   :  { %v1287_v44 = vpop.xlane.xlu1 %1286 }
 0x3a6   :  { %1766 = vst.msk [vmem:[#allocation2 + $0x88] sm:$0xff] %vm1555_vm1, %v1701_v13  ;;  %v1505_v53 = vsub.f32 %v1441_v4, %v1287_v44  ;;  %v1822_v13 = vld [vmem:[#allocation2 + $0x30] sm:$0xff]  ;;  %v1888_v46 = vadd.f32 %v1887_v51, %v1886_v21 }
 0x3a7   :  { %v1642_v4 = vld [vmem:[#allocation2 + $0xb0] sm:$0xff]  ;;  %v1891_v37 = vsel %vm1555_vm1, %v1822_v13, 0.0 }
 0x3a8   :  { %v1702_v7 = vadd.f32 %v1638_v28, %v1505_v53  ;;  %v1889_v28 = vsel %vm1555_vm1, %v1821_v45, 0.0  ;;  %v2233_v53 = vpop.eup %2232  ;;  %v1899_v45 = vsel %vm1555_vm1, %v1826_v39, 0.0  ;;  %v4502_v13 = vld [vmem:[#allocation60_spill] sm:$0xff] }
 0x3a9   :  { %v1290_v59 = vpop.xlane.xlu1 %1289  ;;  %v2235_v34 = vpop.eup %2234  ;;  %v1890_v30 = vadd.f32 %v1889_v28, %v1888_v46  ;;  %v832_v50 = vmul.f32 0.6931472, %v2233_v53  ;;  %v4503_v28 = vld [vmem:[#allocation76_spill] sm:$0xff]  ;;  %v1829_v53 = vld [vmem:[#allocation2 + $0x68] sm:$0xff] }
 0x3aa   :  { %1767 = vst.msk [vmem:[#allocation2 + $0x90] sm:$0xff] %vm1555_vm1, %v1702_v7  ;;  %v1506_v38 = vsub.f32 %v1442_v25, %v1290_v59  ;;  %v1823_v7 = vld [vmem:[#allocation2 + $0x38] sm:$0xff]  ;;  %v830_v25 = vmul.f32 0.6931472, %v2229_v22  ;;  %v4504_v46 = vld [vmem:[#allocation28_spill] sm:$0xff] }
 0x3ab   :  { %v4494_v59 = vld [vmem:[#allocation25_spill] sm:$0xff]  ;;  %v1893_v48 = vsel %vm1555_vm1, %v1823_v7, 0.0  ;;  %v1892_v20 = vadd.f32 %v1891_v37, %v1890_v30  ;;  %v1448_v14 = vadd.f32 %v832_v50, %v4500_v49 }
 0x3ac   :  { %v1703_v41 = vadd.f32 %v1639_v0, %v1506_v38  ;;  %v1446_v36 = vadd.f32 %v828_v11, %v4494_v59  ;;  %v860_v38 = vmul.f32 0.6931472, %v2231_v61  ;;  %v1661_v61 = vld [vmem:[#allocation2 + $0x148] sm:$0xff] }
 0x3ad   :  { %v1293_v55 = vpop.xlane.xlu1 %1292 }
 0x3ae   :  { %1768 = vst.msk [vmem:[#allocation2 + $0x98] sm:$0xff] %vm1555_vm1, %v1703_v41  ;;  %v1507_v60 = vsub.f32 %v1443_v3, %v1293_v55  ;;  %v4495_v41 = vld [vmem:[#allocation58_spill] sm:$0xff]  ;;  %v2237_v55 = vpop.eup %2236  ;;  %v1462_v15 = vadd.f32 %v860_v38, %v4498_v47 }
 0x3af   :  { %2242 = vlog2.f32 %v4495_v41  ;;  %v2239_v19 = vpop.eup %2238  ;;  %v834_v35 = vmul.f32 0.6931472, %v2237_v55  ;;  %v1831_v55 = vld [vmem:[#allocation2 + $0x78] sm:$0xff] }
 0x3b0   :  { %v1704_v40 = vadd.f32 %v1640_v27, %v1507_v60  ;;  %2244 = vlog2.f32 %v4496_v54  ;;  %v864_v27 = vmul.f32 0.6931472, %v2235_v34  ;;  %v1447_v60 = vadd.f32 %v830_v25, %v4497_v33  ;;  %v2241_v9 = vpop.eup %2240  ;;  %v4506_v54 = vld [vmem:[#allocation61_spill] sm:$0xff] }
 0x3b1   :  { %v1296_v52 = vpop.xlane.xlu1 %1295  ;;  %v1323_v1 = vpop.xlane.xlu0 %1322  ;;  %2246 = vlog2.f32 %v4499_v2  ;;  %v868_v22 = vmul.f32 0.6931472, %v2239_v19  ;;  %v1449_v7 = vadd.f32 %v834_v35, %v4504_v46  ;;  %v836_v25 = vmul.f32 0.6931472, %v2241_v9  ;;  %v4511_v9 = vld [vmem:[#allocation47_spill] sm:$0xff] }
 0x3b2   :  { %1769 = vst.msk [vmem:[#allocation2 + $0xa0] sm:$0xff] %vm1555_vm1, %v1704_v40  ;;  %v1508_v17 = vsub.f32 %v1444_v23, %v1296_v52  ;;  %v1517_v10 = vsub.f32 %v1453_v43, %v1323_v1  ;;  %v1894_v40 = vadd.f32 %v1893_v48, %v1892_v20  ;;  %v1644_v23 = vld [vmem:[#allocation2 + $0xc0] sm:$0xff]  ;;  %v1659_v43 = vld [vmem:[#allocation2 + $0x138] sm:$0xff]  ;;  %2248 = vlog2.f32 %v4502_v13 }
 0x3b3   :  { %v1827_v1 = vld [vmem:[#allocation2 + $0x58] sm:$0xff]  ;;  %2250 = vlog2.f32 %v4503_v28  ;;  %v1905_v20 = vsel %vm1555_vm1, %v1829_v53, 0.0  ;;  %v1909_v2 = vsel %vm1555_vm1, %v1831_v55, 0.0  ;;  %v4513_v28 = vld [vmem:[#allocation31_spill] sm:$0xff] }
 0x3b4   :  { %v1705_v5 = vadd.f32 %v1641_v24, %v1508_v17  ;;  %v1714_v31 = vadd.f32 %v1650_v42, %v1517_v10  ;;  %v1896_v42 = vadd.f32 %v1895_v12, %v1894_v40  ;;  %v4501_v17 = vld [vmem:[#allocation43_spill] sm:$0xff]  ;;  %v1663_v48 = vld [vmem:[#allocation2 + $0x158] sm:$0xff]  ;;  %2252 = vlog2.f32 %v4506_v54 }
 0x3b5   :  { %v1299_v18 = vpop.xlane.xlu1 %1298  ;;  %v1464_v10 = vadd.f32 %v864_v27, %v4501_v17  ;;  %v4507_v12 = vld [vmem:[#allocation29_spill] sm:$0xff] }
 0x3b6   :  { %1770 = vst.msk [vmem:[#allocation2 + $0xa8] sm:$0xff] %vm1555_vm1, %v1705_v5  ;;  %1779 = vst.msk [vmem:[#allocation2 + $0xf0] sm:$0xff] %vm1555_vm1, %v1714_v31  ;;  %v1509_v44 = vsub.f32 %v1445_v63, %v1299_v18  ;;  %v1898_v51 = vadd.f32 %v1897_v56, %v1896_v42  ;;  %v1828_v5 = vld [vmem:[#allocation2 + $0x60] sm:$0xff]  ;;  %v1645_v31 = vld [vmem:[#allocation2 + $0xc8] sm:$0xff] }
 0x3b7   :  { %v1903_v37 = vsel %vm1555_vm1, %v1828_v5, 0.0  ;;  %v1833_v42 = vld [vmem:[#allocation2 + $0x88] sm:$0xff]  ;;  %v4517_v55 = vld [vmem:[#allocation49_spill] sm:$0xff] }
 0x3b8   :  { %v1706_v0 = vadd.f32 %v1642_v4, %v1509_v44  ;;  %v1901_v4 = vsel %vm1555_vm1, %v1827_v1, 0.0  ;;  %v1900_v44 = vadd.f32 %v1899_v45, %v1898_v51  ;;  %v1648_v51 = vld [vmem:[#allocation2 + $0xe0] sm:$0xff] }
 0x3b9   :  { %v1302_v57 = vpop.xlane.xlu1 %1301  ;;  %v2243_v34 = vpop.eup %2242 }
 0x3ba   :  { %1771 = vst.msk [vmem:[#allocation2 + $0xb0] sm:$0xff] %vm1555_vm1, %v1706_v0  ;;  %v1510_v3 = vsub.f32 %v1446_v36, %v1302_v57  ;;  %v4505_v36 = vld [vmem:[#allocation45_spill] sm:$0xff]  ;;  %v2245_v30 = vpop.eup %2244  ;;  %v1902_v6 = vadd.f32 %v1901_v4, %v1900_v44  ;;  %v1646_v57 = vld [vmem:[#allocation2 + $0xd0] sm:$0xff]  ;;  %v838_v33 = vmul.f32 0.6931472, %v2243_v34 }
 0x3bb   :  { %v1466_v38 = vadd.f32 %v868_v22, %v4505_v36  ;;  %v872_v40 = vmul.f32 0.6931472, %v2245_v30  ;;  %v1834_v22 = vld [vmem:[#allocation2 + $0x90] sm:$0xff]  ;;  %v1649_v36 = vld [vmem:[#allocation2 + $0xe8] sm:$0xff] }
 0x3bc   :  { %v1707_v8 = vadd.f32 %v1643_v58, %v1510_v3  ;;  %v1830_v58 = vld [vmem:[#allocation2 + $0x70] sm:$0xff]  ;;  %v1904_v27 = vadd.f32 %v1903_v37, %v1902_v6 }
 0x3bd   :  { %v1305_v29 = vpop.xlane.xlu1 %1304  ;;  %v1350_v62 = vpop.xlane.xlu0 %1349  ;;  %v1907_v47 = vsel %vm1555_vm1, %v1830_v58, 0.0  ;;  %v1468_v45 = vadd.f32 %v872_v40, %v4511_v9  ;;  %v4514_v30 = vld [vmem:[#allocation64_spill] sm:$0xff]  ;;  %v1652_v9 = vld [vmem:[#allocation2 + $0x100] sm:$0xff] }
 0x3be   :  { %1772 = vst.msk [vmem:[#allocation2 + $0xb8] sm:$0xff] %vm1555_vm1, %v1707_v8  ;;  %v1511_v24 = vsub.f32 %v1447_v60, %v1305_v29  ;;  %v1526_v52 = vsub.f32 %v1462_v15, %v1350_v62  ;;  %v1450_v8 = vadd.f32 %v836_v25, %v4507_v12  ;;  %v2247_v60 = vpop.eup %2246  ;;  %v1906_v39 = vadd.f32 %v1905_v20, %v1904_v27  ;;  %v1647_v29 = vld [vmem:[#allocation2 + $0xd8] sm:$0xff]  ;;  %v4508_v62 = vld [vmem:[#allocation62_spill] sm:$0xff] }
 0x3bf   :  { %2254 = vlog2.f32 %v4508_v62  ;;  %v840_v1 = vmul.f32 0.6931472, %v2247_v60  ;;  %v2249_v49 = vpop.eup %2248 }
 0x3c0   :  { %v1708_v16 = vadd.f32 %v1644_v23, %v1511_v24  ;;  %v1723_v63 = vadd.f32 %v1659_v43, %v1526_v52  ;;  %v1832_v23 = vld [vmem:[#allocation2 + $0x80] sm:$0xff]  ;;  %v1908_v52 = vadd.f32 %v1907_v47, %v1906_v39  ;;  %v844_v53 = vmul.f32 0.6931472, %v2249_v49  ;;  %v1651_v47 = vld [vmem:[#allocation2 + $0xf8] sm:$0xff] }
 0x3c1   :  { %v1308_v11 = vpop.xlane.xlu1 %1307  ;;  %v1356_v21 = vpop.xlane.xlu0 %1355  ;;  %v4509_v24 = vld [vmem:[#allocation78_spill] sm:$0xff]  ;;  %v1452_v44 = vadd.f32 %v840_v1, %v4513_v28  ;;  %v1838_v60 = vld [vmem:[#allocation2 + $0xb0] sm:$0xff]  ;;  %v4518_v39 = vld [vmem:[#allocation65_spill] sm:$0xff] }
 0x3c2   :  { %1773 = vst.msk [vmem:[#allocation2 + $0xc0] sm:$0xff] %vm1555_vm1, %v1708_v16  ;;  %1788 = vst.msk [vmem:[#allocation2 + $0x138] sm:$0xff] %vm1555_vm1, %v1723_v63  ;;  %v1512_v18 = vsub.f32 %v1448_v14, %v1308_v11  ;;  %v1528_v26 = vsub.f32 %v1464_v10, %v1356_v21  ;;  %2256 = vlog2.f32 %v4509_v24  ;;  %v1911_v14 = vsel %vm1555_vm1, %v1832_v23, 0.0  ;;  %v4510_v10 = vld [vmem:[#allocation30_spill] sm:$0xff]  ;;  %v2251_v16 = vpop.eup %2250 }
 0x3c3   :  { %v1451_v35 = vadd.f32 %v838_v33, %v4510_v10  ;;  %v1910_v63 = vadd.f32 %v1909_v2, %v1908_v52  ;;  %v1913_v21 = vsel %vm1555_vm1, %v1833_v42, 0.0  ;;  %v2253_v46 = vpop.eup %2252  ;;  %v876_v37 = vmul.f32 0.6931472, %v2251_v16  ;;  %v4520_v16 = vld [vmem:[#allocation66_spill] sm:$0xff] }
 0x3c4   :  { %v1709_v0 = vadd.f32 %v1645_v31, %v1512_v18  ;;  %v1725_v59 = vadd.f32 %v1661_v61, %v1528_v26  ;;  %v1665_v31 = vld [vmem:[#allocation2 + $0x168] sm:$0xff]  ;;  %v1835_v26 = vld [vmem:[#allocation2 + $0x98] sm:$0xff]  ;;  %v1923_v1 = vsel %vm1555_vm1, %v1838_v60, 0.0 }
 0x3c5   :  { %v1311_v41 = vpop.xlane.xlu1 %1310  ;;  %v1362_v3 = vpop.xlane.xlu0 %1361  ;;  %v4512_v61 = vld [vmem:[#allocation63_spill] sm:$0xff]  ;;  %v1912_v18 = vadd.f32 %v1911_v14, %v1910_v63  ;;  %v1917_v6 = vsel %vm1555_vm1, %v1835_v26, 0.0  ;;  %v1470_v12 = vadd.f32 %v876_v37, %v4517_v55  ;;  %v1839_v2 = vld [vmem:[#allocation2 + $0xb8] sm:$0xff]  ;;  %v1654_v55 = vld [vmem:[#allocation2 + $0x110] sm:$0xff] }
 0x3c6   :  { %1774 = vst.msk [vmem:[#allocation2 + $0xc8] sm:$0xff] %vm1555_vm1, %v1709_v0  ;;  %1790 = vst.msk [vmem:[#allocation2 + $0x148] sm:$0xff] %vm1555_vm1, %v1725_v59  ;;  %v1513_v32 = vsub.f32 %v1449_v7, %v1311_v41  ;;  %v1530_v50 = vsub.f32 %v1466_v38, %v1362_v3  ;;  %2258 = vlog2.f32 %v4512_v61  ;;  %v1915_v7 = vsel %vm1555_vm1, %v1834_v22, 0.0  ;;  %v1836_v59 = vld [vmem:[#allocation2 + $0xa0] sm:$0xff]  ;;  %v4523_v26 = vld [vmem:[#allocation51_spill] sm:$0xff] }
 0x3c7   :  { %v1914_v0 = vadd.f32 %v1913_v21, %v1912_v18  ;;  %2260 = vlog2.f32 %v4514_v30  ;;  %v846_v3 = vmul.f32 0.6931472, %v2253_v46  ;;  %v1919_v20 = vsel %vm1555_vm1, %v1836_v59, 0.0 }
 0x3c8   :  { %v1710_v15 = vadd.f32 %v1646_v57, %v1513_v32  ;;  %v1727_v19 = vadd.f32 %v1663_v48, %v1530_v50  ;;  %v4515_v57 = vld [vmem:[#allocation80_spill] sm:$0xff]  ;;  %v1837_v48 = vld [vmem:[#allocation2 + $0xa8] sm:$0xff]  ;;  %v4516_v50 = vld [vmem:[#allocation33_spill] sm:$0xff]  ;;  %v1925_v63 = vsel %vm1555_vm1, %v1839_v2, 0.0 }
 0x3c9   :  { %v1314_v43 = vpop.xlane.xlu1 %1313  ;;  %2262 = vlog2.f32 %v4515_v57  ;;  %v1916_v41 = vadd.f32 %v1915_v7, %v1914_v0  ;;  %v2255_v54 = vpop.eup %2254  ;;  %v1454_v27 = vadd.f32 %v844_v53, %v4516_v50  ;;  %v1921_v23 = vsel %vm1555_vm1, %v1837_v48, 0.0  ;;  %v1653_v7 = vld [vmem:[#allocation2 + $0x108] sm:$0xff]  ;;  %v4529_v2 = vld [vmem:[#allocation53_spill] sm:$0xff] }
 0x3ca   :  { %1775 = vst.msk [vmem:[#allocation2 + $0xd0] sm:$0xff] %vm1555_vm1, %v1710_v15  ;;  %1792 = vst.msk [vmem:[#allocation2 + $0x158] sm:$0xff] %vm1555_vm1, %v1727_v19  ;;  %v1514_v56 = vsub.f32 %v1450_v8, %v1314_v43  ;;  %v1667_v19 = vld [vmem:[#allocation2 + $0x178] sm:$0xff]  ;;  %2264 = vlog2.f32 %v4518_v39  ;;  %v848_v52 = vmul.f32 0.6931472, %v2255_v54  ;;  %v4524_v0 = vld [vmem:[#allocation67_spill] sm:$0xff] }
 0x3cb   :  { %v1918_v33 = vadd.f32 %v1917_v6, %v1916_v41  ;;  %2266 = vlog2.f32 %v4520_v16  ;;  %v4531_v16 = vld [vmem:[#allocation38_spill] sm:$0xff] }
 0x3cc   :  { %v1711_v17 = vadd.f32 %v1647_v29, %v1514_v56  ;;  %v2257_v8 = vpop.eup %2256  ;;  %v4519_v56 = vld [vmem:[#allocation34_spill] sm:$0xff] }
 0x3cd   :  { %v1317_v5 = vpop.xlane.xlu1 %1316  ;;  %v1368_v11 = vpop.xlane.xlu0 %1367  ;;  %v1920_v62 = vadd.f32 %v1919_v20, %v1918_v33  ;;  %v1455_v24 = vadd.f32 %v846_v3, %v4519_v56 }
 0x3ce   :  { %1776 = vst.msk [vmem:[#allocation2 + $0xd8] sm:$0xff] %vm1555_vm1, %v1711_v17  ;;  %v1515_v13 = vsub.f32 %v1451_v35, %v1317_v5  ;;  %v1532_v4 = vsub.f32 %v1468_v45, %v1368_v11  ;;  %v880_v17 = vmul.f32 0.6931472, %v2257_v8  ;;  %v1840_v35 = vld [vmem:[#allocation2 + $0xc0] sm:$0xff]  ;;  %v4526_v8 = vld [vmem:[#allocation69_spill] sm:$0xff] }
 0x3cf   :  { %v1922_v10 = vadd.f32 %v1921_v23, %v1920_v62  ;;  %v1927_v21 = vsel %vm1555_vm1, %v1840_v35, 0.0 }
 0x3d0   :  { %v1712_v25 = vadd.f32 %v1648_v51, %v1515_v13  ;;  %v1729_v34 = vadd.f32 %v1665_v31, %v1532_v4  ;;  %v2259_v42 = vpop.eup %2258  ;;  %v4521_v51 = vld [vmem:[#allocation82_spill] sm:$0xff]  ;;  %v1841_v31 = vld [vmem:[#allocation2 + $0xc8] sm:$0xff]  ;;  %v1472_v28 = vadd.f32 %v880_v17, %v4523_v26 }
 0x3d1   :  { %v1320_v38 = vpop.xlane.xlu1 %1319  ;;  %2268 = vlog2.f32 %v4521_v51  ;;  %v1924_v5 = vadd.f32 %v1923_v1, %v1922_v10  ;;  %v850_v11 = vmul.f32 0.6931472, %v2259_v42  ;;  %v2261_v61 = vpop.eup %2260  ;;  %v4522_v4 = vld [vmem:[#allocation35_spill] sm:$0xff]  ;;  %v1842_v46 = vld [vmem:[#allocation2 + $0xd0] sm:$0xff]  ;;  %v1929_v59 = vsel %vm1555_vm1, %v1841_v31, 0.0  ;;  %v1655_v42 = vld [vmem:[#allocation2 + $0x118] sm:$0xff] }
 0x3d2   :  { %1777 = vst.msk [vmem:[#allocation2 + $0xe0] sm:$0xff] %vm1555_vm1, %v1712_v25  ;;  %1794 = vst.msk [vmem:[#allocation2 + $0x168] sm:$0xff] %vm1555_vm1, %v1729_v34  ;;  %v1516_v58 = vsub.f32 %v1452_v44, %v1320_v38  ;;  %v1456_v18 = vadd.f32 %v848_v52, %v4522_v4  ;;  %v1669_v34 = vld [vmem:[#allocation2 + $0x188] sm:$0xff]  ;;  %2270 = vlog2.f32 %v4524_v0  ;;  %v852_v41 = vmul.f32 0.6931472, %v2261_v61  ;;  %v1846_v61 = vld [vmem:[#allocation2 + $0xf0] sm:$0xff] }
 0x3d3   :  { %v2263_v44 = vpop.eup %2262  ;;  %v1926_v53 = vadd.f32 %v1925_v63, %v1924_v5  ;;  %v1931_v3 = vsel %vm1555_vm1, %v1842_v46, 0.0  ;;  %2272 = vlog2.f32 %v4526_v8  ;;  %v4530_v17 = vld [vmem:[#allocation71_spill] sm:$0xff] }
 0x3d4   :  { %v1713_v32 = vadd.f32 %v1649_v36, %v1516_v58  ;;  %v4525_v58 = vld [vmem:[#allocation36_spill] sm:$0xff]  ;;  %v2265_v48 = vpop.eup %2264  ;;  %v4535_v0 = vld [vmem:[#allocation55_spill] sm:$0xff] }
 0x3d5   :  { %v1326_v15 = vpop.xlane.xlu1 %1325  ;;  %v1374_v40 = vpop.xlane.xlu0 %1373  ;;  %v1928_v30 = vadd.f32 %v1927_v21, %v1926_v53  ;;  %v1843_v6 = vld [vmem:[#allocation2 + $0xd8] sm:$0xff]  ;;  %v1457_v57 = vadd.f32 %v850_v11, %v4525_v58 }
 0x3d6   :  { %1778 = vst.msk [vmem:[#allocation2 + $0xe8] sm:$0xff] %vm1555_vm1, %v1713_v32  ;;  %v1518_v29 = vsub.f32 %v1454_v27, %v1326_v15  ;;  %v1534_v43 = vsub.f32 %v1470_v12, %v1374_v40  ;;  %v884_v32 = vmul.f32 0.6931472, %v2263_v44  ;;  %v1933_v33 = vsel %vm1555_vm1, %v1843_v6, 0.0  ;;  %v2267_v39 = vpop.eup %2266  ;;  %v1657_v6 = vld [vmem:[#allocation2 + $0x128] sm:$0xff] }
 0x3d7   :  { %v1930_v50 = vadd.f32 %v1929_v59, %v1928_v30  ;;  %v854_v40 = vmul.f32 0.6931472, %v2265_v48  ;;  %v856_v31 = vmul.f32 0.6931472, %v2267_v39  ;;  %v4536_v48 = vld [vmem:[#allocation75_spill] sm:$0xff] }
 0x3d8   :  { %v1715_v49 = vadd.f32 %v1651_v47, %v1518_v29  ;;  %v1731_v14 = vadd.f32 %v1667_v19, %v1534_v43  ;;  %v4527_v47 = vld [vmem:[#allocation84_spill] sm:$0xff]  ;;  %v4528_v43 = vld [vmem:[#allocation37_spill] sm:$0xff]  ;;  %v1474_v56 = vadd.f32 %v884_v32, %v4529_v2 }
 0x3d9   :  { %v1329_v45 = vpop.xlane.xlu1 %1328  ;;  %v1844_v27 = vld [vmem:[#allocation2 + $0xe0] sm:$0xff]  ;;  %2274 = vlog2.f32 %v4527_v47  ;;  %v1932_v15 = vadd.f32 %v1931_v3, %v1930_v50  ;;  %v1458_v62 = vadd.f32 %v852_v41, %v4528_v43  ;;  %v1459_v63 = vadd.f32 %v854_v40, %v4531_v16  ;;  %v4537_v50 = vld [vmem:[#allocation40_spill] sm:$0xff] }
 0x3da   :  { %1780 = vst.msk [vmem:[#allocation2 + $0xf8] sm:$0xff] %vm1555_vm1, %v1715_v49  ;;  %1796 = vst.msk [vmem:[#allocation2 + $0x178] sm:$0xff] %vm1555_vm1, %v1731_v14  ;;  %v1519_v22 = vsub.f32 %v1455_v24, %v1329_v45  ;;  %v1935_v23 = vsel %vm1555_vm1, %v1844_v27, 0.0  ;;  %v1671_v49 = vld [vmem:[#allocation2 + $0x198] sm:$0xff]  ;;  %2276 = vlog2.f32 %v4530_v17  ;;  %v1658_v40 = vld [vmem:[#allocation2 + $0x130] sm:$0xff] }
 0x3db   :  { %v2269_v24 = vpop.eup %2268  ;;  %v1934_v52 = vadd.f32 %v1933_v33, %v1932_v15  ;;  %v4541_v17 = vld [vmem:[#allocation7_spill] sm:$0xff]  ;;  %v1660_v16 = vld [vmem:[#allocation2 + $0x140] sm:$0xff] }
 0x3dc   :  { %v1716_v13 = vadd.f32 %v1652_v9, %v1519_v22  ;;  %v2271_v22 = vpop.eup %2270  ;;  %v888_v11 = vmul.f32 0.6931472, %v2269_v24 }
 0x3dd   :  { %v1332_v25 = vpop.xlane.xlu1 %1331  ;;  %v1380_v37 = vpop.xlane.xlu0 %1379  ;;  %v1845_v19 = vld [vmem:[#allocation2 + $0xe8] sm:$0xff]  ;;  %v1936_v45 = vadd.f32 %v1935_v23, %v1934_v52  ;;  %v858_v53 = vmul.f32 0.6931472, %v2271_v22  ;;  %v4538_v23 = vld [vmem:[#allocation77_spill] sm:$0xff] }
 0x3de   :  { %1781 = vst.msk [vmem:[#allocation2 + $0x100] sm:$0xff] %vm1555_vm1, %v1716_v13  ;;  %v1520_v36 = vsub.f32 %v1456_v18, %v1332_v25  ;;  %v1536_v38 = vsub.f32 %v1472_v28, %v1380_v37  ;;  %v1937_v10 = vsel %vm1555_vm1, %v1845_v19, 0.0  ;;  %v1656_v13 = vld [vmem:[#allocation2 + $0x120] sm:$0xff]  ;;  %v4532_v18 = vld [vmem:[#allocation73_spill] sm:$0xff]  ;;  %v2273_v46 = vpop.eup %2272  ;;  %v1476_v59 = vadd.f32 %v888_v11, %v4535_v0 }
 0x3df   :  { %v1938_v21 = vadd.f32 %v1937_v10, %v1936_v45  ;;  %2278 = vlog2.f32 %v4532_v18  ;;  %v4533_v28 = vld [vmem:[#allocation86_spill] sm:$0xff]  ;;  %v1461_v27 = vadd.f32 %v858_v53, %v4537_v50  ;;  %v1675_v22 = vld [vmem:[#allocation2 + $0x1b8] sm:$0xff] }
 0x3e0   :  { %v1717_v54 = vadd.f32 %v1653_v7, %v1520_v36  ;;  %v1733_v20 = vadd.f32 %v1669_v34, %v1536_v38  ;;  %2280 = vlog2.f32 %v4533_v28  ;;  %v1939_v7 = vsel %vm1555_vm1, %v1846_v61, 0.0  ;;  %v4534_v34 = vld [vmem:[#allocation39_spill] sm:$0xff]  ;;  %v4544_v0 = vld [vmem:[#allocation81_spill] sm:$0xff] }
 0x3e1   :  { %v1335_v12 = vpop.xlane.xlu1 %1334  ;;  %v1847_v44 = vld [vmem:[#allocation2 + $0xf8] sm:$0xff]  ;;  %v1460_v37 = vadd.f32 %v856_v31, %v4534_v34  ;;  %v1940_v38 = vadd.f32 %v1939_v7, %v1938_v21  ;;  %2282 = vlog2.f32 %v4536_v48  ;;  %v1662_v34 = vld [vmem:[#allocation2 + $0x150] sm:$0xff] }
 0x3e2   :  { %1782 = vst.msk [vmem:[#allocation2 + $0x108] sm:$0xff] %vm1555_vm1, %v1717_v54  ;;  %1798 = vst.msk [vmem:[#allocation2 + $0x188] sm:$0xff] %vm1555_vm1, %v1733_v20  ;;  %v1521_v60 = vsub.f32 %v1457_v57, %v1335_v12  ;;  %v1673_v57 = vld [vmem:[#allocation2 + $0x1a8] sm:$0xff]  ;;  %v1941_v3 = vsel %vm1555_vm1, %v1847_v44, 0.0  ;;  %2284 = vlog2.f32 %v4538_v23  ;;  %v1855_v50 = vld [vmem:[#allocation2 + $0x138] sm:$0xff] }
 0x3e3   :  { %v2275_v36 = vpop.eup %2274  ;;  %v1942_v15 = vadd.f32 %v1941_v3, %v1940_v38  ;;  %v4545_v38 = vld [vmem:[#allocation90_spill] sm:$0xff] }
 0x3e4   :  { %v1718_v29 = vadd.f32 %v1654_v55, %v1521_v60  ;;  %v862_v55 = vmul.f32 0.6931472, %v2273_v46  ;;  %v2277_v12 = vpop.eup %2276  ;;  %v892_v47 = vmul.f32 0.6931472, %v2275_v36  ;;  %v1664_v3 = vld [vmem:[#allocation2 + $0x160] sm:$0xff] }
 0x3e5   :  { %v1338_v1 = vpop.xlane.xlu1 %1337  ;;  %v1386_v14 = vpop.xlane.xlu0 %1385  ;;  %v1848_v30 = vld [vmem:[#allocation2 + $0x100] sm:$0xff]  ;;  %v866_v24 = vmul.f32 0.6931472, %v2277_v12 }
 0x3e6   :  { %1783 = vst.msk [vmem:[#allocation2 + $0x110] sm:$0xff] %vm1555_vm1, %v1718_v29  ;;  %v1522_v35 = vsub.f32 %v1458_v62, %v1338_v1  ;;  %v1538_v9 = vsub.f32 %v1474_v56, %v1386_v14  ;;  %v1943_v8 = vsel %vm1555_vm1, %v1848_v30, 0.0  ;;  %v4539_v62 = vld [vmem:[#allocation88_spill] sm:$0xff]  ;;  %v1478_v10 = vadd.f32 %v892_v47, %v4541_v17  ;;  %v4550_v17 = vld [vmem:[#allocation85_spill] sm:$0xff] }
 0x3e7   :  { %2286 = vlog2.f32 %v4539_v62  ;;  %v1944_v2 = vadd.f32 %v1943_v8, %v1942_v15  ;;  %v1677_v8 = vld [vmem:[#allocation2 + $0x1c8] sm:$0xff]  ;;  %v1957_v62 = vsel %vm1555_vm1, %v1855_v50, 0.0 }
 0x3e8   :  { %v1719_v51 = vadd.f32 %v1655_v42, %v1522_v35  ;;  %v1735_v5 = vadd.f32 %v1671_v49, %v1538_v9  ;;  %v4540_v49 = vld [vmem:[#allocation42_spill] sm:$0xff] }
 0x3e9   :  { %v1341_v4 = vpop.xlane.xlu1 %1340  ;;  %v1849_v32 = vld [vmem:[#allocation2 + $0x108] sm:$0xff]  ;;  %v2279_v52 = vpop.eup %2278  ;;  %v1463_v14 = vadd.f32 %v862_v55, %v4540_v49  ;;  %v1666_v49 = vld [vmem:[#allocation2 + $0x170] sm:$0xff] }
 0x3ea   :  { %1784 = vst.msk [vmem:[#allocation2 + $0x118] sm:$0xff] %vm1555_vm1, %v1719_v51  ;;  %1800 = vst.msk [vmem:[#allocation2 + $0x198] sm:$0xff] %vm1555_vm1, %v1735_v5  ;;  %v1523_v26 = vsub.f32 %v1459_v63, %v1341_v4  ;;  %v1945_v29 = vsel %vm1555_vm1, %v1849_v32, 0.0  ;;  %v2281_v35 = vpop.eup %2280  ;;  %v4542_v5 = vld [vmem:[#allocation79_spill] sm:$0xff]  ;;  %v870_v18 = vmul.f32 0.6931472, %v2279_v52 }
 0x3eb   :  { %v1946_v9 = vadd.f32 %v1945_v29, %v1944_v2  ;;  %2288 = vlog2.f32 %v4542_v5  ;;  %v896_v46 = vmul.f32 0.6931472, %v2281_v35  ;;  %v1857_v52 = vld [vmem:[#allocation2 + $0x148] sm:$0xff]  ;;  %v4552_v5 = vld [vmem:[#allocation50_spill] sm:$0xff] }
 0x3ec   :  { %v1720_v25 = vadd.f32 %v1656_v13, %v1523_v26  ;;  %v4543_v13 = vld [vmem:[#allocation44_spill] sm:$0xff]  ;;  %v2283_v26 = vpop.eup %2282  ;;  %2290 = vlog2.f32 %v4544_v0 }
 0x3ed   :  { %v1344_v58 = vpop.xlane.xlu1 %1343  ;;  %v1392_v41 = vpop.xlane.xlu0 %1391  ;;  %v1850_v19 = vld [vmem:[#allocation2 + $0x110] sm:$0xff]  ;;  %v1465_v4 = vadd.f32 %v866_v24, %v4543_v13  ;;  %2292 = vlog2.f32 %v4545_v38 }
 0x3ee   :  { %1785 = vst.msk [vmem:[#allocation2 + $0x120] sm:$0xff] %vm1555_vm1, %v1720_v25  ;;  %v1524_v54 = vsub.f32 %v1460_v37, %v1344_v58  ;;  %v1540_v20 = vsub.f32 %v1476_v59, %v1392_v41  ;;  %v1947_v42 = vsel %vm1555_vm1, %v1850_v19, 0.0  ;;  %v2285_v58 = vpop.eup %2284  ;;  %v4546_v41 = vld [vmem:[#allocation46_spill] sm:$0xff]  ;;  %v4555_v0 = vld [vmem:[#allocation52_spill] sm:$0xff] }
 0x3ef   :  { %v1948_v21 = vadd.f32 %v1947_v42, %v1946_v9  ;;  %v1467_v48 = vadd.f32 %v870_v18, %v4546_v41  ;;  %v878_v29 = vmul.f32 0.6931472, %v2285_v58  ;;  %v4551_v9 = vld [vmem:[#allocation92_spill] sm:$0xff]  ;;  %v1861_v41 = vld [vmem:[#allocation2 + $0x168] sm:$0xff] }
 0x3f0   :  { %v1721_v33 = vadd.f32 %v1657_v6, %v1524_v54  ;;  %v1737_v60 = vadd.f32 %v1673_v57, %v1540_v20  ;;  %v874_v6 = vmul.f32 0.6931472, %v2283_v26  ;;  %v4547_v54 = vld [vmem:[#allocation9_spill] sm:$0xff] }
 0x3f1   :  { %v1347_v39 = vpop.xlane.xlu1 %1346  ;;  %v1851_v56 = vld [vmem:[#allocation2 + $0x118] sm:$0xff]  ;;  %v1480_v20 = vadd.f32 %v896_v46, %v4547_v54  ;;  %v2287_v32 = vpop.eup %2286  ;;  %v4554_v46 = vld [vmem:[#allocation87_spill] sm:$0xff]  ;;  %v1670_v54 = vld [vmem:[#allocation2 + $0x190] sm:$0xff] }
 0x3f2   :  { %1786 = vst.msk [vmem:[#allocation2 + $0x128] sm:$0xff] %vm1555_vm1, %v1721_v33  ;;  %1802 = vst.msk [vmem:[#allocation2 + $0x1a8] sm:$0xff] %vm1555_vm1, %v1737_v60  ;;  %v1525_v43 = vsub.f32 %v1461_v27, %v1347_v39  ;;  %v1949_v31 = vsel %vm1555_vm1, %v1851_v56, 0.0  ;;  %v4548_v60 = vld [vmem:[#allocation83_spill] sm:$0xff]  ;;  %v4549_v39 = vld [vmem:[#allocation48_spill] sm:$0xff] }
 0x3f3   :  { %v1950_v7 = vadd.f32 %v1949_v31, %v1948_v21  ;;  %2294 = vlog2.f32 %v4548_v60  ;;  %v1469_v23 = vadd.f32 %v874_v6, %v4549_v39  ;;  %v900_v24 = vmul.f32 0.6931472, %v2287_v32 }
 0x3f4   :  { %v1722_v1 = vadd.f32 %v1658_v40, %v1525_v43  ;;  %2296 = vlog2.f32 %v4550_v17  ;;  %v1471_v31 = vadd.f32 %v878_v29, %v4552_v5 }
 0x3f5   :  { %v1852_v45 = vld [vmem:[#allocation2 + $0x120] sm:$0xff]  ;;  %v1353_v63 = vpop.xlane.xlu1 %1352  ;;  %v1398_v51 = vpop.xlane.xlu0 %1397  ;;  %2298 = vlog2.f32 %v4551_v9 }
 0x3f6   :  { %1787 = vst.msk [vmem:[#allocation2 + $0x130] sm:$0xff] %vm1555_vm1, %v1722_v1  ;;  %v1527_v11 = vsub.f32 %v1463_v14, %v1353_v63  ;;  %v1542_v61 = vsub.f32 %v1478_v10, %v1398_v51  ;;  %v1951_v28 = vsel %vm1555_vm1, %v1852_v45, 0.0  ;;  %v2289_v43 = vpop.eup %2288  ;;  %2300 = vlog2.f32 %v4554_v46  ;;  %v4562_v46 = vld [vmem:[#allocation15_spill] sm:$0xff] }
 0x3f7   :  { %v1952_v30 = vadd.f32 %v1951_v28, %v1950_v7  ;;  %v2291_v63 = vpop.eup %2290 }
 0x3f8   :  { %v1724_v44 = vadd.f32 %v1660_v16, %v1527_v11  ;;  %v1739_v53 = vadd.f32 %v1675_v22, %v1542_v61  ;;  %v882_v16 = vmul.f32 0.6931472, %v2289_v43  ;;  %v1961_v22 = vsel %vm1555_vm1, %v1857_v52, 0.0  ;;  %v1668_v11 = vld [vmem:[#allocation2 + $0x180] sm:$0xff]  ;;  %v4553_v61 = vld [vmem:[#allocation11_spill] sm:$0xff]  ;;  %v2293_v13 = vpop.eup %2292 }
 0x3f9   :  { %v1853_v25 = vld [vmem:[#allocation2 + $0x128] sm:$0xff]  ;;  %v1359_v37 = vpop.xlane.xlu1 %1358  ;;  %v1482_v21 = vadd.f32 %v900_v24, %v4553_v61 }
 0x3fa   :  { %v1953_v59 = vsel %vm1555_vm1, %v1853_v25, 0.0  ;;  %1789 = vst.msk [vmem:[#allocation2 + $0x140] sm:$0xff] %vm1555_vm1, %v1724_v44  ;;  %1804 = vst.msk [vmem:[#allocation2 + $0x1b8] sm:$0xff] %vm1555_vm1, %v1739_v53  ;;  %v1529_v36 = vsub.f32 %v1465_v4, %v1359_v37  ;;  %v1859_v4 = vld [vmem:[#allocation2 + $0x158] sm:$0xff] }
 0x3fb   :  { %v1954_v27 = vadd.f32 %v1953_v59, %v1952_v30  ;;  %v1679_v44 = vld [vmem:[#allocation2 + $0x1d8] sm:$0xff]  ;;  %v1473_v59 = vadd.f32 %v882_v16, %v4555_v0  ;;  %v1965_v30 = vsel %vm1555_vm1, %v1859_v4, 0.0 }
 0x3fc   :  { %v1726_v57 = vadd.f32 %v1662_v34, %v1529_v36  ;;  %v886_v36 = vmul.f32 0.6931472, %v2291_v63  ;;  %v1683_v0 = vld [vmem:[#allocation2 + $0x1f8] sm:$0xff] }
 0x3fd   :  { %v1854_v55 = vld [vmem:[#allocation2 + $0x130] sm:$0xff]  ;;  %v1365_v12 = vpop.xlane.xlu1 %1364  ;;  %v1404_v33 = vpop.xlane.xlu0 %1403 }
 0x3fe   :  { %v1955_v47 = vsel %vm1555_vm1, %v1854_v55, 0.0  ;;  %1791 = vst.msk [vmem:[#allocation2 + $0x150] sm:$0xff] %vm1555_vm1, %v1726_v57  ;;  %v1531_v15 = vsub.f32 %v1467_v48, %v1365_v12  ;;  %v1544_v19 = vsub.f32 %v1480_v20, %v1404_v33  ;;  %v2295_v38 = vpop.eup %2294  ;;  %v904_v57 = vmul.f32 0.6931472, %v2293_v13 }
 0x3ff   :  { %v1956_v40 = vadd.f32 %v1955_v47, %v1954_v27  ;;  %v4556_v27 = vld [vmem:[#allocation89_spill] sm:$0xff]  ;;  %v890_v12 = vmul.f32 0.6931472, %v2295_v38  ;;  %v1969_v33 = vsel %vm1555_vm1, %v1861_v41, 0.0  ;;  %v4557_v47 = vld [vmem:[#allocation54_spill] sm:$0xff] }
 0x400   :  { %v1728_v2 = vadd.f32 %v1664_v3, %v1531_v15  ;;  %v1741_v56 = vadd.f32 %v1677_v8, %v1544_v19  ;;  %2302 = vlog2.f32 %v4556_v27  ;;  %v2297_v8 = vpop.eup %2296  ;;  %v1475_v15 = vadd.f32 %v886_v36, %v4557_v47  ;;  %v1672_v19 = vld [vmem:[#allocation2 + $0x1a0] sm:$0xff]  ;;  %v1867_v38 = vld [vmem:[#allocation2 + $0x198] sm:$0xff] }
 0x401   :  { %v1856_v42 = vld [vmem:[#allocation2 + $0x140] sm:$0xff]  ;;  %v1958_v1 = vadd.f32 %v1957_v62, %v1956_v40  ;;  %v1371_v14 = vpop.xlane.xlu1 %1370  ;;  %v4558_v40 = vld [vmem:[#allocation13_spill] sm:$0xff]  ;;  %v1681_v62 = vld [vmem:[#allocation2 + $0x1e8] sm:$0xff] }
 0x402   :  { %v1959_v10 = vsel %vm1555_vm1, %v1856_v42, 0.0  ;;  %1793 = vst.msk [vmem:[#allocation2 + $0x160] sm:$0xff] %vm1555_vm1, %v1728_v2  ;;  %1806 = vst.msk [vmem:[#allocation2 + $0x1c8] sm:$0xff] %vm1555_vm1, %v1741_v56  ;;  %v1533_v35 = vsub.f32 %v1469_v23, %v1371_v14  ;;  %v1484_v39 = vadd.f32 %v904_v57, %v4558_v40  ;;  %v2299_v23 = vpop.eup %2298  ;;  %v1863_v56 = vld [vmem:[#allocation2 + $0x178] sm:$0xff]  ;;  %v4560_v14 = vld [vmem:[#allocation6_spill] sm:$0xff] }
 0x403   :  { %v1960_v45 = vadd.f32 %v1959_v10, %v1958_v1  ;;  %v1477_v17 = vadd.f32 %v890_v12, %v4560_v14  ;;  %v894_v10 = vmul.f32 0.6931472, %v2297_v8  ;;  %v2301_v9 = vpop.eup %2300  ;;  %v908_v63 = vmul.f32 0.6931472, %v2299_v23  ;;  %v4563_v41 = vld [vmem:[#allocation10_spill] sm:$0xff] }
 0x404   :  { %v1730_v51 = vadd.f32 %v1666_v49, %v1533_v35  ;;  %v4559_v49 = vld [vmem:[#allocation91_spill] sm:$0xff]  ;;  %v898_v4 = vmul.f32 0.6931472, %v2301_v9  ;;  %v1682_v9 = vld [vmem:[#allocation2 + $0x1f0] sm:$0xff] }
 0x405   :  { %v1858_v18 = vld [vmem:[#allocation2 + $0x150] sm:$0xff]  ;;  %v1962_v26 = vadd.f32 %v1961_v22, %v1960_v45  ;;  %v1377_v28 = vpop.xlane.xlu1 %1376  ;;  %v1410_v53 = vpop.xlane.xlu0 %1409  ;;  %2304 = vlog2.f32 %v4559_v49  ;;  %v1973_v22 = vsel %vm1555_vm1, %v1863_v56, 0.0 }
 0x406   :  { %v1963_v7 = vsel %vm1555_vm1, %v1858_v18, 0.0  ;;  %1795 = vst.msk [vmem:[#allocation2 + $0x170] sm:$0xff] %vm1555_vm1, %v1730_v51  ;;  %v1535_v25 = vsub.f32 %v1471_v31, %v1377_v28  ;;  %v1546_v34 = vsub.f32 %v1482_v21, %v1410_v53  ;;  %v1674_v51 = vld [vmem:[#allocation2 + $0x1b0] sm:$0xff]  ;;  %v1676_v53 = vld [vmem:[#allocation2 + $0x1c0] sm:$0xff] }
 0x407   :  { %v1964_v37 = vadd.f32 %v1963_v7, %v1962_v26  ;;  %v4561_v28 = vld [vmem:[#allocation8_spill] sm:$0xff]  ;;  %v1486_v7 = vadd.f32 %v908_v63, %v4562_v46 }
 0x408   :  { %v1732_v6 = vadd.f32 %v1668_v11, %v1535_v25  ;;  %v1743_v58 = vadd.f32 %v1679_v44, %v1546_v34  ;;  %v1865_v11 = vld [vmem:[#allocation2 + $0x188] sm:$0xff]  ;;  %v1479_v44 = vadd.f32 %v894_v10, %v4561_v28 }
 0x409   :  { %v1860_v48 = vld [vmem:[#allocation2 + $0x160] sm:$0xff]  ;;  %v1966_v3 = vadd.f32 %v1965_v30, %v1964_v37  ;;  %v1383_v20 = vpop.xlane.xlu1 %1382  ;;  %v1977_v25 = vsel %vm1555_vm1, %v1865_v11, 0.0  ;;  %v1873_v63 = vld [vmem:[#allocation2 + $0x1c8] sm:$0xff] }
 0x40a   :  { %v1967_v32 = vsel %vm1555_vm1, %v1860_v48, 0.0  ;;  %1797 = vst.msk [vmem:[#allocation2 + $0x180] sm:$0xff] %vm1555_vm1, %v1732_v6  ;;  %1808 = vst.msk [vmem:[#allocation2 + $0x1d8] sm:$0xff] %vm1555_vm1, %v1743_v58  ;;  %v1537_v50 = vsub.f32 %v1473_v59, %v1383_v20  ;;  %v2303_v34 = vpop.eup %2302  ;;  %v1481_v48 = vadd.f32 %v898_v4, %v4563_v41 }
 0x40b   :  { %v1968_v55 = vadd.f32 %v1967_v32, %v1966_v3  ;;  %v902_v32 = vmul.f32 0.6931472, %v2303_v34 }
 0x40c   :  { %v1734_v60 = vadd.f32 %v1670_v54, %v1537_v50  ;;  %v1981_v50 = vsel %vm1555_vm1, %v1867_v38, 0.0 }
 0x40d   :  { %v1862_v29 = vld [vmem:[#allocation2 + $0x170] sm:$0xff]  ;;  %v1389_v43 = vpop.xlane.xlu1 %1388  ;;  %v1416_v2 = vpop.xlane.xlu0 %1415  ;;  %v1970_v24 = vadd.f32 %v1969_v33, %v1968_v55  ;;  %v1869_v33 = vld [vmem:[#allocation2 + $0x1a8] sm:$0xff] }
 0x40e   :  { %1799 = vst.msk [vmem:[#allocation2 + $0x190] sm:$0xff] %vm1555_vm1, %v1734_v60  ;;  %v1539_v52 = vsub.f32 %v1475_v15, %v1389_v43  ;;  %v1548_v42 = vsub.f32 %v1484_v39, %v1416_v2  ;;  %v1971_v1 = vsel %vm1555_vm1, %v1862_v29, 0.0  ;;  %v1678_v55 = vld [vmem:[#allocation2 + $0x1d0] sm:$0xff]  ;;  %v1985_v43 = vsel %vm1555_vm1, %v1869_v33, 0.0 }
 0x40f   :  { %v1972_v35 = vadd.f32 %v1971_v1, %v1970_v24  ;;  %v2305_v27 = vpop.eup %2304  ;;  %v4564_v39 = vld [vmem:[#allocation12_spill] sm:$0xff]  ;;  %v1871_v24 = vld [vmem:[#allocation2 + $0x1b8] sm:$0xff] }
 0x410   :  { %v1736_v45 = vadd.f32 %v1672_v19, %v1539_v52  ;;  %v1745_v16 = vadd.f32 %v1681_v62, %v1548_v42  ;;  %v1483_v23 = vadd.f32 %v902_v32, %v4564_v39  ;;  %v906_v29 = vmul.f32 0.6931472, %v2305_v27  ;;  %v1680_v62 = vld [vmem:[#allocation2 + $0x1e0] sm:$0xff] }
 0x411   :  { %v1395_v5 = vpop.xlane.xlu1 %1394  ;;  %v1864_v31 = vld [vmem:[#allocation2 + $0x180] sm:$0xff]  ;;  %v1974_v61 = vadd.f32 %v1973_v22, %v1972_v35  ;;  %v1989_v35 = vsel %vm1555_vm1, %v1871_v24, 0.0 }
 0x412   :  { %1801 = vst.msk [vmem:[#allocation2 + $0x1a0] sm:$0xff] %vm1555_vm1, %v1736_v45  ;;  %1810 = vst.msk [vmem:[#allocation2 + $0x1e8] sm:$0xff] %vm1555_vm1, %v1745_v16  ;;  %v1541_v21 = vsub.f32 %v1477_v17, %v1395_v5  ;;  %v1975_v13 = vsel %vm1555_vm1, %v1864_v31, 0.0  ;;  %v4565_v17 = vld [vmem:[#allocation14_spill] sm:$0xff] }
 0x413   :  { %v1976_v18 = vadd.f32 %v1975_v13, %v1974_v61  ;;  %v1485_v10 = vadd.f32 %v906_v29, %v4565_v17  ;;  %v1993_v61 = vsel %vm1555_vm1, %v1873_v63, 0.0  ;;  %v1875_v13 = vld [vmem:[#allocation2 + $0x1d8] sm:$0xff] }
 0x414   :  { %v1738_v26 = vadd.f32 %v1674_v51, %v1541_v21  ;;  %v1997_v28 = vsel %vm1555_vm1, %v1875_v13, 0.0 }
 0x415   :  { %v1401_v37 = vpop.xlane.xlu1 %1400  ;;  %v1422_v59 = vpop.xlane.xlu0 %1421  ;;  %v1866_v36 = vld [vmem:[#allocation2 + $0x190] sm:$0xff]  ;;  %v1978_v30 = vadd.f32 %v1977_v25, %v1976_v18 }
 0x416   :  { %1803 = vst.msk [vmem:[#allocation2 + $0x1b0] sm:$0xff] %vm1555_vm1, %v1738_v26  ;;  %v1543_v6 = vsub.f32 %v1479_v44, %v1401_v37  ;;  %v1550_v58 = vsub.f32 %v1486_v7, %v1422_v59  ;;  %v1979_v57 = vsel %vm1555_vm1, %v1866_v36, 0.0 }
 0x417   :  { %v1980_v3 = vadd.f32 %v1979_v57, %v1978_v30 }
 0x418   :  { %v1740_v54 = vadd.f32 %v1676_v53, %v1543_v6  ;;  %v1747_v20 = vadd.f32 %v1683_v0, %v1550_v58 }
 0x419   :  { %v1407_v12 = vpop.xlane.xlu1 %1406  ;;  %v1868_v8 = vld [vmem:[#allocation2 + $0x1a0] sm:$0xff]  ;;  %v1982_v60 = vadd.f32 %v1981_v50, %v1980_v3  ;;  %v1877_v53 = vld [vmem:[#allocation2 + $0x1e8] sm:$0xff] }
 0x41a   :  { %1805 = vst.msk [vmem:[#allocation2 + $0x1c0] sm:$0xff] %vm1555_vm1, %v1740_v54  ;;  %1812 = vst.msk [vmem:[#allocation2 + $0x1f8] sm:$0xff] %vm1555_vm1, %v1747_v20  ;;  %v1545_v47 = vsub.f32 %v1481_v48, %v1407_v12  ;;  %v1983_v15 = vsel %vm1555_vm1, %v1868_v8, 0.0  ;;  %v2001_v34 = vsel %vm1555_vm1, %v1877_v53, 0.0 }
 0x41b   :  { %v1984_v19 = vadd.f32 %v1983_v15, %v1982_v60 }
 0x41c   :  { %v1742_v40 = vadd.f32 %v1678_v55, %v1545_v47 }
 0x41d   :  { %v1413_v2 = vpop.xlane.xlu1 %1412  ;;  %v1870_v56 = vld [vmem:[#allocation2 + $0x1b0] sm:$0xff]  ;;  %v1986_v52 = vadd.f32 %v1985_v43, %v1984_v19 }
 0x41e   :  { %1807 = vst.msk [vmem:[#allocation2 + $0x1d0] sm:$0xff] %vm1555_vm1, %v1742_v40  ;;  %v1547_v42 = vsub.f32 %v1483_v23, %v1413_v2  ;;  %v1987_v1 = vsel %vm1555_vm1, %v1870_v56, 0.0 }
 0x41f   :  { %v1988_v49 = vadd.f32 %v1987_v1, %v1986_v52 }
 0x420   :  { %v1744_v14 = vadd.f32 %v1680_v62, %v1547_v42 }
 0x421   :  { %v1419_v45 = vpop.xlane.xlu1 %1418  ;;  %v1872_v16 = vld [vmem:[#allocation2 + $0x1c0] sm:$0xff]  ;;  %v1990_v22 = vadd.f32 %v1989_v35, %v1988_v49  ;;  %v1879_v0 = vld [vmem:[#allocation2 + $0x1f8] sm:$0xff] }
 0x422   :  { %1809 = vst.msk [vmem:[#allocation2 + $0x1e0] sm:$0xff] %vm1555_vm1, %v1744_v14  ;;  %v1549_v51 = vsub.f32 %v1485_v10, %v1419_v45  ;;  %v1991_v5 = vsel %vm1555_vm1, %v1872_v16, 0.0  ;;  %v2005_v30 = vsel %vm1555_vm1, %v1879_v0, 0.0 }
 0x423   :  { %v1992_v31 = vadd.f32 %v1991_v5, %v1990_v22 }
 0x424   :  { %v1746_v11 = vadd.f32 %v1682_v9, %v1549_v51 }
 0x425   :  { %v1874_v21 = vld [vmem:[#allocation2 + $0x1d0] sm:$0xff]  ;;  %v1994_v4 = vadd.f32 %v1993_v61, %v1992_v31 }
 0x426   :  { %1811 = vst.msk [vmem:[#allocation2 + $0x1f0] sm:$0xff] %vm1555_vm1, %v1746_v11  ;;  %v1995_v18 = vsel %vm1555_vm1, %v1874_v21, 0.0 }
 0x427   :  { %v1996_v26 = vadd.f32 %v1995_v18, %v1994_v4 }
 0x429   :  { %v1876_v44 = vld [vmem:[#allocation2 + $0x1e0] sm:$0xff]  ;;  %v1998_v46 = vadd.f32 %v1997_v28, %v1996_v26 }
 0x42a   :  { %v1999_v7 = vsel %vm1555_vm1, %v1876_v44, 0.0 }
 0x42b   :  { %v2000_v25 = vadd.f32 %v1999_v7, %v1998_v46 }
 0x42d   :  { %v1878_v37 = vld [vmem:[#allocation2 + $0x1f0] sm:$0xff]  ;;  %v2002_v59 = vadd.f32 %v2001_v34, %v2000_v25 }
 0x42e   :  { %v2003_v36 = vsel %vm1555_vm1, %v1878_v37, 0.0 }
 0x42f   :  { %v2004_v38 = vadd.f32 %v2003_v36, %v2002_v59 }
 0x431   :  { %v2006_v6 = vadd.f32 %v2005_v30, %v2004_v38 }
 0x433   :  { %2007 = vadd.xlane.f32.xlu1 %v2006_v6 }
 0x4c0   :  { %v2008_v58 = vpop.xlane.xlu1 %2007 }
 0x4c1   :  { %v2009_v57 = vrot.slane %v2008_v58, 4 }
 0x4c3   :  { %v2010_v41 = vadd.f32 %v2009_v57, %v2008_v58 }
 0x4c5   :  { %v2011_v48 = vrot.slane %v2010_v41, 2 }
 0x4c7   :  { %v2012_v3 = vadd.f32 %v2011_v48, %v2010_v41 }
 0x4c9   :  { %v2013_v54 = vrot.slane %v2012_v3, 1 }
 0x4cb   :  { %v2014_v20 = vadd.f32 %v2013_v54, %v2012_v3 }
 0x4cd   :  { %2043 = vpush %v2014_v20 }
 0x4fe   :  { %s2044_s0 = spop %2043 }
 0x4ff   :  { %2017 = sst [smem:[#allocation3]] %s2044_s0 }
 0x500   :  { %2379 = shalt.err (!%p2376_p2)
}
 0x501   :  { %s2384_s4 = smov [#allocation3]  }
 0x502   :  { %2025 = dma.smem_to_hbm %s2384_s4, 16, %s4307_s2, [#allocation4]  }
 0x503   :  { %2380 = dma.done.wait [#allocation4], 16  }
 0x504   :  { %2381 = vsyncadd [#allocation4], 4294967280 }
 0x505   :  { %2029 = sfence }
 0x506   :  { %2030 = vsyncpa [#allocation4], 1 }

</bundles_post_ra>
